<compile_context>
chip_gen: v7x
topology: tpu7x:2x2x1
jax: 0.10.0
libtpu: 0.0.40
codegen_flags: <defaults>
</compile_context>

<pallas_src>
import functools

import jax
import jax.numpy as jnp
from jax.experimental import pallas as pl
from jax.experimental.pallas import tpu as pltpu


_LANE = 128
_SUBLANE = 8
_TARGET_TILE_BYTES = 4 * 1024 * 1024      # per-array row-tile target (f32)
_VMEM_LIMIT_BYTES = 32 * 1024 * 1024      # safe scoped limit on v5e/v6e/v7x
_SMALL_INPUT_BYTES = 2 * 1024 * 1024      # below this, the fused XLA loop wins


def _dropout_kernel(x_ref, mask_ref, o_ref, *, inv_keep_prob):
    # out = x * mask / keep_prob, computed in f32 (mask cast happens here, on
    # VMEM-resident data, instead of as a separate XLA pass over HBM).
    x = x_ref[...].astype(jnp.float32)
    m = mask_ref[...].astype(jnp.float32)
    o_ref[...] = (x * (m * inv_keep_prob)).astype(o_ref.dtype)


def _jax_dropout(x, mask, keep_prob):
    # Single fused elementwise XLA loop; used for tiny / pathological shapes.
    inv = jnp.float32(1.0 / keep_prob)
    return (x.astype(jnp.float32) * mask.astype(jnp.float32) * inv).astype(x.dtype)


def _round_up(v, m):
    return (v + m - 1) // m * m


def _pick_view(x, mask):
    """Return a lane-friendly 2-D view (x2, m2, rows, cols) or None."""
    cols = x.shape[-1] if x.ndim else 1
    rows = x.size // cols if cols else 0
    if x.ndim >= 2 and cols % _LANE == 0 and rows >= _SUBLANE:
        # Collapsing leading dims keeps the minor dim intact (free relayout).
        return x.reshape(rows, cols), mask.reshape(rows, cols), rows, cols
    # Elementwise op: re-view the flat buffer as (N // W, W), W a multiple of
    # 128, so output stores are unmasked and lane-dense.
    n = x.size
    for w in (2048, 1024, 512, 256, _LANE):
        if n % w == 0:
            return x.reshape(n // w, w), mask.reshape(n // w, w), n // w, w
    return None


def deterministic_dropout(x, mask, keep_prob, *, training=True,
                          min_pallas_bytes=_SMALL_INPUT_BYTES):
    """Pallas equivalent of DeterministicDropout.forward(x, mask)."""
    if not training:
        return x
    if x.size == 0:
        return x
    assert x.shape == mask.shape, "x and mask must have the same shape"

    itemsize = jnp.dtype(x.dtype).itemsize
    if x.size * itemsize < min_pallas_bytes:
        return _jax_dropout(x, mask, keep_prob)

    view = _pick_view(x, mask)
    if view is None:
        return _jax_dropout(x, mask, keep_prob)
    x2, m2, rows, cols = view
    mask_item = jnp.dtype(m2.dtype).itemsize

    # Row-tile size: ~4 MiB of x per tile, multiple of 32 rows (keeps f32,
    # bf16 and int8 operands in native sublane packing), floor of 8.
    row_bytes = cols * itemsize
    tr = max(_SUBLANE, _TARGET_TILE_BYTES // max(1, row_bytes))
    tr = (tr // 32) * 32 if tr >= 32 else max(_SUBLANE, (tr // _SUBLANE) * _SUBLANE)
    if rows <= _SUBLANE:
        tr = rows                      # single full-extent block
    else:
        # Guarantee >= 2 grid steps so "parallel" shards across v7x's 2 TCs.
        cap = _round_up(-(-rows // 2), _SUBLANE)
        tr = min(tr, cap)

    # VMEM safety: x + mask + out tiles, double-buffered, must fit the limit.
    tile_bytes = tr * cols * (2 * itemsize + mask_item)
    if 2 * tile_bytes > _VMEM_LIMIT_BYTES - 4 * 1024 * 1024:
        return _jax_dropout(x, mask, keep_prob)

    total_bytes = rows * cols * (2 * itemsize + mask_item)
    grid = (pl.cdiv(rows, tr),)        # ragged tail handled by Pallas masking

    kernel = functools.partial(_dropout_kernel,
                               inv_keep_prob=float(1.0 / keep_prob))

    out2 = pl.pallas_call(
        kernel,
        out_shape=jax.ShapeDtypeStruct((rows, cols), x.dtype),
        grid_spec=pltpu.PrefetchScalarGridSpec(
            num_scalar_prefetch=0,
            grid=grid,
            in_specs=[
                pl.BlockSpec((tr, cols), lambda i: (i, 0)),
                pl.BlockSpec((tr, cols), lambda i: (i, 0)),
            ],
            out_specs=pl.BlockSpec((tr, cols), lambda i: (i, 0)),
        ),
        compiler_params=pltpu.CompilerParams(
            dimension_semantics=("parallel",),     # shards across v7x's 2 TCs
            vmem_limit_bytes=_VMEM_LIMIT_BYTES,
        ),
        cost_estimate=pl.CostEstimate(
            flops=2 * rows * cols,
            transcendentals=0,
            bytes_accessed=total_bytes,
        ),
    )(x2, m2)

    return out2.reshape(x.shape)


class DeterministicDropout:
    """JAX/Pallas port of hivemind's DeterministicDropout (forward only)."""
    # TODO(synk): backward pass (mask * grad / keep_prob) is the same kernel;
    # wire it up via jax.custom_vjp when gradients are needed.

    def __init__(self, drop_prob):
        if not 0.0 <= drop_prob < 1.0:
            raise ValueError("drop_prob must be in [0, 1) so keep_prob > 0")
        self.keep_prob = 1.0 - drop_prob
        self.training = True

    def __call__(self, x, mask):
        return deterministic_dropout(x, mask, self.keep_prob,
                                     training=self.training)


if __name__ == "__main__":
    key = jax.random.PRNGKey(0)
    k1, k2, k3, k4, k5, k6, k7, k8 = jax.random.split(key, 8)

    # Case 1: moderate expert-activation slab -> Pallas path (lane-dense,
    # 2-step parallel grid).
    drop_prob = 0.2
    keep_prob = 1.0 - drop_prob
    x1 = jax.random.normal(k1, (8, 128, 1024), dtype=jnp.float32)
    mask1 = (jax.random.uniform(k2, x1.shape) < keep_prob).astype(jnp.float32)
    module = DeterministicDropout(drop_prob)
    out1 = jax.block_until_ready(module(x1, mask1))
    ref1 = x1 * mask1 / keep_prob
    assert out1.shape == x1.shape and out1.dtype == x1.dtype
    assert jnp.allclose(out1, ref1, rtol=1e-6, atol=1e-6), "case1 mismatch"

    # Case 2: ragged row count (1000 % tr != 0) -> partial last block, writes
    # masked by Pallas, no wrapper pad/slice.  Force the Pallas path.
    x2 = jax.random.normal(k3, (1000, 256), dtype=jnp.float32)
    mask2 = (jax.random.uniform(k4, x2.shape) < 0.5).astype(jnp.float32)
    out2 = jax.block_until_ready(
        deterministic_dropout(x2, mask2, 0.5, min_pallas_bytes=0))
    assert jnp.allclose(out2, x2 * mask2 / 0.5, rtol=1e-6, atol=1e-6), "case2 mismatch"

    # Case 3: feature dim not a multiple of 128 -> flattened lane-dense view.
    x3 = jax.random.normal(k5, (64, 96), dtype=jnp.float32)
    mask3 = (jax.random.uniform(k6, x3.shape) < keep_prob).astype(jnp.float32)
    out3 = jax.block_until_ready(
        deterministic_dropout(x3, mask3, keep_prob, min_pallas_bytes=0))
    assert out3.shape == x3.shape
    assert jnp.allclose(out3, x3 * mask3 / keep_prob, rtol=1e-6, atol=1e-6), "case3 mismatch"

    # Case 4: tiny ragged 3-D shape -> small-input plain-JAX fallback; eval mode.
    x4 = jax.random.normal(k7, (3, 5, 96), dtype=jnp.float32)
    mask4 = (jax.random.uniform(k8, x4.shape) < keep_prob).astype(jnp.float32)
    out4 = jax.block_until_ready(module(x4, mask4))
    assert jnp.allclose(out4, x4 * mask4 / keep_prob, rtol=1e-6, atol=1e-6), "case4 mismatch"

    module.training = False
    out_eval = jax.block_until_ready(module(x4, mask4))
    assert jnp.array_equal(out_eval, x4), "eval-mode mismatch"

    print("KERNEL_OK")
</pallas_src>

<mosaic_0001>
module attributes {stable_mosaic.version = 11 : i64} {
  func.func @_dropout_kernel(%arg0: i32, %arg1: memref<512x1024xf32, #tpu.memory_space<vmem>>, %arg2: memref<512x1024xf32, #tpu.memory_space<vmem>>, %arg3: memref<512x1024xf32, #tpu.memory_space<vmem>>) attributes {dimension_semantics = [#tpu.dimension_semantics<parallel>], iteration_bounds = array<i64: 2>, scalar_prefetch = 0 : i64, scratch_operands = 0 : i64, tpu.core_type = #tpu.core_type<tc>, window_params = [{transform_indices = @transform_0, window_bounds = array<i64: 512, 1024>}, {transform_indices = @transform_1, window_bounds = array<i64: 512, 1024>}, {transform_indices = @transform_2, window_bounds = array<i64: 512, 1024>}]} {
    %c0 = arith.constant 0 : index
    %c0_0 = arith.constant 0 : index
    %0 = vector.load %arg1[%c0, %c0_0] : memref<512x1024xf32, #tpu.memory_space<vmem>>, vector<512x1024xf32>
    %c0_1 = arith.constant 0 : index
    %c0_2 = arith.constant 0 : index
    %1 = vector.load %arg2[%c0_1, %c0_2] : memref<512x1024xf32, #tpu.memory_space<vmem>>, vector<512x1024xf32>
    %cst = arith.constant 1.250000e+00 : f32
    %2 = vector.broadcast %cst : f32 to vector<512x1024xf32>
    %3 = arith.mulf %1, %2 : vector<512x1024xf32>
    %4 = arith.mulf %0, %3 : vector<512x1024xf32>
    %c0_3 = arith.constant 0 : index
    %c0_4 = arith.constant 0 : index
    %5 = vector.load %arg3[%c0_3, %c0_4] : memref<512x1024xf32, #tpu.memory_space<vmem>>, vector<512x1024xf32>
    tpu.vector_store %arg3[%c0_3, %c0_4], %4 {strides = array<i32>} : memref<512x1024xf32, #tpu.memory_space<vmem>>, vector<512x1024xf32>,
    return
  }
  func.func @transform_0(%arg0: i32) -> (i32, i32) {
    %c0_i32 = arith.constant 0 : i32
    %c0_i32_0 = arith.constant 0 : i32
    return %arg0, %c0_i32 : i32, i32
  }
  func.func @transform_1(%arg0: i32) -> (i32, i32) {
    %c0_i32 = arith.constant 0 : i32
    %c0_i32_0 = arith.constant 0 : i32
    return %arg0, %c0_i32 : i32, i32
  }
  func.func @transform_2(%arg0: i32) -> (i32, i32) {
    %c0_i32 = arith.constant 0 : i32
    %c0_i32_0 = arith.constant 0 : i32
    return %arg0, %c0_i32 : i32, i32
  }
}

</mosaic_0001>

<bundles_post_ra>
// kernel: tpu_custom_call.1
= control target key start
LH: loop header
LB: loop body
LE: loop exit
PB: predicated region body
PF: predicated region fallthrough
CT: control target
= control target key end

     0   :  { %7 = vsyncpa [#allocation3], 0  ;;  %s4885_s0 = inlined_call_operand.hbm [shape: f32[1024,1024], index: 0, kind: input, shape index: {}]   ;;  %s4886_s1 = inlined_call_operand.hbm [shape: f32[1024,1024], index: 1, kind: input, shape index: {}]   ;;  %s4887_s2 = inlined_call_operand.hbm [shape: f32[1024,1024], index: 2, kind: output, shape index: {}]  }
   0x1   :  { %9 = vsyncpa [#allocation3 + $0x1], 0 }
   0x2   :  { %10 = vsyncpa [#allocation6], 0 }
   0x3   :  { %12 = vsyncpa [#allocation6 + $0x1], 0 }
   0x4   :  { %13 = vsyncpa [#allocation4], 0 }
   0x5   :  { %15 = vsyncpa [#allocation4 + $0x1], 0  ;;  %s3114_s9 = smov 0   ;;  %s3116_s10 = smov 0  }
   0x6   :  { %s3118_s11 = smov 0   ;;  %s3120_s12 = smov 0  }
   0x7 LB: > { %s3135_s13 = sadd.s32 4294967295, %s3090_s12   ;;  %s2878_s14 = sadd.s32 4294967294, %s3090_s12   ;;  %s3090_s12 = sphi %s3120_s12, %s4903_s12   ;;  %s3086_s11 = sphi %s3118_s11, %s4902_s11   ;;  %s3082_s10 = sphi %s3116_s10, %s4901_s10   ;;  %s3078_s9 = sphi %s3114_s9, %s4900_s9  }
   0x8   : > { %s3139_s15 = sadd.s32 1, %s3090_s12   ;;  %s28_s16 = sadd.s32 1, %s3086_s11 }
   0x9   : > { %s25_s17 = ssub.s32 %s3090_s12, %s3139_s15  ;;  %p35_p0 = scmp.ne.s32.totalorder %s3086_s11, %s3082_s10 }
   0xa   : > { %p26_p1 = scmp.eq.s32.totalorder %s25_s17, 0  ;;  %p36_p2 = scmp.eq.s32.totalorder %s3090_s12, 0 }
   0xb   : > { %p41_p3 = scmp.ne.s32.totalorder %s3082_s10, %s3078_s9  ;;  %p42_p4 = scmp.eq.s32.totalorder %s3135_s13, 0 }
   0xc   : > { %s3151_s18 = scalar_select %p26_p1, %s3086_s11, %s28_s16  }
   0xd   : > { %p3153_p5 = por %p36_p2, %p35_p0  ;;  %p3157_p6 = por %p42_p4, %p41_p3 }
   0xe   : > { %p91_p7 = scmp.eq.s32.totalorder %s3135_s13, 1  ;;  %p97_p8 = scmp.eq.s32.totalorder %s2878_s14, 1 }
   0xf   : > { %s4891_s20 = scalar_select %p3157_p6, 1, 0 }
  0x10   : > { %p2922_p10 = scmp.lt.s32.totalorder %s3090_s12, 2  ;;  %p3164_p11 = por %p91_p7, %p35_p0 }
  0x11   : > { %p3168_p12 = por %p97_p8, %p41_p3  ;;  %s3173_s23 = sand.u32 1, %s3086_s11  }
  0x12   : > { %s4892_s21 = scalar_select %p3164_p11, 1, 0 }
  0x13   : > { %s4893_s22 = scalar_select %p3168_p12, 1, 0 }
  0x14   : > { %s2900_s24 = sshll.u32 %s3090_s12, 16  ;;  %s2881_s25 = sshll.u32 %s3173_s23, 12 }
  0x15   : > { %s3182_s28 = scalar_lea.hbm %s4885_s0, %s2900_s24  ;;  %s121_s29 = scalar_lea.vmem [#allocation2], %s2881_s25 }
  0x16   : > { %s129_s30 = sshll.u32 %s121_s29, 4  ;;  %p3188_p13 = pnand %p2922_p10, %p3153_p5  ;;  %s3192_s30 = int_to_ptr.vmem [resolvable:$true] %s129_s30 }
  0x17   : > { %s118_s4 = scalar_lea.sflag [#allocation3], %s3173_s23  ;;  %s2960_s5 = scalar_lea.hbm %s3182_s28, 65536 }
  0x18   : > { %p2961_p0 = scmp.ne.s32.totalorder %s3182_s28, %s2960_s5  ;;  %p2962_p1 = pneg %p3188_p13 }
  0x19   : > { %s2965_s8 = scalar_lea.hbm %s4885_s0, 131072  ;;  %p2966_p4 = scmp.lt.u32.totalorder %s3182_s28, %s4885_s0 }
  0x1a   : > { %p2963_p2 = pnand %p2962_p1, %p2961_p0  ;;  %p2967_p5 = scmp.lt.u32.totalorder %s2965_s8, %s2960_s5 }
  0x1b   : > { %p2969_p8 = scmp.lt.u32.totalorder %s2960_s5, %s3182_s28 }
  0x1c   : > { %p2964_p3 = pneg %p2963_p2  ;;  %p2968_p7 = por %p2967_p5, %p2966_p4 }
  0x1e   : > { %p2970_p10 = por %p2969_p8, %p2968_p7 }
  0x20   : > { %p2971_p9 = pnand %p2970_p10, %p2964_p3 }
  0x22   : > { %2974 = shalt.err (!%p2971_p9)
}
  0x23   : > { %s2975_s17 = scalar_lea.vmem %s3192_s30, 65536  ;;  %s3092_s19 = smov [#allocation2]  }
  0x24   : > { %p2976_p0 = scmp.ne.s32.totalorder %s3192_s30, %s2975_s17  ;;  %s2980_s26 = sshll.u32 %s3092_s19, 4  ;;  %s2981_s26 = int_to_ptr.vmem [resolvable:$false] %s2980_s26 }
  0x25   : > { %s2982_s27 = scalar_lea.vmem %s2981_s26, 131072  ;;  %p2983_p11 = scmp.lt.s32.totalorder %s3192_s30, %s2981_s26 }
  0x26   : > { %p2978_p2 = pnand %p2976_p0, %p2962_p1  ;;  %p2984_p4 = scmp.lt.s32.totalorder %s2982_s27, %s2975_s17 }
  0x28   : > { %p2979_p12 = pneg %p2978_p2  ;;  %p2985_p5 = por %p2984_p4, %p2983_p11 }
  0x2a   : > { %p2986_p7 = pnand %p2985_p5, %p2979_p12 }
  0x2c   : > { %2989 = shalt.err (!%p2986_p7)
}
  0x2d   : > { %s3093_s29 = smov 1024   ;;  %s3094_s5 = smov 64  }
  0x2e   : > { %2914 = dma.hbm_to_vmem [thread:$0]  (!%p3188_p13), %s3182_s28, 65536, %s3192_s30, %s118_s4, %s3093_s29, %s3093_s29, %s3094_s5  }
  0x2f   : > { %p2889_p9 = scmp.ge.s32.totalorder %s3090_s12, 1  ;;  %p159_p11 = scmp.lt.s32.totalorder %s3090_s12, 3 }
  0x30   : > { %s3236_s14 = scalar_lea.hbm %s4886_s1, %s2900_s24  ;;  %s143_s16 = scalar_lea.vmem [#allocation5], %s2881_s25 }
  0x31   : > { %p3227_p12 = pnand %p2889_p9, %p159_p11  ;;  %s151_s17 = sshll.u32 %s143_s16, 4  ;;  %s3240_s17 = int_to_ptr.vmem [resolvable:$true] %s151_s17 }
  0x32   : > { %s140_s28 = scalar_lea.sflag [#allocation6], %s3173_s23  ;;  %s2990_s30 = scalar_lea.hbm %s3236_s14, 65536 }
  0x33   : > { %p2991_p3 = scmp.ne.s32.totalorder %s3236_s14, %s2990_s30  ;;  %s2995_s24 = scalar_lea.hbm %s4886_s1, 131072 }
  0x34   : > { %p2996_p0 = scmp.lt.u32.totalorder %s3236_s14, %s4886_s1  ;;  %p2997_p2 = scmp.lt.u32.totalorder %s2995_s24, %s2990_s30 }
  0x35   : > { %p2993_p8 = pnand %p2991_p3, %p2962_p1  ;;  %p2999_p5 = scmp.lt.u32.totalorder %s2990_s30, %s3236_s14 }
  0x36   : > { %p2998_p4 = por %p2997_p2, %p2996_p0 }
  0x37   : > { %p2994_p10 = pneg %p2993_p8 }
  0x38   : > { %p3000_p7 = por %p2999_p5, %p2998_p4 }
  0x3a   : > { %p3001_p9 = pnand %p3000_p7, %p2994_p10 }
  0x3c   : > { %3004 = shalt.err (!%p3001_p9)
}
  0x3d   : > { %s3005_s25 = scalar_lea.vmem %s3240_s17, 65536  ;;  %s3095_s7 = smov [#allocation5]  }
  0x3e   : > { %p3006_p11 = scmp.ne.s32.totalorder %s3240_s17, %s3005_s25  ;;  %s3010_s8 = sshll.u32 %s3095_s7, 4  ;;  %s3011_s8 = int_to_ptr.vmem [resolvable:$false] %s3010_s8 }
  0x3f   : > { %s3012_s16 = scalar_lea.vmem %s3011_s8, 131072  ;;  %p3013_p6 = scmp.lt.s32.totalorder %s3240_s17, %s3011_s8 }
  0x40   : > { %p3008_p3 = pnand %p3006_p11, %p2962_p1  ;;  %p3014_p0 = scmp.lt.s32.totalorder %s3012_s16, %s3005_s25 }
  0x42   : > { %p3009_p8 = pneg %p3008_p3  ;;  %p3015_p2 = por %p3014_p0, %p3013_p6 }
  0x44   : > { %p3016_p4 = pnand %p3015_p2, %p3009_p8 }
  0x46   : > { %3019 = shalt.err (!%p3016_p4)
}
  0x47   : > { %2917 = dma.hbm_to_vmem [thread:$0]  (!%p3188_p13), %s3236_s14, 65536, %s3240_s17, %s140_s28, %s3093_s29, %s3093_s29, %s3094_s5  }
  0x48   : > { %163 = sbr.rel (%p3227_p12) target bundleno = 499 (0x1f3), region = 28  ;;  %s3274_s30 = sand.u32 (!%p3227_p12), 1, %s3082_s10  }
  0x49   : > { %s3277_s4 = sshll.u32 (!%p3227_p12), %s3274_s30, 12  ;;  %s166_s3 = scalar_lea.sflag (!%p3227_p12), [#allocation3], %s3274_s30 }
  0x4a   : > { %s3281_s19 = scalar_lea.vmem (!%p3227_p12), [#allocation2], %s3277_s4  ;;  %p4896_p6 = scmp.ne.s32.totalorder (!%p3227_p12), %s4891_s20, 0 }
  0x4f   : > { %3065 = dma.done.wait (%p4896_p6), %s166_s3, 65536  }
  0x50   : > { %3067 = vsyncadd (%p4896_p6), %s166_s3, 4294901760  ;;  %s175_s23 = scalar_lea.sflag [#allocation6], %s3274_s30  ;;  %s3289_s29 = scalar_lea.vmem [#allocation5], %s3277_s4 }
  0x51   : > { %3069 = dma.done.wait (%p4896_p6), %s175_s23, 65536  }
  0x52   : > { %3071 = vsyncadd (%p4896_p6), %s175_s23, 4294901760  ;;  %v207_v0 = vld [vmem:[%s3281_s19] sm:$0xff]  ;;  %v208_v2 = vld [vmem:[%s3281_s19 + $0x8] sm:$0xff]  ;;  %s3311_s20 = scalar_lea.vmem [#allocation7], %s3277_s4  ;;  %s2904_s5 = sshll.u32 %s3135_s13, 16 }
  0x53   : > { %v719_v1 = vld [vmem:[%s3289_s29] sm:$0xff]  ;;  %v720_v4 = vld [vmem:[%s3289_s29 + $0x8] sm:$0xff]  ;;  %v209_v5 = vld [vmem:[%s3281_s19 + $0x10] sm:$0xff]  ;;  %s2782_s6 = sshll.u32 %s3311_s20, 4  ;;  %s4835_s17 = scalar_lea.hbm %s4887_s2, %s2904_s5  ;;  %s4837_s6 = int_to_ptr.vmem [resolvable:$true] %s2782_s6 }
  0x54   : > { %v1231_v3 = vmul.f32 1.25, %v719_v1  ;;  %v721_v6 = vld [vmem:[%s3289_s29 + $0x10] sm:$0xff]  ;;  %v1232_v7 = vmul.f32 1.25, %v720_v4  ;;  %v210_v9 = vld [vmem:[%s3281_s19 + $0x18] sm:$0xff]  ;;  %v211_v11 = vld [vmem:[%s3281_s19 + $0x20] sm:$0xff]  ;;  %s2768_s28 = scalar_lea.sflag [#allocation4], %s3274_s30 }
  0x55   : > { %v1233_v8 = vmul.f32 1.25, %v721_v6  ;;  %v722_v10 = vld [vmem:[%s3289_s29 + $0x18] sm:$0xff]  ;;  %v723_v14 = vld [vmem:[%s3289_s29 + $0x20] sm:$0xff]  ;;  %v212_v15 = vld [vmem:[%s3281_s19 + $0x28] sm:$0xff]  ;;  %s3020_s24 = scalar_lea.vmem %s4837_s6, 65536  ;;  %p4897_p1 = scmp.ne.s32.totalorder %s4892_s21, 0 }
  0x56   : > { %v1743_v12 = vmul.f32 %v1231_v3, %v207_v0  ;;  %v1234_v13 = vmul.f32 1.25, %v722_v10  ;;  %v724_v16 = vld [vmem:[%s3289_s29 + $0x28] sm:$0xff]  ;;  %v1744_v17 = vmul.f32 %v1232_v7, %v208_v2  ;;  %v1235_v19 = vmul.f32 1.25, %v723_v14  ;;  %v213_v21 = vld [vmem:[%s3281_s19 + $0x30] sm:$0xff]  ;;  %v214_v23 = vld [vmem:[%s3281_s19 + $0x38] sm:$0xff]  ;;  %p3021_p13 = scmp.ne.s32.totalorder %s4837_s6, %s3020_s24  ;;  %s3096_s26 = smov [#allocation7]  }
  0x57   : > { %v1745_v18 = vmul.f32 %v1233_v8, %v209_v5  ;;  %v1236_v20 = vmul.f32 1.25, %v724_v16  ;;  %v725_v22 = vld [vmem:[%s3289_s29 + $0x30] sm:$0xff]  ;;  %v726_v26 = vld [vmem:[%s3289_s29 + $0x38] sm:$0xff]  ;;  %v215_v27 = vld [vmem:[%s3281_s19 + $0x40] sm:$0xff]  ;;  %s3024_s27 = sshll.u32 %s3096_s26, 4  ;;  %s3025_s27 = int_to_ptr.vmem [resolvable:$false] %s3024_s27 }
  0x58   : > { %2255 = vst [vmem:[%s3311_s20] sm:$0xff] %v1743_v12  ;;  %v1746_v24 = vmul.f32 %v1234_v13, %v210_v9  ;;  %v1237_v25 = vmul.f32 1.25, %v725_v22  ;;  %v727_v28 = vld [vmem:[%s3289_s29 + $0x40] sm:$0xff]  ;;  %2256 = vst [vmem:[%s3311_s20 + $0x8] sm:$0xff] %v1744_v17  ;;  %v1747_v29 = vmul.f32 %v1235_v19, %v211_v11  ;;  %v1238_v31 = vmul.f32 1.25, %v726_v26  ;;  %v216_v33 = vld [vmem:[%s3281_s19 + $0x48] sm:$0xff]  ;;  %p3022_p12 = pnand %p3021_p13, %p4897_p1  ;;  %s3026_s25 = scalar_lea.vmem %s3025_s27, 131072 }
  0x59   : > { %2257 = vst [vmem:[%s3311_s20 + $0x10] sm:$0xff] %v1745_v18  ;;  %v1748_v30 = vmul.f32 %v1236_v20, %v212_v15  ;;  %v1239_v32 = vmul.f32 1.25, %v727_v28  ;;  %v728_v34 = vld [vmem:[%s3289_s29 + $0x48] sm:$0xff]  ;;  %v217_v35 = vld [vmem:[%s3281_s19 + $0x50] sm:$0xff]  ;;  %v218_v39 = vld [vmem:[%s3281_s19 + $0x58] sm:$0xff]  ;;  %p3027_p5 = scmp.lt.s32.totalorder %s4837_s6, %s3025_s27  ;;  %p3028_p7 = scmp.lt.s32.totalorder %s3026_s25, %s3020_s24 }
  0x5a   : > { %2258 = vst [vmem:[%s3311_s20 + $0x18] sm:$0xff] %v1746_v24  ;;  %v1749_v36 = vmul.f32 %v1237_v25, %v213_v21  ;;  %v1240_v37 = vmul.f32 1.25, %v728_v34  ;;  %v729_v38 = vld [vmem:[%s3289_s29 + $0x50] sm:$0xff]  ;;  %v730_v40 = vld [vmem:[%s3289_s29 + $0x58] sm:$0xff]  ;;  %2259 = vst [vmem:[%s3311_s20 + $0x20] sm:$0xff] %v1747_v29  ;;  %v1750_v41 = vmul.f32 %v1238_v31, %v214_v23  ;;  %p3023_p10 = pneg %p3022_p12 }
  0x5b   : > { %2260 = vst [vmem:[%s3311_s20 + $0x28] sm:$0xff] %v1748_v30  ;;  %v1751_v42 = vmul.f32 %v1239_v32, %v215_v27  ;;  %v1241_v43 = vmul.f32 1.25, %v729_v38  ;;  %v1242_v44 = vmul.f32 1.25, %v730_v40  ;;  %v219_v45 = vld [vmem:[%s3281_s19 + $0x60] sm:$0xff]  ;;  %v220_v47 = vld [vmem:[%s3281_s19 + $0x68] sm:$0xff]  ;;  %v221_v51 = vld [vmem:[%s3281_s19 + $0x70] sm:$0xff]  ;;  %p3029_p9 = por %p3028_p7, %p3027_p5 }
  0x5c   : > { %v731_v46 = vld [vmem:[%s3289_s29 + $0x60] sm:$0xff]  ;;  %2261 = vst [vmem:[%s3311_s20 + $0x30] sm:$0xff] %v1749_v36  ;;  %v1752_v48 = vmul.f32 %v1240_v37, %v216_v33  ;;  %v732_v50 = vld [vmem:[%s3289_s29 + $0x68] sm:$0xff]  ;;  %v733_v52 = vld [vmem:[%s3289_s29 + $0x70] sm:$0xff] }
  0x5d   : > { %v1243_v49 = vmul.f32 1.25, %v731_v46  ;;  %2262 = vst [vmem:[%s3311_s20 + $0x38] sm:$0xff] %v1750_v41  ;;  %2263 = vst [vmem:[%s3311_s20 + $0x40] sm:$0xff] %v1751_v42  ;;  %v1753_v53 = vmul.f32 %v1241_v43, %v217_v35  ;;  %v1754_v54 = vmul.f32 %v1242_v44, %v218_v39  ;;  %v1244_v55 = vmul.f32 1.25, %v732_v50  ;;  %v222_v57 = vld [vmem:[%s3281_s19 + $0x78] sm:$0xff]  ;;  %v223_v59 = vld [vmem:[%s3281_s19 + $0x80] sm:$0xff]  ;;  %p3030_p11 = pnand %p3029_p9, %p3023_p10 }
  0x5e   : > { %v1245_v56 = vmul.f32 1.25, %v733_v52  ;;  %v734_v58 = vld [vmem:[%s3289_s29 + $0x78] sm:$0xff]  ;;  %2264 = vst [vmem:[%s3311_s20 + $0x48] sm:$0xff] %v1752_v48  ;;  %v735_v62 = vld [vmem:[%s3289_s29 + $0x80] sm:$0xff]  ;;  %v224_v63 = vld [vmem:[%s3281_s19 + $0x88] sm:$0xff] }
  0x5f   : > { %v1755_v60 = vmul.f32 %v1243_v49, %v219_v45  ;;  %v1246_v61 = vmul.f32 1.25, %v734_v58  ;;  %v736_v0 = vld [vmem:[%s3289_s29 + $0x88] sm:$0xff]  ;;  %2265 = vst [vmem:[%s3311_s20 + $0x50] sm:$0xff] %v1753_v53  ;;  %2266 = vst [vmem:[%s3311_s20 + $0x58] sm:$0xff] %v1754_v54  ;;  %v1756_v1 = vmul.f32 %v1244_v55, %v220_v47  ;;  %v1247_v3 = vmul.f32 1.25, %v735_v62  ;;  %v225_v5 = vld [vmem:[%s3281_s19 + $0x90] sm:$0xff] }
  0x60   : > { %v1757_v2 = vmul.f32 %v1245_v56, %v221_v51  ;;  %v1248_v4 = vmul.f32 1.25, %v736_v0  ;;  %v737_v6 = vld [vmem:[%s3289_s29 + $0x90] sm:$0xff]  ;;  %v226_v7 = vld [vmem:[%s3281_s19 + $0x98] sm:$0xff]  ;;  %v227_v11 = vld [vmem:[%s3281_s19 + $0xa0] sm:$0xff] }
  0x61   : > { %2267 = vst [vmem:[%s3311_s20 + $0x60] sm:$0xff] %v1755_v60  ;;  %v1758_v8 = vmul.f32 %v1246_v61, %v222_v57  ;;  %v1249_v9 = vmul.f32 1.25, %v737_v6  ;;  %v738_v10 = vld [vmem:[%s3289_s29 + $0x98] sm:$0xff]  ;;  %v739_v12 = vld [vmem:[%s3289_s29 + $0xa0] sm:$0xff]  ;;  %2268 = vst [vmem:[%s3311_s20 + $0x68] sm:$0xff] %v1756_v1  ;;  %v1759_v13 = vmul.f32 %v1247_v3, %v223_v59 }
  0x62   : > { %2269 = vst [vmem:[%s3311_s20 + $0x70] sm:$0xff] %v1757_v2  ;;  %v1760_v14 = vmul.f32 %v1248_v4, %v224_v63  ;;  %v1250_v15 = vmul.f32 1.25, %v738_v10  ;;  %v1251_v16 = vmul.f32 1.25, %v739_v12  ;;  %v228_v17 = vld [vmem:[%s3281_s19 + $0xa8] sm:$0xff]  ;;  %v229_v19 = vld [vmem:[%s3281_s19 + $0xb0] sm:$0xff]  ;;  %v230_v23 = vld [vmem:[%s3281_s19 + $0xb8] sm:$0xff] }
  0x63   : > { %v740_v18 = vld [vmem:[%s3289_s29 + $0xa8] sm:$0xff]  ;;  %2270 = vst [vmem:[%s3311_s20 + $0x78] sm:$0xff] %v1758_v8  ;;  %v1761_v20 = vmul.f32 %v1249_v9, %v225_v5  ;;  %v741_v22 = vld [vmem:[%s3289_s29 + $0xb0] sm:$0xff]  ;;  %v742_v24 = vld [vmem:[%s3289_s29 + $0xb8] sm:$0xff] }
  0x64   : > { %v1252_v21 = vmul.f32 1.25, %v740_v18  ;;  %2271 = vst [vmem:[%s3311_s20 + $0x80] sm:$0xff] %v1759_v13  ;;  %2272 = vst [vmem:[%s3311_s20 + $0x88] sm:$0xff] %v1760_v14  ;;  %v1762_v25 = vmul.f32 %v1250_v15, %v226_v7  ;;  %v1763_v26 = vmul.f32 %v1251_v16, %v227_v11  ;;  %v1253_v27 = vmul.f32 1.25, %v741_v22  ;;  %v231_v29 = vld [vmem:[%s3281_s19 + $0xc0] sm:$0xff]  ;;  %v232_v31 = vld [vmem:[%s3281_s19 + $0xc8] sm:$0xff] }
  0x65   : > { %v1254_v28 = vmul.f32 1.25, %v742_v24  ;;  %v743_v30 = vld [vmem:[%s3289_s29 + $0xc0] sm:$0xff]  ;;  %2273 = vst [vmem:[%s3311_s20 + $0x90] sm:$0xff] %v1761_v20  ;;  %v744_v34 = vld [vmem:[%s3289_s29 + $0xc8] sm:$0xff]  ;;  %v233_v35 = vld [vmem:[%s3281_s19 + $0xd0] sm:$0xff] }
  0x66   : > { %v1764_v32 = vmul.f32 %v1252_v21, %v228_v17  ;;  %v1255_v33 = vmul.f32 1.25, %v743_v30  ;;  %v745_v36 = vld [vmem:[%s3289_s29 + $0xd0] sm:$0xff]  ;;  %2274 = vst [vmem:[%s3311_s20 + $0x98] sm:$0xff] %v1762_v25  ;;  %2275 = vst [vmem:[%s3311_s20 + $0xa0] sm:$0xff] %v1763_v26  ;;  %v1765_v37 = vmul.f32 %v1253_v27, %v229_v19  ;;  %v1256_v39 = vmul.f32 1.25, %v744_v34  ;;  %v234_v41 = vld [vmem:[%s3281_s19 + $0xd8] sm:$0xff] }
  0x67   : > { %v1766_v38 = vmul.f32 %v1254_v28, %v230_v23  ;;  %v1257_v40 = vmul.f32 1.25, %v745_v36  ;;  %v746_v42 = vld [vmem:[%s3289_s29 + $0xd8] sm:$0xff]  ;;  %v235_v43 = vld [vmem:[%s3281_s19 + $0xe0] sm:$0xff]  ;;  %v236_v47 = vld [vmem:[%s3281_s19 + $0xe8] sm:$0xff] }
  0x68   : > { %2276 = vst [vmem:[%s3311_s20 + $0xa8] sm:$0xff] %v1764_v32  ;;  %v1767_v44 = vmul.f32 %v1255_v33, %v231_v29  ;;  %v1258_v45 = vmul.f32 1.25, %v746_v42  ;;  %v747_v46 = vld [vmem:[%s3289_s29 + $0xe0] sm:$0xff]  ;;  %v748_v48 = vld [vmem:[%s3289_s29 + $0xe8] sm:$0xff]  ;;  %2277 = vst [vmem:[%s3311_s20 + $0xb0] sm:$0xff] %v1765_v37  ;;  %v1768_v49 = vmul.f32 %v1256_v39, %v232_v31 }
  0x69   : > { %2278 = vst [vmem:[%s3311_s20 + $0xb8] sm:$0xff] %v1766_v38  ;;  %v1769_v50 = vmul.f32 %v1257_v40, %v233_v35  ;;  %v1259_v51 = vmul.f32 1.25, %v747_v46  ;;  %v1260_v52 = vmul.f32 1.25, %v748_v48  ;;  %v237_v53 = vld [vmem:[%s3281_s19 + $0xf0] sm:$0xff]  ;;  %v238_v55 = vld [vmem:[%s3281_s19 + $0xf8] sm:$0xff]  ;;  %v239_v59 = vld [vmem:[%s3281_s19 + $0x100] sm:$0xff] }
  0x6a   : > { %v749_v54 = vld [vmem:[%s3289_s29 + $0xf0] sm:$0xff]  ;;  %2279 = vst [vmem:[%s3311_s20 + $0xc0] sm:$0xff] %v1767_v44  ;;  %v1770_v56 = vmul.f32 %v1258_v45, %v234_v41  ;;  %v750_v58 = vld [vmem:[%s3289_s29 + $0xf8] sm:$0xff]  ;;  %v751_v60 = vld [vmem:[%s3289_s29 + $0x100] sm:$0xff] }
  0x6b   : > { %v1261_v57 = vmul.f32 1.25, %v749_v54  ;;  %2280 = vst [vmem:[%s3311_s20 + $0xc8] sm:$0xff] %v1768_v49  ;;  %2281 = vst [vmem:[%s3311_s20 + $0xd0] sm:$0xff] %v1769_v50  ;;  %v1771_v61 = vmul.f32 %v1259_v51, %v235_v43  ;;  %v1772_v62 = vmul.f32 %v1260_v52, %v236_v47  ;;  %v1262_v63 = vmul.f32 1.25, %v750_v58  ;;  %v240_v1 = vld [vmem:[%s3281_s19 + $0x108] sm:$0xff]  ;;  %v241_v3 = vld [vmem:[%s3281_s19 + $0x110] sm:$0xff] }
  0x6c   : > { %v1263_v0 = vmul.f32 1.25, %v751_v60  ;;  %v752_v2 = vld [vmem:[%s3289_s29 + $0x108] sm:$0xff]  ;;  %2282 = vst [vmem:[%s3311_s20 + $0xd8] sm:$0xff] %v1770_v56  ;;  %v753_v6 = vld [vmem:[%s3289_s29 + $0x110] sm:$0xff]  ;;  %v242_v7 = vld [vmem:[%s3281_s19 + $0x118] sm:$0xff] }
  0x6d   : > { %v1773_v4 = vmul.f32 %v1261_v57, %v237_v53  ;;  %v1264_v5 = vmul.f32 1.25, %v752_v2  ;;  %v754_v8 = vld [vmem:[%s3289_s29 + $0x118] sm:$0xff]  ;;  %2283 = vst [vmem:[%s3311_s20 + $0xe0] sm:$0xff] %v1771_v61  ;;  %2284 = vst [vmem:[%s3311_s20 + $0xe8] sm:$0xff] %v1772_v62  ;;  %v1774_v9 = vmul.f32 %v1262_v63, %v238_v55  ;;  %v1265_v11 = vmul.f32 1.25, %v753_v6  ;;  %v243_v13 = vld [vmem:[%s3281_s19 + $0x120] sm:$0xff] }
  0x6e   : > { %v1775_v10 = vmul.f32 %v1263_v0, %v239_v59  ;;  %v1266_v12 = vmul.f32 1.25, %v754_v8  ;;  %v755_v14 = vld [vmem:[%s3289_s29 + $0x120] sm:$0xff]  ;;  %v244_v15 = vld [vmem:[%s3281_s19 + $0x128] sm:$0xff]  ;;  %v245_v19 = vld [vmem:[%s3281_s19 + $0x130] sm:$0xff] }
  0x6f   : > { %2285 = vst [vmem:[%s3311_s20 + $0xf0] sm:$0xff] %v1773_v4  ;;  %v1776_v16 = vmul.f32 %v1264_v5, %v240_v1  ;;  %v1267_v17 = vmul.f32 1.25, %v755_v14  ;;  %v756_v18 = vld [vmem:[%s3289_s29 + $0x128] sm:$0xff]  ;;  %v757_v20 = vld [vmem:[%s3289_s29 + $0x130] sm:$0xff]  ;;  %2286 = vst [vmem:[%s3311_s20 + $0xf8] sm:$0xff] %v1774_v9  ;;  %v1777_v21 = vmul.f32 %v1265_v11, %v241_v3 }
  0x70   : > { %2287 = vst [vmem:[%s3311_s20 + $0x100] sm:$0xff] %v1775_v10  ;;  %v1778_v22 = vmul.f32 %v1266_v12, %v242_v7  ;;  %v1268_v23 = vmul.f32 1.25, %v756_v18  ;;  %v1269_v24 = vmul.f32 1.25, %v757_v20  ;;  %v246_v25 = vld [vmem:[%s3281_s19 + $0x138] sm:$0xff]  ;;  %v247_v27 = vld [vmem:[%s3281_s19 + $0x140] sm:$0xff]  ;;  %v248_v31 = vld [vmem:[%s3281_s19 + $0x148] sm:$0xff] }
  0x71   : > { %v758_v26 = vld [vmem:[%s3289_s29 + $0x138] sm:$0xff]  ;;  %2288 = vst [vmem:[%s3311_s20 + $0x108] sm:$0xff] %v1776_v16  ;;  %v1779_v28 = vmul.f32 %v1267_v17, %v243_v13  ;;  %v759_v30 = vld [vmem:[%s3289_s29 + $0x140] sm:$0xff]  ;;  %v760_v32 = vld [vmem:[%s3289_s29 + $0x148] sm:$0xff] }
  0x72   : > { %v1270_v29 = vmul.f32 1.25, %v758_v26  ;;  %2289 = vst [vmem:[%s3311_s20 + $0x110] sm:$0xff] %v1777_v21  ;;  %2290 = vst [vmem:[%s3311_s20 + $0x118] sm:$0xff] %v1778_v22  ;;  %v1780_v33 = vmul.f32 %v1268_v23, %v244_v15  ;;  %v1781_v34 = vmul.f32 %v1269_v24, %v245_v19  ;;  %v1271_v35 = vmul.f32 1.25, %v759_v30  ;;  %v249_v37 = vld [vmem:[%s3281_s19 + $0x150] sm:$0xff]  ;;  %v250_v39 = vld [vmem:[%s3281_s19 + $0x158] sm:$0xff] }
  0x73   : > { %v1272_v36 = vmul.f32 1.25, %v760_v32  ;;  %v761_v38 = vld [vmem:[%s3289_s29 + $0x150] sm:$0xff]  ;;  %2291 = vst [vmem:[%s3311_s20 + $0x120] sm:$0xff] %v1779_v28  ;;  %v762_v42 = vld [vmem:[%s3289_s29 + $0x158] sm:$0xff]  ;;  %v251_v43 = vld [vmem:[%s3281_s19 + $0x160] sm:$0xff] }
  0x74   : > { %v1782_v40 = vmul.f32 %v1270_v29, %v246_v25  ;;  %v1273_v41 = vmul.f32 1.25, %v761_v38  ;;  %v763_v44 = vld [vmem:[%s3289_s29 + $0x160] sm:$0xff]  ;;  %2292 = vst [vmem:[%s3311_s20 + $0x128] sm:$0xff] %v1780_v33  ;;  %2293 = vst [vmem:[%s3311_s20 + $0x130] sm:$0xff] %v1781_v34  ;;  %v1783_v45 = vmul.f32 %v1271_v35, %v247_v27  ;;  %v1274_v47 = vmul.f32 1.25, %v762_v42  ;;  %v252_v49 = vld [vmem:[%s3281_s19 + $0x168] sm:$0xff] }
  0x75   : > { %v1784_v46 = vmul.f32 %v1272_v36, %v248_v31  ;;  %v1275_v48 = vmul.f32 1.25, %v763_v44  ;;  %v764_v50 = vld [vmem:[%s3289_s29 + $0x168] sm:$0xff]  ;;  %v253_v51 = vld [vmem:[%s3281_s19 + $0x170] sm:$0xff]  ;;  %v254_v55 = vld [vmem:[%s3281_s19 + $0x178] sm:$0xff] }
  0x76   : > { %2294 = vst [vmem:[%s3311_s20 + $0x138] sm:$0xff] %v1782_v40  ;;  %v1785_v52 = vmul.f32 %v1273_v41, %v249_v37  ;;  %v1276_v53 = vmul.f32 1.25, %v764_v50  ;;  %v765_v54 = vld [vmem:[%s3289_s29 + $0x170] sm:$0xff]  ;;  %v766_v56 = vld [vmem:[%s3289_s29 + $0x178] sm:$0xff]  ;;  %2295 = vst [vmem:[%s3311_s20 + $0x140] sm:$0xff] %v1783_v45  ;;  %v1786_v57 = vmul.f32 %v1274_v47, %v250_v39 }
  0x77   : > { %2296 = vst [vmem:[%s3311_s20 + $0x148] sm:$0xff] %v1784_v46  ;;  %v1787_v58 = vmul.f32 %v1275_v48, %v251_v43  ;;  %v1277_v59 = vmul.f32 1.25, %v765_v54  ;;  %v1278_v60 = vmul.f32 1.25, %v766_v56  ;;  %v255_v61 = vld [vmem:[%s3281_s19 + $0x180] sm:$0xff]  ;;  %v256_v63 = vld [vmem:[%s3281_s19 + $0x188] sm:$0xff]  ;;  %v257_v3 = vld [vmem:[%s3281_s19 + $0x190] sm:$0xff] }
  0x78   : > { %v767_v62 = vld [vmem:[%s3289_s29 + $0x180] sm:$0xff]  ;;  %2297 = vst [vmem:[%s3311_s20 + $0x150] sm:$0xff] %v1785_v52  ;;  %v1788_v0 = vmul.f32 %v1276_v53, %v252_v49  ;;  %v768_v2 = vld [vmem:[%s3289_s29 + $0x188] sm:$0xff]  ;;  %v769_v4 = vld [vmem:[%s3289_s29 + $0x190] sm:$0xff] }
  0x79   : > { %v1279_v1 = vmul.f32 1.25, %v767_v62  ;;  %2298 = vst [vmem:[%s3311_s20 + $0x158] sm:$0xff] %v1786_v57  ;;  %2299 = vst [vmem:[%s3311_s20 + $0x160] sm:$0xff] %v1787_v58  ;;  %v1789_v5 = vmul.f32 %v1277_v59, %v253_v51  ;;  %v1790_v6 = vmul.f32 %v1278_v60, %v254_v55  ;;  %v1280_v7 = vmul.f32 1.25, %v768_v2  ;;  %v258_v9 = vld [vmem:[%s3281_s19 + $0x198] sm:$0xff]  ;;  %v259_v11 = vld [vmem:[%s3281_s19 + $0x1a0] sm:$0xff] }
  0x7a   : > { %v1281_v8 = vmul.f32 1.25, %v769_v4  ;;  %v770_v10 = vld [vmem:[%s3289_s29 + $0x198] sm:$0xff]  ;;  %2300 = vst [vmem:[%s3311_s20 + $0x168] sm:$0xff] %v1788_v0  ;;  %v771_v14 = vld [vmem:[%s3289_s29 + $0x1a0] sm:$0xff]  ;;  %v260_v15 = vld [vmem:[%s3281_s19 + $0x1a8] sm:$0xff] }
  0x7b   : > { %v1791_v12 = vmul.f32 %v1279_v1, %v255_v61  ;;  %v1282_v13 = vmul.f32 1.25, %v770_v10  ;;  %v772_v16 = vld [vmem:[%s3289_s29 + $0x1a8] sm:$0xff]  ;;  %2301 = vst [vmem:[%s3311_s20 + $0x170] sm:$0xff] %v1789_v5  ;;  %2302 = vst [vmem:[%s3311_s20 + $0x178] sm:$0xff] %v1790_v6  ;;  %v1792_v17 = vmul.f32 %v1280_v7, %v256_v63  ;;  %v1283_v19 = vmul.f32 1.25, %v771_v14  ;;  %v261_v21 = vld [vmem:[%s3281_s19 + $0x1b0] sm:$0xff] }
  0x7c   : > { %v1793_v18 = vmul.f32 %v1281_v8, %v257_v3  ;;  %v1284_v20 = vmul.f32 1.25, %v772_v16  ;;  %v773_v22 = vld [vmem:[%s3289_s29 + $0x1b0] sm:$0xff]  ;;  %v262_v23 = vld [vmem:[%s3281_s19 + $0x1b8] sm:$0xff]  ;;  %v263_v27 = vld [vmem:[%s3281_s19 + $0x1c0] sm:$0xff] }
  0x7d   : > { %2303 = vst [vmem:[%s3311_s20 + $0x180] sm:$0xff] %v1791_v12  ;;  %v1794_v24 = vmul.f32 %v1282_v13, %v258_v9  ;;  %v1285_v25 = vmul.f32 1.25, %v773_v22  ;;  %v774_v26 = vld [vmem:[%s3289_s29 + $0x1b8] sm:$0xff]  ;;  %v775_v28 = vld [vmem:[%s3289_s29 + $0x1c0] sm:$0xff]  ;;  %2304 = vst [vmem:[%s3311_s20 + $0x188] sm:$0xff] %v1792_v17  ;;  %v1795_v29 = vmul.f32 %v1283_v19, %v259_v11 }
  0x7e   : > { %2305 = vst [vmem:[%s3311_s20 + $0x190] sm:$0xff] %v1793_v18  ;;  %v1796_v30 = vmul.f32 %v1284_v20, %v260_v15  ;;  %v1286_v31 = vmul.f32 1.25, %v774_v26  ;;  %v1287_v32 = vmul.f32 1.25, %v775_v28  ;;  %v264_v33 = vld [vmem:[%s3281_s19 + $0x1c8] sm:$0xff]  ;;  %v265_v35 = vld [vmem:[%s3281_s19 + $0x1d0] sm:$0xff]  ;;  %v266_v39 = vld [vmem:[%s3281_s19 + $0x1d8] sm:$0xff] }
  0x7f   : > { %v776_v34 = vld [vmem:[%s3289_s29 + $0x1c8] sm:$0xff]  ;;  %2306 = vst [vmem:[%s3311_s20 + $0x198] sm:$0xff] %v1794_v24  ;;  %v1797_v36 = vmul.f32 %v1285_v25, %v261_v21  ;;  %v777_v38 = vld [vmem:[%s3289_s29 + $0x1d0] sm:$0xff]  ;;  %v778_v40 = vld [vmem:[%s3289_s29 + $0x1d8] sm:$0xff] }
  0x80   : > { %v1288_v37 = vmul.f32 1.25, %v776_v34  ;;  %2307 = vst [vmem:[%s3311_s20 + $0x1a0] sm:$0xff] %v1795_v29  ;;  %2308 = vst [vmem:[%s3311_s20 + $0x1a8] sm:$0xff] %v1796_v30  ;;  %v1798_v41 = vmul.f32 %v1286_v31, %v262_v23  ;;  %v1799_v42 = vmul.f32 %v1287_v32, %v263_v27  ;;  %v1289_v43 = vmul.f32 1.25, %v777_v38  ;;  %v267_v45 = vld [vmem:[%s3281_s19 + $0x1e0] sm:$0xff]  ;;  %v268_v47 = vld [vmem:[%s3281_s19 + $0x1e8] sm:$0xff] }
  0x81   : > { %v1290_v44 = vmul.f32 1.25, %v778_v40  ;;  %v779_v46 = vld [vmem:[%s3289_s29 + $0x1e0] sm:$0xff]  ;;  %2309 = vst [vmem:[%s3311_s20 + $0x1b0] sm:$0xff] %v1797_v36  ;;  %v780_v50 = vld [vmem:[%s3289_s29 + $0x1e8] sm:$0xff]  ;;  %v269_v51 = vld [vmem:[%s3281_s19 + $0x1f0] sm:$0xff] }
  0x82   : > { %v1800_v48 = vmul.f32 %v1288_v37, %v264_v33  ;;  %v1291_v49 = vmul.f32 1.25, %v779_v46  ;;  %v781_v52 = vld [vmem:[%s3289_s29 + $0x1f0] sm:$0xff]  ;;  %2310 = vst [vmem:[%s3311_s20 + $0x1b8] sm:$0xff] %v1798_v41  ;;  %2311 = vst [vmem:[%s3311_s20 + $0x1c0] sm:$0xff] %v1799_v42  ;;  %v1801_v53 = vmul.f32 %v1289_v43, %v265_v35  ;;  %v1292_v55 = vmul.f32 1.25, %v780_v50  ;;  %v270_v57 = vld [vmem:[%s3281_s19 + $0x1f8] sm:$0xff] }
  0x83   : > { %v1802_v54 = vmul.f32 %v1290_v44, %v266_v39  ;;  %v1293_v56 = vmul.f32 1.25, %v781_v52  ;;  %v782_v58 = vld [vmem:[%s3289_s29 + $0x1f8] sm:$0xff]  ;;  %v271_v59 = vld [vmem:[%s3281_s19 + $0x200] sm:$0xff]  ;;  %v272_v63 = vld [vmem:[%s3281_s19 + $0x208] sm:$0xff] }
  0x84   : > { %2312 = vst [vmem:[%s3311_s20 + $0x1c8] sm:$0xff] %v1800_v48  ;;  %v1803_v60 = vmul.f32 %v1291_v49, %v267_v45  ;;  %v1294_v61 = vmul.f32 1.25, %v782_v58  ;;  %v783_v62 = vld [vmem:[%s3289_s29 + $0x200] sm:$0xff]  ;;  %v784_v0 = vld [vmem:[%s3289_s29 + $0x208] sm:$0xff]  ;;  %2313 = vst [vmem:[%s3311_s20 + $0x1d0] sm:$0xff] %v1801_v53  ;;  %v1804_v1 = vmul.f32 %v1292_v55, %v268_v47 }
  0x85   : > { %2314 = vst [vmem:[%s3311_s20 + $0x1d8] sm:$0xff] %v1802_v54  ;;  %v1805_v2 = vmul.f32 %v1293_v56, %v269_v51  ;;  %v1295_v3 = vmul.f32 1.25, %v783_v62  ;;  %v1296_v4 = vmul.f32 1.25, %v784_v0  ;;  %v273_v5 = vld [vmem:[%s3281_s19 + $0x210] sm:$0xff]  ;;  %v274_v7 = vld [vmem:[%s3281_s19 + $0x218] sm:$0xff]  ;;  %v275_v11 = vld [vmem:[%s3281_s19 + $0x220] sm:$0xff] }
  0x86   : > { %v785_v6 = vld [vmem:[%s3289_s29 + $0x210] sm:$0xff]  ;;  %2315 = vst [vmem:[%s3311_s20 + $0x1e0] sm:$0xff] %v1803_v60  ;;  %v1806_v8 = vmul.f32 %v1294_v61, %v270_v57  ;;  %v786_v10 = vld [vmem:[%s3289_s29 + $0x218] sm:$0xff]  ;;  %v787_v12 = vld [vmem:[%s3289_s29 + $0x220] sm:$0xff] }
  0x87   : > { %v1297_v9 = vmul.f32 1.25, %v785_v6  ;;  %2316 = vst [vmem:[%s3311_s20 + $0x1e8] sm:$0xff] %v1804_v1  ;;  %2317 = vst [vmem:[%s3311_s20 + $0x1f0] sm:$0xff] %v1805_v2  ;;  %v1807_v13 = vmul.f32 %v1295_v3, %v271_v59  ;;  %v1808_v14 = vmul.f32 %v1296_v4, %v272_v63  ;;  %v1298_v15 = vmul.f32 1.25, %v786_v10  ;;  %v276_v17 = vld [vmem:[%s3281_s19 + $0x228] sm:$0xff]  ;;  %v277_v19 = vld [vmem:[%s3281_s19 + $0x230] sm:$0xff] }
  0x88   : > { %v1299_v16 = vmul.f32 1.25, %v787_v12  ;;  %v788_v18 = vld [vmem:[%s3289_s29 + $0x228] sm:$0xff]  ;;  %2318 = vst [vmem:[%s3311_s20 + $0x1f8] sm:$0xff] %v1806_v8  ;;  %v789_v22 = vld [vmem:[%s3289_s29 + $0x230] sm:$0xff]  ;;  %v278_v23 = vld [vmem:[%s3281_s19 + $0x238] sm:$0xff] }
  0x89   : > { %v1809_v20 = vmul.f32 %v1297_v9, %v273_v5  ;;  %v1300_v21 = vmul.f32 1.25, %v788_v18  ;;  %v790_v24 = vld [vmem:[%s3289_s29 + $0x238] sm:$0xff]  ;;  %2319 = vst [vmem:[%s3311_s20 + $0x200] sm:$0xff] %v1807_v13  ;;  %2320 = vst [vmem:[%s3311_s20 + $0x208] sm:$0xff] %v1808_v14  ;;  %v1810_v25 = vmul.f32 %v1298_v15, %v274_v7  ;;  %v1301_v27 = vmul.f32 1.25, %v789_v22  ;;  %v279_v29 = vld [vmem:[%s3281_s19 + $0x240] sm:$0xff] }
  0x8a   : > { %v1811_v26 = vmul.f32 %v1299_v16, %v275_v11  ;;  %v1302_v28 = vmul.f32 1.25, %v790_v24  ;;  %v791_v30 = vld [vmem:[%s3289_s29 + $0x240] sm:$0xff]  ;;  %v280_v31 = vld [vmem:[%s3281_s19 + $0x248] sm:$0xff]  ;;  %v281_v35 = vld [vmem:[%s3281_s19 + $0x250] sm:$0xff] }
  0x8b   : > { %2321 = vst [vmem:[%s3311_s20 + $0x210] sm:$0xff] %v1809_v20  ;;  %v1812_v32 = vmul.f32 %v1300_v21, %v276_v17  ;;  %v1303_v33 = vmul.f32 1.25, %v791_v30  ;;  %v792_v34 = vld [vmem:[%s3289_s29 + $0x248] sm:$0xff]  ;;  %v793_v36 = vld [vmem:[%s3289_s29 + $0x250] sm:$0xff]  ;;  %2322 = vst [vmem:[%s3311_s20 + $0x218] sm:$0xff] %v1810_v25  ;;  %v1813_v37 = vmul.f32 %v1301_v27, %v277_v19 }
  0x8c   : > { %2323 = vst [vmem:[%s3311_s20 + $0x220] sm:$0xff] %v1811_v26  ;;  %v1814_v38 = vmul.f32 %v1302_v28, %v278_v23  ;;  %v1304_v39 = vmul.f32 1.25, %v792_v34  ;;  %v1305_v40 = vmul.f32 1.25, %v793_v36  ;;  %v282_v41 = vld [vmem:[%s3281_s19 + $0x258] sm:$0xff]  ;;  %v283_v43 = vld [vmem:[%s3281_s19 + $0x260] sm:$0xff]  ;;  %v284_v47 = vld [vmem:[%s3281_s19 + $0x268] sm:$0xff] }
  0x8d   : > { %v794_v42 = vld [vmem:[%s3289_s29 + $0x258] sm:$0xff]  ;;  %2324 = vst [vmem:[%s3311_s20 + $0x228] sm:$0xff] %v1812_v32  ;;  %v1815_v44 = vmul.f32 %v1303_v33, %v279_v29  ;;  %v795_v46 = vld [vmem:[%s3289_s29 + $0x260] sm:$0xff]  ;;  %v796_v48 = vld [vmem:[%s3289_s29 + $0x268] sm:$0xff] }
  0x8e   : > { %v1306_v45 = vmul.f32 1.25, %v794_v42  ;;  %2325 = vst [vmem:[%s3311_s20 + $0x230] sm:$0xff] %v1813_v37  ;;  %2326 = vst [vmem:[%s3311_s20 + $0x238] sm:$0xff] %v1814_v38  ;;  %v1816_v49 = vmul.f32 %v1304_v39, %v280_v31  ;;  %v1817_v50 = vmul.f32 %v1305_v40, %v281_v35  ;;  %v1307_v51 = vmul.f32 1.25, %v795_v46  ;;  %v285_v53 = vld [vmem:[%s3281_s19 + $0x270] sm:$0xff]  ;;  %v286_v55 = vld [vmem:[%s3281_s19 + $0x278] sm:$0xff] }
  0x8f   : > { %v1308_v52 = vmul.f32 1.25, %v796_v48  ;;  %v797_v54 = vld [vmem:[%s3289_s29 + $0x270] sm:$0xff]  ;;  %2327 = vst [vmem:[%s3311_s20 + $0x240] sm:$0xff] %v1815_v44  ;;  %v798_v58 = vld [vmem:[%s3289_s29 + $0x278] sm:$0xff]  ;;  %v287_v59 = vld [vmem:[%s3281_s19 + $0x280] sm:$0xff] }
  0x90   : > { %v1818_v56 = vmul.f32 %v1306_v45, %v282_v41  ;;  %v1309_v57 = vmul.f32 1.25, %v797_v54  ;;  %v799_v60 = vld [vmem:[%s3289_s29 + $0x280] sm:$0xff]  ;;  %2328 = vst [vmem:[%s3311_s20 + $0x248] sm:$0xff] %v1816_v49  ;;  %2329 = vst [vmem:[%s3311_s20 + $0x250] sm:$0xff] %v1817_v50  ;;  %v1819_v61 = vmul.f32 %v1307_v51, %v283_v43  ;;  %v1310_v63 = vmul.f32 1.25, %v798_v58  ;;  %v288_v1 = vld [vmem:[%s3281_s19 + $0x288] sm:$0xff] }
  0x91   : > { %v1820_v62 = vmul.f32 %v1308_v52, %v284_v47  ;;  %v1311_v0 = vmul.f32 1.25, %v799_v60  ;;  %v800_v2 = vld [vmem:[%s3289_s29 + $0x288] sm:$0xff]  ;;  %v289_v3 = vld [vmem:[%s3281_s19 + $0x290] sm:$0xff]  ;;  %v290_v7 = vld [vmem:[%s3281_s19 + $0x298] sm:$0xff] }
  0x92   : > { %2330 = vst [vmem:[%s3311_s20 + $0x258] sm:$0xff] %v1818_v56  ;;  %v1821_v4 = vmul.f32 %v1309_v57, %v285_v53  ;;  %v1312_v5 = vmul.f32 1.25, %v800_v2  ;;  %v801_v6 = vld [vmem:[%s3289_s29 + $0x290] sm:$0xff]  ;;  %v802_v8 = vld [vmem:[%s3289_s29 + $0x298] sm:$0xff]  ;;  %2331 = vst [vmem:[%s3311_s20 + $0x260] sm:$0xff] %v1819_v61  ;;  %v1822_v9 = vmul.f32 %v1310_v63, %v286_v55 }
  0x93   : > { %2332 = vst [vmem:[%s3311_s20 + $0x268] sm:$0xff] %v1820_v62  ;;  %v1823_v10 = vmul.f32 %v1311_v0, %v287_v59  ;;  %v1313_v11 = vmul.f32 1.25, %v801_v6  ;;  %v1314_v12 = vmul.f32 1.25, %v802_v8  ;;  %v291_v13 = vld [vmem:[%s3281_s19 + $0x2a0] sm:$0xff]  ;;  %v292_v15 = vld [vmem:[%s3281_s19 + $0x2a8] sm:$0xff]  ;;  %v293_v19 = vld [vmem:[%s3281_s19 + $0x2b0] sm:$0xff] }
  0x94   : > { %v803_v14 = vld [vmem:[%s3289_s29 + $0x2a0] sm:$0xff]  ;;  %2333 = vst [vmem:[%s3311_s20 + $0x270] sm:$0xff] %v1821_v4  ;;  %v1824_v16 = vmul.f32 %v1312_v5, %v288_v1  ;;  %v804_v18 = vld [vmem:[%s3289_s29 + $0x2a8] sm:$0xff]  ;;  %v805_v20 = vld [vmem:[%s3289_s29 + $0x2b0] sm:$0xff] }
  0x95   : > { %v1315_v17 = vmul.f32 1.25, %v803_v14  ;;  %2334 = vst [vmem:[%s3311_s20 + $0x278] sm:$0xff] %v1822_v9  ;;  %2335 = vst [vmem:[%s3311_s20 + $0x280] sm:$0xff] %v1823_v10  ;;  %v1825_v21 = vmul.f32 %v1313_v11, %v289_v3  ;;  %v1826_v22 = vmul.f32 %v1314_v12, %v290_v7  ;;  %v1316_v23 = vmul.f32 1.25, %v804_v18  ;;  %v294_v25 = vld [vmem:[%s3281_s19 + $0x2b8] sm:$0xff]  ;;  %v295_v27 = vld [vmem:[%s3281_s19 + $0x2c0] sm:$0xff] }
  0x96   : > { %v1317_v24 = vmul.f32 1.25, %v805_v20  ;;  %v806_v26 = vld [vmem:[%s3289_s29 + $0x2b8] sm:$0xff]  ;;  %2336 = vst [vmem:[%s3311_s20 + $0x288] sm:$0xff] %v1824_v16  ;;  %v807_v30 = vld [vmem:[%s3289_s29 + $0x2c0] sm:$0xff]  ;;  %v296_v31 = vld [vmem:[%s3281_s19 + $0x2c8] sm:$0xff] }
  0x97   : > { %v1827_v28 = vmul.f32 %v1315_v17, %v291_v13  ;;  %v1318_v29 = vmul.f32 1.25, %v806_v26  ;;  %v808_v32 = vld [vmem:[%s3289_s29 + $0x2c8] sm:$0xff]  ;;  %2337 = vst [vmem:[%s3311_s20 + $0x290] sm:$0xff] %v1825_v21  ;;  %2338 = vst [vmem:[%s3311_s20 + $0x298] sm:$0xff] %v1826_v22  ;;  %v1828_v33 = vmul.f32 %v1316_v23, %v292_v15  ;;  %v1319_v35 = vmul.f32 1.25, %v807_v30  ;;  %v297_v37 = vld [vmem:[%s3281_s19 + $0x2d0] sm:$0xff] }
  0x98   : > { %v1829_v34 = vmul.f32 %v1317_v24, %v293_v19  ;;  %v1320_v36 = vmul.f32 1.25, %v808_v32  ;;  %v809_v38 = vld [vmem:[%s3289_s29 + $0x2d0] sm:$0xff]  ;;  %v298_v39 = vld [vmem:[%s3281_s19 + $0x2d8] sm:$0xff]  ;;  %v299_v43 = vld [vmem:[%s3281_s19 + $0x2e0] sm:$0xff] }
  0x99   : > { %2339 = vst [vmem:[%s3311_s20 + $0x2a0] sm:$0xff] %v1827_v28  ;;  %v1830_v40 = vmul.f32 %v1318_v29, %v294_v25  ;;  %v1321_v41 = vmul.f32 1.25, %v809_v38  ;;  %v810_v42 = vld [vmem:[%s3289_s29 + $0x2d8] sm:$0xff]  ;;  %v811_v44 = vld [vmem:[%s3289_s29 + $0x2e0] sm:$0xff]  ;;  %2340 = vst [vmem:[%s3311_s20 + $0x2a8] sm:$0xff] %v1828_v33  ;;  %v1831_v45 = vmul.f32 %v1319_v35, %v295_v27 }
  0x9a   : > { %2341 = vst [vmem:[%s3311_s20 + $0x2b0] sm:$0xff] %v1829_v34  ;;  %v1832_v46 = vmul.f32 %v1320_v36, %v296_v31  ;;  %v1322_v47 = vmul.f32 1.25, %v810_v42  ;;  %v1323_v48 = vmul.f32 1.25, %v811_v44  ;;  %v300_v49 = vld [vmem:[%s3281_s19 + $0x2e8] sm:$0xff]  ;;  %v301_v51 = vld [vmem:[%s3281_s19 + $0x2f0] sm:$0xff]  ;;  %v302_v55 = vld [vmem:[%s3281_s19 + $0x2f8] sm:$0xff] }
  0x9b   : > { %v812_v50 = vld [vmem:[%s3289_s29 + $0x2e8] sm:$0xff]  ;;  %2342 = vst [vmem:[%s3311_s20 + $0x2b8] sm:$0xff] %v1830_v40  ;;  %v1833_v52 = vmul.f32 %v1321_v41, %v297_v37  ;;  %v813_v54 = vld [vmem:[%s3289_s29 + $0x2f0] sm:$0xff]  ;;  %v814_v56 = vld [vmem:[%s3289_s29 + $0x2f8] sm:$0xff] }
  0x9c   : > { %v1324_v53 = vmul.f32 1.25, %v812_v50  ;;  %2343 = vst [vmem:[%s3311_s20 + $0x2c0] sm:$0xff] %v1831_v45  ;;  %2344 = vst [vmem:[%s3311_s20 + $0x2c8] sm:$0xff] %v1832_v46  ;;  %v1834_v57 = vmul.f32 %v1322_v47, %v298_v39  ;;  %v1835_v58 = vmul.f32 %v1323_v48, %v299_v43  ;;  %v1325_v59 = vmul.f32 1.25, %v813_v54  ;;  %v303_v61 = vld [vmem:[%s3281_s19 + $0x300] sm:$0xff]  ;;  %v304_v63 = vld [vmem:[%s3281_s19 + $0x308] sm:$0xff] }
  0x9d   : > { %v1326_v60 = vmul.f32 1.25, %v814_v56  ;;  %v815_v62 = vld [vmem:[%s3289_s29 + $0x300] sm:$0xff]  ;;  %2345 = vst [vmem:[%s3311_s20 + $0x2d0] sm:$0xff] %v1833_v52  ;;  %v816_v2 = vld [vmem:[%s3289_s29 + $0x308] sm:$0xff]  ;;  %v305_v3 = vld [vmem:[%s3281_s19 + $0x310] sm:$0xff] }
  0x9e   : > { %v1836_v0 = vmul.f32 %v1324_v53, %v300_v49  ;;  %v1327_v1 = vmul.f32 1.25, %v815_v62  ;;  %v817_v4 = vld [vmem:[%s3289_s29 + $0x310] sm:$0xff]  ;;  %2346 = vst [vmem:[%s3311_s20 + $0x2d8] sm:$0xff] %v1834_v57  ;;  %2347 = vst [vmem:[%s3311_s20 + $0x2e0] sm:$0xff] %v1835_v58  ;;  %v1837_v5 = vmul.f32 %v1325_v59, %v301_v51  ;;  %v1328_v7 = vmul.f32 1.25, %v816_v2  ;;  %v306_v9 = vld [vmem:[%s3281_s19 + $0x318] sm:$0xff] }
  0x9f   : > { %v1838_v6 = vmul.f32 %v1326_v60, %v302_v55  ;;  %v1329_v8 = vmul.f32 1.25, %v817_v4  ;;  %v818_v10 = vld [vmem:[%s3289_s29 + $0x318] sm:$0xff]  ;;  %v307_v11 = vld [vmem:[%s3281_s19 + $0x320] sm:$0xff]  ;;  %v308_v15 = vld [vmem:[%s3281_s19 + $0x328] sm:$0xff] }
  0xa0   : > { %2348 = vst [vmem:[%s3311_s20 + $0x2e8] sm:$0xff] %v1836_v0  ;;  %v1839_v12 = vmul.f32 %v1327_v1, %v303_v61  ;;  %v1330_v13 = vmul.f32 1.25, %v818_v10  ;;  %v819_v14 = vld [vmem:[%s3289_s29 + $0x320] sm:$0xff]  ;;  %v820_v16 = vld [vmem:[%s3289_s29 + $0x328] sm:$0xff]  ;;  %2349 = vst [vmem:[%s3311_s20 + $0x2f0] sm:$0xff] %v1837_v5  ;;  %v1840_v17 = vmul.f32 %v1328_v7, %v304_v63 }
  0xa1   : > { %2350 = vst [vmem:[%s3311_s20 + $0x2f8] sm:$0xff] %v1838_v6  ;;  %v1841_v18 = vmul.f32 %v1329_v8, %v305_v3  ;;  %v1331_v19 = vmul.f32 1.25, %v819_v14  ;;  %v1332_v20 = vmul.f32 1.25, %v820_v16  ;;  %v309_v21 = vld [vmem:[%s3281_s19 + $0x330] sm:$0xff]  ;;  %v310_v23 = vld [vmem:[%s3281_s19 + $0x338] sm:$0xff]  ;;  %v311_v27 = vld [vmem:[%s3281_s19 + $0x340] sm:$0xff] }
  0xa2   : > { %v821_v22 = vld [vmem:[%s3289_s29 + $0x330] sm:$0xff]  ;;  %2351 = vst [vmem:[%s3311_s20 + $0x300] sm:$0xff] %v1839_v12  ;;  %v1842_v24 = vmul.f32 %v1330_v13, %v306_v9  ;;  %v822_v26 = vld [vmem:[%s3289_s29 + $0x338] sm:$0xff]  ;;  %v823_v28 = vld [vmem:[%s3289_s29 + $0x340] sm:$0xff] }
  0xa3   : > { %v1333_v25 = vmul.f32 1.25, %v821_v22  ;;  %2352 = vst [vmem:[%s3311_s20 + $0x308] sm:$0xff] %v1840_v17  ;;  %2353 = vst [vmem:[%s3311_s20 + $0x310] sm:$0xff] %v1841_v18  ;;  %v1843_v29 = vmul.f32 %v1331_v19, %v307_v11  ;;  %v1844_v30 = vmul.f32 %v1332_v20, %v308_v15  ;;  %v1334_v31 = vmul.f32 1.25, %v822_v26  ;;  %v312_v33 = vld [vmem:[%s3281_s19 + $0x348] sm:$0xff]  ;;  %v313_v35 = vld [vmem:[%s3281_s19 + $0x350] sm:$0xff] }
  0xa4   : > { %v1335_v32 = vmul.f32 1.25, %v823_v28  ;;  %v824_v34 = vld [vmem:[%s3289_s29 + $0x348] sm:$0xff]  ;;  %2354 = vst [vmem:[%s3311_s20 + $0x318] sm:$0xff] %v1842_v24  ;;  %v825_v38 = vld [vmem:[%s3289_s29 + $0x350] sm:$0xff]  ;;  %v314_v39 = vld [vmem:[%s3281_s19 + $0x358] sm:$0xff] }
  0xa5   : > { %v1845_v36 = vmul.f32 %v1333_v25, %v309_v21  ;;  %v1336_v37 = vmul.f32 1.25, %v824_v34  ;;  %v826_v40 = vld [vmem:[%s3289_s29 + $0x358] sm:$0xff]  ;;  %2355 = vst [vmem:[%s3311_s20 + $0x320] sm:$0xff] %v1843_v29  ;;  %2356 = vst [vmem:[%s3311_s20 + $0x328] sm:$0xff] %v1844_v30  ;;  %v1846_v41 = vmul.f32 %v1334_v31, %v310_v23  ;;  %v1337_v43 = vmul.f32 1.25, %v825_v38  ;;  %v315_v45 = vld [vmem:[%s3281_s19 + $0x360] sm:$0xff] }
  0xa6   : > { %v1847_v42 = vmul.f32 %v1335_v32, %v311_v27  ;;  %v1338_v44 = vmul.f32 1.25, %v826_v40  ;;  %v827_v46 = vld [vmem:[%s3289_s29 + $0x360] sm:$0xff]  ;;  %v316_v47 = vld [vmem:[%s3281_s19 + $0x368] sm:$0xff]  ;;  %v317_v51 = vld [vmem:[%s3281_s19 + $0x370] sm:$0xff] }
  0xa7   : > { %2357 = vst [vmem:[%s3311_s20 + $0x330] sm:$0xff] %v1845_v36  ;;  %v1848_v48 = vmul.f32 %v1336_v37, %v312_v33  ;;  %v1339_v49 = vmul.f32 1.25, %v827_v46  ;;  %v828_v50 = vld [vmem:[%s3289_s29 + $0x368] sm:$0xff]  ;;  %v829_v52 = vld [vmem:[%s3289_s29 + $0x370] sm:$0xff]  ;;  %2358 = vst [vmem:[%s3311_s20 + $0x338] sm:$0xff] %v1846_v41  ;;  %v1849_v53 = vmul.f32 %v1337_v43, %v313_v35 }
  0xa8   : > { %2359 = vst [vmem:[%s3311_s20 + $0x340] sm:$0xff] %v1847_v42  ;;  %v1850_v54 = vmul.f32 %v1338_v44, %v314_v39  ;;  %v1340_v55 = vmul.f32 1.25, %v828_v50  ;;  %v1341_v56 = vmul.f32 1.25, %v829_v52  ;;  %v318_v57 = vld [vmem:[%s3281_s19 + $0x378] sm:$0xff]  ;;  %v319_v59 = vld [vmem:[%s3281_s19 + $0x380] sm:$0xff]  ;;  %v320_v63 = vld [vmem:[%s3281_s19 + $0x388] sm:$0xff] }
  0xa9   : > { %v830_v58 = vld [vmem:[%s3289_s29 + $0x378] sm:$0xff]  ;;  %2360 = vst [vmem:[%s3311_s20 + $0x348] sm:$0xff] %v1848_v48  ;;  %v1851_v60 = vmul.f32 %v1339_v49, %v315_v45  ;;  %v831_v62 = vld [vmem:[%s3289_s29 + $0x380] sm:$0xff]  ;;  %v832_v0 = vld [vmem:[%s3289_s29 + $0x388] sm:$0xff] }
  0xaa   : > { %v1342_v61 = vmul.f32 1.25, %v830_v58  ;;  %2361 = vst [vmem:[%s3311_s20 + $0x350] sm:$0xff] %v1849_v53  ;;  %2362 = vst [vmem:[%s3311_s20 + $0x358] sm:$0xff] %v1850_v54  ;;  %v1852_v1 = vmul.f32 %v1340_v55, %v316_v47  ;;  %v1853_v2 = vmul.f32 %v1341_v56, %v317_v51  ;;  %v1343_v3 = vmul.f32 1.25, %v831_v62  ;;  %v321_v5 = vld [vmem:[%s3281_s19 + $0x390] sm:$0xff]  ;;  %v322_v7 = vld [vmem:[%s3281_s19 + $0x398] sm:$0xff] }
  0xab   : > { %v1344_v4 = vmul.f32 1.25, %v832_v0  ;;  %v833_v6 = vld [vmem:[%s3289_s29 + $0x390] sm:$0xff]  ;;  %2363 = vst [vmem:[%s3311_s20 + $0x360] sm:$0xff] %v1851_v60  ;;  %v834_v10 = vld [vmem:[%s3289_s29 + $0x398] sm:$0xff]  ;;  %v323_v11 = vld [vmem:[%s3281_s19 + $0x3a0] sm:$0xff] }
  0xac   : > { %v1854_v8 = vmul.f32 %v1342_v61, %v318_v57  ;;  %v1345_v9 = vmul.f32 1.25, %v833_v6  ;;  %v835_v12 = vld [vmem:[%s3289_s29 + $0x3a0] sm:$0xff]  ;;  %2364 = vst [vmem:[%s3311_s20 + $0x368] sm:$0xff] %v1852_v1  ;;  %2365 = vst [vmem:[%s3311_s20 + $0x370] sm:$0xff] %v1853_v2  ;;  %v1855_v13 = vmul.f32 %v1343_v3, %v319_v59  ;;  %v1346_v15 = vmul.f32 1.25, %v834_v10  ;;  %v324_v17 = vld [vmem:[%s3281_s19 + $0x3a8] sm:$0xff] }
  0xad   : > { %v1856_v14 = vmul.f32 %v1344_v4, %v320_v63  ;;  %v1347_v16 = vmul.f32 1.25, %v835_v12  ;;  %v836_v18 = vld [vmem:[%s3289_s29 + $0x3a8] sm:$0xff]  ;;  %v325_v19 = vld [vmem:[%s3281_s19 + $0x3b0] sm:$0xff]  ;;  %v326_v23 = vld [vmem:[%s3281_s19 + $0x3b8] sm:$0xff] }
  0xae   : > { %2366 = vst [vmem:[%s3311_s20 + $0x378] sm:$0xff] %v1854_v8  ;;  %v1857_v20 = vmul.f32 %v1345_v9, %v321_v5  ;;  %v1348_v21 = vmul.f32 1.25, %v836_v18  ;;  %v837_v22 = vld [vmem:[%s3289_s29 + $0x3b0] sm:$0xff]  ;;  %v838_v24 = vld [vmem:[%s3289_s29 + $0x3b8] sm:$0xff]  ;;  %2367 = vst [vmem:[%s3311_s20 + $0x380] sm:$0xff] %v1855_v13  ;;  %v1858_v25 = vmul.f32 %v1346_v15, %v322_v7 }
  0xaf   : > { %2368 = vst [vmem:[%s3311_s20 + $0x388] sm:$0xff] %v1856_v14  ;;  %v1859_v26 = vmul.f32 %v1347_v16, %v323_v11  ;;  %v1349_v27 = vmul.f32 1.25, %v837_v22  ;;  %v1350_v28 = vmul.f32 1.25, %v838_v24  ;;  %v327_v29 = vld [vmem:[%s3281_s19 + $0x3c0] sm:$0xff]  ;;  %v328_v31 = vld [vmem:[%s3281_s19 + $0x3c8] sm:$0xff]  ;;  %v329_v35 = vld [vmem:[%s3281_s19 + $0x3d0] sm:$0xff] }
  0xb0   : > { %v839_v30 = vld [vmem:[%s3289_s29 + $0x3c0] sm:$0xff]  ;;  %2369 = vst [vmem:[%s3311_s20 + $0x390] sm:$0xff] %v1857_v20  ;;  %v1860_v32 = vmul.f32 %v1348_v21, %v324_v17  ;;  %v840_v34 = vld [vmem:[%s3289_s29 + $0x3c8] sm:$0xff]  ;;  %v841_v36 = vld [vmem:[%s3289_s29 + $0x3d0] sm:$0xff] }
  0xb1   : > { %v1351_v33 = vmul.f32 1.25, %v839_v30  ;;  %2370 = vst [vmem:[%s3311_s20 + $0x398] sm:$0xff] %v1858_v25  ;;  %2371 = vst [vmem:[%s3311_s20 + $0x3a0] sm:$0xff] %v1859_v26  ;;  %v1861_v37 = vmul.f32 %v1349_v27, %v325_v19  ;;  %v1862_v38 = vmul.f32 %v1350_v28, %v326_v23  ;;  %v1352_v39 = vmul.f32 1.25, %v840_v34  ;;  %v330_v41 = vld [vmem:[%s3281_s19 + $0x3d8] sm:$0xff]  ;;  %v331_v43 = vld [vmem:[%s3281_s19 + $0x3e0] sm:$0xff] }
  0xb2   : > { %v1353_v40 = vmul.f32 1.25, %v841_v36  ;;  %v842_v42 = vld [vmem:[%s3289_s29 + $0x3d8] sm:$0xff]  ;;  %2372 = vst [vmem:[%s3311_s20 + $0x3a8] sm:$0xff] %v1860_v32  ;;  %v843_v46 = vld [vmem:[%s3289_s29 + $0x3e0] sm:$0xff]  ;;  %v332_v47 = vld [vmem:[%s3281_s19 + $0x3e8] sm:$0xff] }
  0xb3   : > { %v1863_v44 = vmul.f32 %v1351_v33, %v327_v29  ;;  %v1354_v45 = vmul.f32 1.25, %v842_v42  ;;  %v844_v48 = vld [vmem:[%s3289_s29 + $0x3e8] sm:$0xff]  ;;  %2373 = vst [vmem:[%s3311_s20 + $0x3b0] sm:$0xff] %v1861_v37  ;;  %2374 = vst [vmem:[%s3311_s20 + $0x3b8] sm:$0xff] %v1862_v38  ;;  %v1864_v49 = vmul.f32 %v1352_v39, %v328_v31  ;;  %v1355_v51 = vmul.f32 1.25, %v843_v46  ;;  %v333_v53 = vld [vmem:[%s3281_s19 + $0x3f0] sm:$0xff] }
  0xb4   : > { %v1865_v50 = vmul.f32 %v1353_v40, %v329_v35  ;;  %v1356_v52 = vmul.f32 1.25, %v844_v48  ;;  %v845_v54 = vld [vmem:[%s3289_s29 + $0x3f0] sm:$0xff]  ;;  %v334_v55 = vld [vmem:[%s3281_s19 + $0x3f8] sm:$0xff]  ;;  %v335_v59 = vld [vmem:[%s3281_s19 + $0x400] sm:$0xff] }
  0xb5   : > { %2375 = vst [vmem:[%s3311_s20 + $0x3c0] sm:$0xff] %v1863_v44  ;;  %v1866_v56 = vmul.f32 %v1354_v45, %v330_v41  ;;  %v1357_v57 = vmul.f32 1.25, %v845_v54  ;;  %v846_v58 = vld [vmem:[%s3289_s29 + $0x3f8] sm:$0xff]  ;;  %v847_v60 = vld [vmem:[%s3289_s29 + $0x400] sm:$0xff]  ;;  %2376 = vst [vmem:[%s3311_s20 + $0x3c8] sm:$0xff] %v1864_v49  ;;  %v1867_v61 = vmul.f32 %v1355_v51, %v331_v43 }
  0xb6   : > { %2377 = vst [vmem:[%s3311_s20 + $0x3d0] sm:$0xff] %v1865_v50  ;;  %v1868_v62 = vmul.f32 %v1356_v52, %v332_v47  ;;  %v1358_v63 = vmul.f32 1.25, %v846_v58  ;;  %v1359_v0 = vmul.f32 1.25, %v847_v60  ;;  %v336_v1 = vld [vmem:[%s3281_s19 + $0x408] sm:$0xff]  ;;  %v337_v3 = vld [vmem:[%s3281_s19 + $0x410] sm:$0xff]  ;;  %v338_v7 = vld [vmem:[%s3281_s19 + $0x418] sm:$0xff] }
  0xb7   : > { %v848_v2 = vld [vmem:[%s3289_s29 + $0x408] sm:$0xff]  ;;  %2378 = vst [vmem:[%s3311_s20 + $0x3d8] sm:$0xff] %v1866_v56  ;;  %v1869_v4 = vmul.f32 %v1357_v57, %v333_v53  ;;  %v849_v6 = vld [vmem:[%s3289_s29 + $0x410] sm:$0xff]  ;;  %v850_v8 = vld [vmem:[%s3289_s29 + $0x418] sm:$0xff] }
  0xb8   : > { %v1360_v5 = vmul.f32 1.25, %v848_v2  ;;  %2379 = vst [vmem:[%s3311_s20 + $0x3e0] sm:$0xff] %v1867_v61  ;;  %2380 = vst [vmem:[%s3311_s20 + $0x3e8] sm:$0xff] %v1868_v62  ;;  %v1870_v9 = vmul.f32 %v1358_v63, %v334_v55  ;;  %v1871_v10 = vmul.f32 %v1359_v0, %v335_v59  ;;  %v1361_v11 = vmul.f32 1.25, %v849_v6  ;;  %v339_v13 = vld [vmem:[%s3281_s19 + $0x420] sm:$0xff]  ;;  %v340_v15 = vld [vmem:[%s3281_s19 + $0x428] sm:$0xff] }
  0xb9   : > { %v1362_v12 = vmul.f32 1.25, %v850_v8  ;;  %v851_v14 = vld [vmem:[%s3289_s29 + $0x420] sm:$0xff]  ;;  %2381 = vst [vmem:[%s3311_s20 + $0x3f0] sm:$0xff] %v1869_v4  ;;  %v852_v18 = vld [vmem:[%s3289_s29 + $0x428] sm:$0xff]  ;;  %v341_v19 = vld [vmem:[%s3281_s19 + $0x430] sm:$0xff] }
  0xba   : > { %v1872_v16 = vmul.f32 %v1360_v5, %v336_v1  ;;  %v1363_v17 = vmul.f32 1.25, %v851_v14  ;;  %v853_v20 = vld [vmem:[%s3289_s29 + $0x430] sm:$0xff]  ;;  %2382 = vst [vmem:[%s3311_s20 + $0x3f8] sm:$0xff] %v1870_v9  ;;  %2383 = vst [vmem:[%s3311_s20 + $0x400] sm:$0xff] %v1871_v10  ;;  %v1873_v21 = vmul.f32 %v1361_v11, %v337_v3  ;;  %v1364_v23 = vmul.f32 1.25, %v852_v18  ;;  %v342_v25 = vld [vmem:[%s3281_s19 + $0x438] sm:$0xff] }
  0xbb   : > { %v1874_v22 = vmul.f32 %v1362_v12, %v338_v7  ;;  %v1365_v24 = vmul.f32 1.25, %v853_v20  ;;  %v854_v26 = vld [vmem:[%s3289_s29 + $0x438] sm:$0xff]  ;;  %v343_v27 = vld [vmem:[%s3281_s19 + $0x440] sm:$0xff]  ;;  %v344_v31 = vld [vmem:[%s3281_s19 + $0x448] sm:$0xff] }
  0xbc   : > { %2384 = vst [vmem:[%s3311_s20 + $0x408] sm:$0xff] %v1872_v16  ;;  %v1875_v28 = vmul.f32 %v1363_v17, %v339_v13  ;;  %v1366_v29 = vmul.f32 1.25, %v854_v26  ;;  %v855_v30 = vld [vmem:[%s3289_s29 + $0x440] sm:$0xff]  ;;  %v856_v32 = vld [vmem:[%s3289_s29 + $0x448] sm:$0xff]  ;;  %2385 = vst [vmem:[%s3311_s20 + $0x410] sm:$0xff] %v1873_v21  ;;  %v1876_v33 = vmul.f32 %v1364_v23, %v340_v15 }
  0xbd   : > { %2386 = vst [vmem:[%s3311_s20 + $0x418] sm:$0xff] %v1874_v22  ;;  %v1877_v34 = vmul.f32 %v1365_v24, %v341_v19  ;;  %v1367_v35 = vmul.f32 1.25, %v855_v30  ;;  %v1368_v36 = vmul.f32 1.25, %v856_v32  ;;  %v345_v37 = vld [vmem:[%s3281_s19 + $0x450] sm:$0xff]  ;;  %v346_v39 = vld [vmem:[%s3281_s19 + $0x458] sm:$0xff]  ;;  %v347_v43 = vld [vmem:[%s3281_s19 + $0x460] sm:$0xff] }
  0xbe   : > { %v857_v38 = vld [vmem:[%s3289_s29 + $0x450] sm:$0xff]  ;;  %2387 = vst [vmem:[%s3311_s20 + $0x420] sm:$0xff] %v1875_v28  ;;  %v1878_v40 = vmul.f32 %v1366_v29, %v342_v25  ;;  %v858_v42 = vld [vmem:[%s3289_s29 + $0x458] sm:$0xff]  ;;  %v859_v44 = vld [vmem:[%s3289_s29 + $0x460] sm:$0xff] }
  0xbf   : > { %v1369_v41 = vmul.f32 1.25, %v857_v38  ;;  %2388 = vst [vmem:[%s3311_s20 + $0x428] sm:$0xff] %v1876_v33  ;;  %2389 = vst [vmem:[%s3311_s20 + $0x430] sm:$0xff] %v1877_v34  ;;  %v1879_v45 = vmul.f32 %v1367_v35, %v343_v27  ;;  %v1880_v46 = vmul.f32 %v1368_v36, %v344_v31  ;;  %v1370_v47 = vmul.f32 1.25, %v858_v42  ;;  %v348_v49 = vld [vmem:[%s3281_s19 + $0x468] sm:$0xff]  ;;  %v349_v51 = vld [vmem:[%s3281_s19 + $0x470] sm:$0xff] }
  0xc0   : > { %v1371_v48 = vmul.f32 1.25, %v859_v44  ;;  %v860_v50 = vld [vmem:[%s3289_s29 + $0x468] sm:$0xff]  ;;  %2390 = vst [vmem:[%s3311_s20 + $0x438] sm:$0xff] %v1878_v40  ;;  %v861_v54 = vld [vmem:[%s3289_s29 + $0x470] sm:$0xff]  ;;  %v350_v55 = vld [vmem:[%s3281_s19 + $0x478] sm:$0xff] }
  0xc1   : > { %v1881_v52 = vmul.f32 %v1369_v41, %v345_v37  ;;  %v1372_v53 = vmul.f32 1.25, %v860_v50  ;;  %v862_v56 = vld [vmem:[%s3289_s29 + $0x478] sm:$0xff]  ;;  %2391 = vst [vmem:[%s3311_s20 + $0x440] sm:$0xff] %v1879_v45  ;;  %2392 = vst [vmem:[%s3311_s20 + $0x448] sm:$0xff] %v1880_v46  ;;  %v1882_v57 = vmul.f32 %v1370_v47, %v346_v39  ;;  %v1373_v59 = vmul.f32 1.25, %v861_v54  ;;  %v351_v61 = vld [vmem:[%s3281_s19 + $0x480] sm:$0xff] }
  0xc2   : > { %v1883_v58 = vmul.f32 %v1371_v48, %v347_v43  ;;  %v1374_v60 = vmul.f32 1.25, %v862_v56  ;;  %v863_v62 = vld [vmem:[%s3289_s29 + $0x480] sm:$0xff]  ;;  %v352_v63 = vld [vmem:[%s3281_s19 + $0x488] sm:$0xff]  ;;  %v353_v3 = vld [vmem:[%s3281_s19 + $0x490] sm:$0xff] }
  0xc3   : > { %2393 = vst [vmem:[%s3311_s20 + $0x450] sm:$0xff] %v1881_v52  ;;  %v1884_v0 = vmul.f32 %v1372_v53, %v348_v49  ;;  %v1375_v1 = vmul.f32 1.25, %v863_v62  ;;  %v864_v2 = vld [vmem:[%s3289_s29 + $0x488] sm:$0xff]  ;;  %v865_v4 = vld [vmem:[%s3289_s29 + $0x490] sm:$0xff]  ;;  %2394 = vst [vmem:[%s3311_s20 + $0x458] sm:$0xff] %v1882_v57  ;;  %v1885_v5 = vmul.f32 %v1373_v59, %v349_v51 }
  0xc4   : > { %2395 = vst [vmem:[%s3311_s20 + $0x460] sm:$0xff] %v1883_v58  ;;  %v1886_v6 = vmul.f32 %v1374_v60, %v350_v55  ;;  %v1376_v7 = vmul.f32 1.25, %v864_v2  ;;  %v1377_v8 = vmul.f32 1.25, %v865_v4  ;;  %v354_v9 = vld [vmem:[%s3281_s19 + $0x498] sm:$0xff]  ;;  %v355_v11 = vld [vmem:[%s3281_s19 + $0x4a0] sm:$0xff]  ;;  %v356_v15 = vld [vmem:[%s3281_s19 + $0x4a8] sm:$0xff] }
  0xc5   : > { %v866_v10 = vld [vmem:[%s3289_s29 + $0x498] sm:$0xff]  ;;  %2396 = vst [vmem:[%s3311_s20 + $0x468] sm:$0xff] %v1884_v0  ;;  %v1887_v12 = vmul.f32 %v1375_v1, %v351_v61  ;;  %v867_v14 = vld [vmem:[%s3289_s29 + $0x4a0] sm:$0xff]  ;;  %v868_v16 = vld [vmem:[%s3289_s29 + $0x4a8] sm:$0xff] }
  0xc6   : > { %v1378_v13 = vmul.f32 1.25, %v866_v10  ;;  %2397 = vst [vmem:[%s3311_s20 + $0x470] sm:$0xff] %v1885_v5  ;;  %2398 = vst [vmem:[%s3311_s20 + $0x478] sm:$0xff] %v1886_v6  ;;  %v1888_v17 = vmul.f32 %v1376_v7, %v352_v63  ;;  %v1889_v18 = vmul.f32 %v1377_v8, %v353_v3  ;;  %v1379_v19 = vmul.f32 1.25, %v867_v14  ;;  %v357_v21 = vld [vmem:[%s3281_s19 + $0x4b0] sm:$0xff]  ;;  %v358_v23 = vld [vmem:[%s3281_s19 + $0x4b8] sm:$0xff] }
  0xc7   : > { %v1380_v20 = vmul.f32 1.25, %v868_v16  ;;  %v869_v22 = vld [vmem:[%s3289_s29 + $0x4b0] sm:$0xff]  ;;  %2399 = vst [vmem:[%s3311_s20 + $0x480] sm:$0xff] %v1887_v12  ;;  %v870_v26 = vld [vmem:[%s3289_s29 + $0x4b8] sm:$0xff]  ;;  %v359_v27 = vld [vmem:[%s3281_s19 + $0x4c0] sm:$0xff] }
  0xc8   : > { %v1890_v24 = vmul.f32 %v1378_v13, %v354_v9  ;;  %v1381_v25 = vmul.f32 1.25, %v869_v22  ;;  %v871_v28 = vld [vmem:[%s3289_s29 + $0x4c0] sm:$0xff]  ;;  %2400 = vst [vmem:[%s3311_s20 + $0x488] sm:$0xff] %v1888_v17  ;;  %2401 = vst [vmem:[%s3311_s20 + $0x490] sm:$0xff] %v1889_v18  ;;  %v1891_v29 = vmul.f32 %v1379_v19, %v355_v11  ;;  %v1382_v31 = vmul.f32 1.25, %v870_v26  ;;  %v360_v33 = vld [vmem:[%s3281_s19 + $0x4c8] sm:$0xff] }
  0xc9   : > { %v1892_v30 = vmul.f32 %v1380_v20, %v356_v15  ;;  %v1383_v32 = vmul.f32 1.25, %v871_v28  ;;  %v872_v34 = vld [vmem:[%s3289_s29 + $0x4c8] sm:$0xff]  ;;  %v361_v35 = vld [vmem:[%s3281_s19 + $0x4d0] sm:$0xff]  ;;  %v362_v39 = vld [vmem:[%s3281_s19 + $0x4d8] sm:$0xff] }
  0xca   : > { %2402 = vst [vmem:[%s3311_s20 + $0x498] sm:$0xff] %v1890_v24  ;;  %v1893_v36 = vmul.f32 %v1381_v25, %v357_v21  ;;  %v1384_v37 = vmul.f32 1.25, %v872_v34  ;;  %v873_v38 = vld [vmem:[%s3289_s29 + $0x4d0] sm:$0xff]  ;;  %v874_v40 = vld [vmem:[%s3289_s29 + $0x4d8] sm:$0xff]  ;;  %2403 = vst [vmem:[%s3311_s20 + $0x4a0] sm:$0xff] %v1891_v29  ;;  %v1894_v41 = vmul.f32 %v1382_v31, %v358_v23 }
  0xcb   : > { %2404 = vst [vmem:[%s3311_s20 + $0x4a8] sm:$0xff] %v1892_v30  ;;  %v1895_v42 = vmul.f32 %v1383_v32, %v359_v27  ;;  %v1385_v43 = vmul.f32 1.25, %v873_v38  ;;  %v1386_v44 = vmul.f32 1.25, %v874_v40  ;;  %v363_v45 = vld [vmem:[%s3281_s19 + $0x4e0] sm:$0xff]  ;;  %v364_v47 = vld [vmem:[%s3281_s19 + $0x4e8] sm:$0xff]  ;;  %v365_v51 = vld [vmem:[%s3281_s19 + $0x4f0] sm:$0xff] }
  0xcc   : > { %v875_v46 = vld [vmem:[%s3289_s29 + $0x4e0] sm:$0xff]  ;;  %2405 = vst [vmem:[%s3311_s20 + $0x4b0] sm:$0xff] %v1893_v36  ;;  %v1896_v48 = vmul.f32 %v1384_v37, %v360_v33  ;;  %v876_v50 = vld [vmem:[%s3289_s29 + $0x4e8] sm:$0xff]  ;;  %v877_v52 = vld [vmem:[%s3289_s29 + $0x4f0] sm:$0xff] }
  0xcd   : > { %v1387_v49 = vmul.f32 1.25, %v875_v46  ;;  %2406 = vst [vmem:[%s3311_s20 + $0x4b8] sm:$0xff] %v1894_v41  ;;  %2407 = vst [vmem:[%s3311_s20 + $0x4c0] sm:$0xff] %v1895_v42  ;;  %v1897_v53 = vmul.f32 %v1385_v43, %v361_v35  ;;  %v1898_v54 = vmul.f32 %v1386_v44, %v362_v39  ;;  %v1388_v55 = vmul.f32 1.25, %v876_v50  ;;  %v366_v57 = vld [vmem:[%s3281_s19 + $0x4f8] sm:$0xff]  ;;  %v367_v59 = vld [vmem:[%s3281_s19 + $0x500] sm:$0xff] }
  0xce   : > { %v1389_v56 = vmul.f32 1.25, %v877_v52  ;;  %v878_v58 = vld [vmem:[%s3289_s29 + $0x4f8] sm:$0xff]  ;;  %2408 = vst [vmem:[%s3311_s20 + $0x4c8] sm:$0xff] %v1896_v48  ;;  %v879_v62 = vld [vmem:[%s3289_s29 + $0x500] sm:$0xff]  ;;  %v368_v63 = vld [vmem:[%s3281_s19 + $0x508] sm:$0xff] }
  0xcf   : > { %v1899_v60 = vmul.f32 %v1387_v49, %v363_v45  ;;  %v1390_v61 = vmul.f32 1.25, %v878_v58  ;;  %v880_v0 = vld [vmem:[%s3289_s29 + $0x508] sm:$0xff]  ;;  %2409 = vst [vmem:[%s3311_s20 + $0x4d0] sm:$0xff] %v1897_v53  ;;  %2410 = vst [vmem:[%s3311_s20 + $0x4d8] sm:$0xff] %v1898_v54  ;;  %v1900_v1 = vmul.f32 %v1388_v55, %v364_v47  ;;  %v1391_v3 = vmul.f32 1.25, %v879_v62  ;;  %v369_v5 = vld [vmem:[%s3281_s19 + $0x510] sm:$0xff] }
  0xd0   : > { %v1901_v2 = vmul.f32 %v1389_v56, %v365_v51  ;;  %v1392_v4 = vmul.f32 1.25, %v880_v0  ;;  %v881_v6 = vld [vmem:[%s3289_s29 + $0x510] sm:$0xff]  ;;  %v370_v7 = vld [vmem:[%s3281_s19 + $0x518] sm:$0xff]  ;;  %v371_v11 = vld [vmem:[%s3281_s19 + $0x520] sm:$0xff] }
  0xd1   : > { %2411 = vst [vmem:[%s3311_s20 + $0x4e0] sm:$0xff] %v1899_v60  ;;  %v1902_v8 = vmul.f32 %v1390_v61, %v366_v57  ;;  %v1393_v9 = vmul.f32 1.25, %v881_v6  ;;  %v882_v10 = vld [vmem:[%s3289_s29 + $0x518] sm:$0xff]  ;;  %v883_v12 = vld [vmem:[%s3289_s29 + $0x520] sm:$0xff]  ;;  %2412 = vst [vmem:[%s3311_s20 + $0x4e8] sm:$0xff] %v1900_v1  ;;  %v1903_v13 = vmul.f32 %v1391_v3, %v367_v59 }
  0xd2   : > { %2413 = vst [vmem:[%s3311_s20 + $0x4f0] sm:$0xff] %v1901_v2  ;;  %v1904_v14 = vmul.f32 %v1392_v4, %v368_v63  ;;  %v1394_v15 = vmul.f32 1.25, %v882_v10  ;;  %v1395_v16 = vmul.f32 1.25, %v883_v12  ;;  %v372_v17 = vld [vmem:[%s3281_s19 + $0x528] sm:$0xff]  ;;  %v373_v19 = vld [vmem:[%s3281_s19 + $0x530] sm:$0xff]  ;;  %v374_v23 = vld [vmem:[%s3281_s19 + $0x538] sm:$0xff] }
  0xd3   : > { %v884_v18 = vld [vmem:[%s3289_s29 + $0x528] sm:$0xff]  ;;  %2414 = vst [vmem:[%s3311_s20 + $0x4f8] sm:$0xff] %v1902_v8  ;;  %v1905_v20 = vmul.f32 %v1393_v9, %v369_v5  ;;  %v885_v22 = vld [vmem:[%s3289_s29 + $0x530] sm:$0xff]  ;;  %v886_v24 = vld [vmem:[%s3289_s29 + $0x538] sm:$0xff] }
  0xd4   : > { %v1396_v21 = vmul.f32 1.25, %v884_v18  ;;  %2415 = vst [vmem:[%s3311_s20 + $0x500] sm:$0xff] %v1903_v13  ;;  %2416 = vst [vmem:[%s3311_s20 + $0x508] sm:$0xff] %v1904_v14  ;;  %v1906_v25 = vmul.f32 %v1394_v15, %v370_v7  ;;  %v1907_v26 = vmul.f32 %v1395_v16, %v371_v11  ;;  %v1397_v27 = vmul.f32 1.25, %v885_v22  ;;  %v375_v29 = vld [vmem:[%s3281_s19 + $0x540] sm:$0xff]  ;;  %v376_v31 = vld [vmem:[%s3281_s19 + $0x548] sm:$0xff] }
  0xd5   : > { %v1398_v28 = vmul.f32 1.25, %v886_v24  ;;  %v887_v30 = vld [vmem:[%s3289_s29 + $0x540] sm:$0xff]  ;;  %2417 = vst [vmem:[%s3311_s20 + $0x510] sm:$0xff] %v1905_v20  ;;  %v888_v34 = vld [vmem:[%s3289_s29 + $0x548] sm:$0xff]  ;;  %v377_v35 = vld [vmem:[%s3281_s19 + $0x550] sm:$0xff] }
  0xd6   : > { %v1908_v32 = vmul.f32 %v1396_v21, %v372_v17  ;;  %v1399_v33 = vmul.f32 1.25, %v887_v30  ;;  %v889_v36 = vld [vmem:[%s3289_s29 + $0x550] sm:$0xff]  ;;  %2418 = vst [vmem:[%s3311_s20 + $0x518] sm:$0xff] %v1906_v25  ;;  %2419 = vst [vmem:[%s3311_s20 + $0x520] sm:$0xff] %v1907_v26  ;;  %v1909_v37 = vmul.f32 %v1397_v27, %v373_v19  ;;  %v1400_v39 = vmul.f32 1.25, %v888_v34  ;;  %v378_v41 = vld [vmem:[%s3281_s19 + $0x558] sm:$0xff] }
  0xd7   : > { %v1910_v38 = vmul.f32 %v1398_v28, %v374_v23  ;;  %v1401_v40 = vmul.f32 1.25, %v889_v36  ;;  %v890_v42 = vld [vmem:[%s3289_s29 + $0x558] sm:$0xff]  ;;  %v379_v43 = vld [vmem:[%s3281_s19 + $0x560] sm:$0xff]  ;;  %v380_v47 = vld [vmem:[%s3281_s19 + $0x568] sm:$0xff] }
  0xd8   : > { %2420 = vst [vmem:[%s3311_s20 + $0x528] sm:$0xff] %v1908_v32  ;;  %v1911_v44 = vmul.f32 %v1399_v33, %v375_v29  ;;  %v1402_v45 = vmul.f32 1.25, %v890_v42  ;;  %v891_v46 = vld [vmem:[%s3289_s29 + $0x560] sm:$0xff]  ;;  %v892_v48 = vld [vmem:[%s3289_s29 + $0x568] sm:$0xff]  ;;  %2421 = vst [vmem:[%s3311_s20 + $0x530] sm:$0xff] %v1909_v37  ;;  %v1912_v49 = vmul.f32 %v1400_v39, %v376_v31 }
  0xd9   : > { %2422 = vst [vmem:[%s3311_s20 + $0x538] sm:$0xff] %v1910_v38  ;;  %v1913_v50 = vmul.f32 %v1401_v40, %v377_v35  ;;  %v1403_v51 = vmul.f32 1.25, %v891_v46  ;;  %v1404_v52 = vmul.f32 1.25, %v892_v48  ;;  %v381_v53 = vld [vmem:[%s3281_s19 + $0x570] sm:$0xff]  ;;  %v382_v55 = vld [vmem:[%s3281_s19 + $0x578] sm:$0xff]  ;;  %v383_v59 = vld [vmem:[%s3281_s19 + $0x580] sm:$0xff] }
  0xda   : > { %v893_v54 = vld [vmem:[%s3289_s29 + $0x570] sm:$0xff]  ;;  %2423 = vst [vmem:[%s3311_s20 + $0x540] sm:$0xff] %v1911_v44  ;;  %v1914_v56 = vmul.f32 %v1402_v45, %v378_v41  ;;  %v894_v58 = vld [vmem:[%s3289_s29 + $0x578] sm:$0xff]  ;;  %v895_v60 = vld [vmem:[%s3289_s29 + $0x580] sm:$0xff] }
  0xdb   : > { %v1405_v57 = vmul.f32 1.25, %v893_v54  ;;  %2424 = vst [vmem:[%s3311_s20 + $0x548] sm:$0xff] %v1912_v49  ;;  %2425 = vst [vmem:[%s3311_s20 + $0x550] sm:$0xff] %v1913_v50  ;;  %v1915_v61 = vmul.f32 %v1403_v51, %v379_v43  ;;  %v1916_v62 = vmul.f32 %v1404_v52, %v380_v47  ;;  %v1406_v63 = vmul.f32 1.25, %v894_v58  ;;  %v384_v1 = vld [vmem:[%s3281_s19 + $0x588] sm:$0xff]  ;;  %v385_v3 = vld [vmem:[%s3281_s19 + $0x590] sm:$0xff] }
  0xdc   : > { %v1407_v0 = vmul.f32 1.25, %v895_v60  ;;  %v896_v2 = vld [vmem:[%s3289_s29 + $0x588] sm:$0xff]  ;;  %2426 = vst [vmem:[%s3311_s20 + $0x558] sm:$0xff] %v1914_v56  ;;  %v897_v6 = vld [vmem:[%s3289_s29 + $0x590] sm:$0xff]  ;;  %v386_v7 = vld [vmem:[%s3281_s19 + $0x598] sm:$0xff] }
  0xdd   : > { %v1917_v4 = vmul.f32 %v1405_v57, %v381_v53  ;;  %v1408_v5 = vmul.f32 1.25, %v896_v2  ;;  %v898_v8 = vld [vmem:[%s3289_s29 + $0x598] sm:$0xff]  ;;  %2427 = vst [vmem:[%s3311_s20 + $0x560] sm:$0xff] %v1915_v61  ;;  %2428 = vst [vmem:[%s3311_s20 + $0x568] sm:$0xff] %v1916_v62  ;;  %v1918_v9 = vmul.f32 %v1406_v63, %v382_v55  ;;  %v1409_v11 = vmul.f32 1.25, %v897_v6  ;;  %v387_v13 = vld [vmem:[%s3281_s19 + $0x5a0] sm:$0xff] }
  0xde   : > { %v1919_v10 = vmul.f32 %v1407_v0, %v383_v59  ;;  %v1410_v12 = vmul.f32 1.25, %v898_v8  ;;  %v899_v14 = vld [vmem:[%s3289_s29 + $0x5a0] sm:$0xff]  ;;  %v388_v15 = vld [vmem:[%s3281_s19 + $0x5a8] sm:$0xff]  ;;  %v389_v19 = vld [vmem:[%s3281_s19 + $0x5b0] sm:$0xff] }
  0xdf   : > { %2429 = vst [vmem:[%s3311_s20 + $0x570] sm:$0xff] %v1917_v4  ;;  %v1920_v16 = vmul.f32 %v1408_v5, %v384_v1  ;;  %v1411_v17 = vmul.f32 1.25, %v899_v14  ;;  %v900_v18 = vld [vmem:[%s3289_s29 + $0x5a8] sm:$0xff]  ;;  %v901_v20 = vld [vmem:[%s3289_s29 + $0x5b0] sm:$0xff]  ;;  %2430 = vst [vmem:[%s3311_s20 + $0x578] sm:$0xff] %v1918_v9  ;;  %v1921_v21 = vmul.f32 %v1409_v11, %v385_v3 }
  0xe0   : > { %2431 = vst [vmem:[%s3311_s20 + $0x580] sm:$0xff] %v1919_v10  ;;  %v1922_v22 = vmul.f32 %v1410_v12, %v386_v7  ;;  %v1412_v23 = vmul.f32 1.25, %v900_v18  ;;  %v1413_v24 = vmul.f32 1.25, %v901_v20  ;;  %v390_v25 = vld [vmem:[%s3281_s19 + $0x5b8] sm:$0xff]  ;;  %v391_v27 = vld [vmem:[%s3281_s19 + $0x5c0] sm:$0xff]  ;;  %v392_v31 = vld [vmem:[%s3281_s19 + $0x5c8] sm:$0xff] }
  0xe1   : > { %v902_v26 = vld [vmem:[%s3289_s29 + $0x5b8] sm:$0xff]  ;;  %2432 = vst [vmem:[%s3311_s20 + $0x588] sm:$0xff] %v1920_v16  ;;  %v1923_v28 = vmul.f32 %v1411_v17, %v387_v13  ;;  %v903_v30 = vld [vmem:[%s3289_s29 + $0x5c0] sm:$0xff]  ;;  %v904_v32 = vld [vmem:[%s3289_s29 + $0x5c8] sm:$0xff] }
  0xe2   : > { %v1414_v29 = vmul.f32 1.25, %v902_v26  ;;  %2433 = vst [vmem:[%s3311_s20 + $0x590] sm:$0xff] %v1921_v21  ;;  %2434 = vst [vmem:[%s3311_s20 + $0x598] sm:$0xff] %v1922_v22  ;;  %v1924_v33 = vmul.f32 %v1412_v23, %v388_v15  ;;  %v1925_v34 = vmul.f32 %v1413_v24, %v389_v19  ;;  %v1415_v35 = vmul.f32 1.25, %v903_v30  ;;  %v393_v37 = vld [vmem:[%s3281_s19 + $0x5d0] sm:$0xff]  ;;  %v394_v39 = vld [vmem:[%s3281_s19 + $0x5d8] sm:$0xff] }
  0xe3   : > { %v1416_v36 = vmul.f32 1.25, %v904_v32  ;;  %v905_v38 = vld [vmem:[%s3289_s29 + $0x5d0] sm:$0xff]  ;;  %2435 = vst [vmem:[%s3311_s20 + $0x5a0] sm:$0xff] %v1923_v28  ;;  %v906_v42 = vld [vmem:[%s3289_s29 + $0x5d8] sm:$0xff]  ;;  %v395_v43 = vld [vmem:[%s3281_s19 + $0x5e0] sm:$0xff] }
  0xe4   : > { %v1926_v40 = vmul.f32 %v1414_v29, %v390_v25  ;;  %v1417_v41 = vmul.f32 1.25, %v905_v38  ;;  %v907_v44 = vld [vmem:[%s3289_s29 + $0x5e0] sm:$0xff]  ;;  %2436 = vst [vmem:[%s3311_s20 + $0x5a8] sm:$0xff] %v1924_v33  ;;  %2437 = vst [vmem:[%s3311_s20 + $0x5b0] sm:$0xff] %v1925_v34  ;;  %v1927_v45 = vmul.f32 %v1415_v35, %v391_v27  ;;  %v1418_v47 = vmul.f32 1.25, %v906_v42  ;;  %v396_v49 = vld [vmem:[%s3281_s19 + $0x5e8] sm:$0xff] }
  0xe5   : > { %v1928_v46 = vmul.f32 %v1416_v36, %v392_v31  ;;  %v1419_v48 = vmul.f32 1.25, %v907_v44  ;;  %v908_v50 = vld [vmem:[%s3289_s29 + $0x5e8] sm:$0xff]  ;;  %v397_v51 = vld [vmem:[%s3281_s19 + $0x5f0] sm:$0xff]  ;;  %v398_v55 = vld [vmem:[%s3281_s19 + $0x5f8] sm:$0xff] }
  0xe6   : > { %2438 = vst [vmem:[%s3311_s20 + $0x5b8] sm:$0xff] %v1926_v40  ;;  %v1929_v52 = vmul.f32 %v1417_v41, %v393_v37  ;;  %v1420_v53 = vmul.f32 1.25, %v908_v50  ;;  %v909_v54 = vld [vmem:[%s3289_s29 + $0x5f0] sm:$0xff]  ;;  %v910_v56 = vld [vmem:[%s3289_s29 + $0x5f8] sm:$0xff]  ;;  %2439 = vst [vmem:[%s3311_s20 + $0x5c0] sm:$0xff] %v1927_v45  ;;  %v1930_v57 = vmul.f32 %v1418_v47, %v394_v39 }
  0xe7   : > { %2440 = vst [vmem:[%s3311_s20 + $0x5c8] sm:$0xff] %v1928_v46  ;;  %v1931_v58 = vmul.f32 %v1419_v48, %v395_v43  ;;  %v1421_v59 = vmul.f32 1.25, %v909_v54  ;;  %v1422_v60 = vmul.f32 1.25, %v910_v56  ;;  %v399_v61 = vld [vmem:[%s3281_s19 + $0x600] sm:$0xff]  ;;  %v400_v63 = vld [vmem:[%s3281_s19 + $0x608] sm:$0xff]  ;;  %v401_v3 = vld [vmem:[%s3281_s19 + $0x610] sm:$0xff] }
  0xe8   : > { %v911_v62 = vld [vmem:[%s3289_s29 + $0x600] sm:$0xff]  ;;  %2441 = vst [vmem:[%s3311_s20 + $0x5d0] sm:$0xff] %v1929_v52  ;;  %v1932_v0 = vmul.f32 %v1420_v53, %v396_v49  ;;  %v912_v2 = vld [vmem:[%s3289_s29 + $0x608] sm:$0xff]  ;;  %v913_v4 = vld [vmem:[%s3289_s29 + $0x610] sm:$0xff] }
  0xe9   : > { %v1423_v1 = vmul.f32 1.25, %v911_v62  ;;  %2442 = vst [vmem:[%s3311_s20 + $0x5d8] sm:$0xff] %v1930_v57  ;;  %2443 = vst [vmem:[%s3311_s20 + $0x5e0] sm:$0xff] %v1931_v58  ;;  %v1933_v5 = vmul.f32 %v1421_v59, %v397_v51  ;;  %v1934_v6 = vmul.f32 %v1422_v60, %v398_v55  ;;  %v1424_v7 = vmul.f32 1.25, %v912_v2  ;;  %v402_v9 = vld [vmem:[%s3281_s19 + $0x618] sm:$0xff]  ;;  %v403_v11 = vld [vmem:[%s3281_s19 + $0x620] sm:$0xff] }
  0xea   : > { %v1425_v8 = vmul.f32 1.25, %v913_v4  ;;  %v914_v10 = vld [vmem:[%s3289_s29 + $0x618] sm:$0xff]  ;;  %2444 = vst [vmem:[%s3311_s20 + $0x5e8] sm:$0xff] %v1932_v0  ;;  %v915_v14 = vld [vmem:[%s3289_s29 + $0x620] sm:$0xff]  ;;  %v404_v15 = vld [vmem:[%s3281_s19 + $0x628] sm:$0xff] }
  0xeb   : > { %v1935_v12 = vmul.f32 %v1423_v1, %v399_v61  ;;  %v1426_v13 = vmul.f32 1.25, %v914_v10  ;;  %v916_v16 = vld [vmem:[%s3289_s29 + $0x628] sm:$0xff]  ;;  %2445 = vst [vmem:[%s3311_s20 + $0x5f0] sm:$0xff] %v1933_v5  ;;  %2446 = vst [vmem:[%s3311_s20 + $0x5f8] sm:$0xff] %v1934_v6  ;;  %v1936_v17 = vmul.f32 %v1424_v7, %v400_v63  ;;  %v1427_v19 = vmul.f32 1.25, %v915_v14  ;;  %v405_v21 = vld [vmem:[%s3281_s19 + $0x630] sm:$0xff] }
  0xec   : > { %v1937_v18 = vmul.f32 %v1425_v8, %v401_v3  ;;  %v1428_v20 = vmul.f32 1.25, %v916_v16  ;;  %v917_v22 = vld [vmem:[%s3289_s29 + $0x630] sm:$0xff]  ;;  %v406_v23 = vld [vmem:[%s3281_s19 + $0x638] sm:$0xff]  ;;  %v407_v27 = vld [vmem:[%s3281_s19 + $0x640] sm:$0xff] }
  0xed   : > { %2447 = vst [vmem:[%s3311_s20 + $0x600] sm:$0xff] %v1935_v12  ;;  %v1938_v24 = vmul.f32 %v1426_v13, %v402_v9  ;;  %v1429_v25 = vmul.f32 1.25, %v917_v22  ;;  %v918_v26 = vld [vmem:[%s3289_s29 + $0x638] sm:$0xff]  ;;  %v919_v28 = vld [vmem:[%s3289_s29 + $0x640] sm:$0xff]  ;;  %2448 = vst [vmem:[%s3311_s20 + $0x608] sm:$0xff] %v1936_v17  ;;  %v1939_v29 = vmul.f32 %v1427_v19, %v403_v11 }
  0xee   : > { %2449 = vst [vmem:[%s3311_s20 + $0x610] sm:$0xff] %v1937_v18  ;;  %v1940_v30 = vmul.f32 %v1428_v20, %v404_v15  ;;  %v1430_v31 = vmul.f32 1.25, %v918_v26  ;;  %v1431_v32 = vmul.f32 1.25, %v919_v28  ;;  %v408_v33 = vld [vmem:[%s3281_s19 + $0x648] sm:$0xff]  ;;  %v409_v35 = vld [vmem:[%s3281_s19 + $0x650] sm:$0xff]  ;;  %v410_v39 = vld [vmem:[%s3281_s19 + $0x658] sm:$0xff] }
  0xef   : > { %v920_v34 = vld [vmem:[%s3289_s29 + $0x648] sm:$0xff]  ;;  %2450 = vst [vmem:[%s3311_s20 + $0x618] sm:$0xff] %v1938_v24  ;;  %v1941_v36 = vmul.f32 %v1429_v25, %v405_v21  ;;  %v921_v38 = vld [vmem:[%s3289_s29 + $0x650] sm:$0xff]  ;;  %v922_v40 = vld [vmem:[%s3289_s29 + $0x658] sm:$0xff] }
  0xf0   : > { %v1432_v37 = vmul.f32 1.25, %v920_v34  ;;  %2451 = vst [vmem:[%s3311_s20 + $0x620] sm:$0xff] %v1939_v29  ;;  %2452 = vst [vmem:[%s3311_s20 + $0x628] sm:$0xff] %v1940_v30  ;;  %v1942_v41 = vmul.f32 %v1430_v31, %v406_v23  ;;  %v1943_v42 = vmul.f32 %v1431_v32, %v407_v27  ;;  %v1433_v43 = vmul.f32 1.25, %v921_v38  ;;  %v411_v45 = vld [vmem:[%s3281_s19 + $0x660] sm:$0xff]  ;;  %v412_v47 = vld [vmem:[%s3281_s19 + $0x668] sm:$0xff] }
  0xf1   : > { %v1434_v44 = vmul.f32 1.25, %v922_v40  ;;  %v923_v46 = vld [vmem:[%s3289_s29 + $0x660] sm:$0xff]  ;;  %2453 = vst [vmem:[%s3311_s20 + $0x630] sm:$0xff] %v1941_v36  ;;  %v924_v50 = vld [vmem:[%s3289_s29 + $0x668] sm:$0xff]  ;;  %v413_v51 = vld [vmem:[%s3281_s19 + $0x670] sm:$0xff] }
  0xf2   : > { %v1944_v48 = vmul.f32 %v1432_v37, %v408_v33  ;;  %v1435_v49 = vmul.f32 1.25, %v923_v46  ;;  %v925_v52 = vld [vmem:[%s3289_s29 + $0x670] sm:$0xff]  ;;  %2454 = vst [vmem:[%s3311_s20 + $0x638] sm:$0xff] %v1942_v41  ;;  %2455 = vst [vmem:[%s3311_s20 + $0x640] sm:$0xff] %v1943_v42  ;;  %v1945_v53 = vmul.f32 %v1433_v43, %v409_v35  ;;  %v1436_v55 = vmul.f32 1.25, %v924_v50  ;;  %v414_v57 = vld [vmem:[%s3281_s19 + $0x678] sm:$0xff] }
  0xf3   : > { %v1946_v54 = vmul.f32 %v1434_v44, %v410_v39  ;;  %v1437_v56 = vmul.f32 1.25, %v925_v52  ;;  %v926_v58 = vld [vmem:[%s3289_s29 + $0x678] sm:$0xff]  ;;  %v415_v59 = vld [vmem:[%s3281_s19 + $0x680] sm:$0xff]  ;;  %v416_v63 = vld [vmem:[%s3281_s19 + $0x688] sm:$0xff] }
  0xf4   : > { %2456 = vst [vmem:[%s3311_s20 + $0x648] sm:$0xff] %v1944_v48  ;;  %v1947_v60 = vmul.f32 %v1435_v49, %v411_v45  ;;  %v1438_v61 = vmul.f32 1.25, %v926_v58  ;;  %v927_v62 = vld [vmem:[%s3289_s29 + $0x680] sm:$0xff]  ;;  %v928_v0 = vld [vmem:[%s3289_s29 + $0x688] sm:$0xff]  ;;  %2457 = vst [vmem:[%s3311_s20 + $0x650] sm:$0xff] %v1945_v53  ;;  %v1948_v1 = vmul.f32 %v1436_v55, %v412_v47 }
  0xf5   : > { %2458 = vst [vmem:[%s3311_s20 + $0x658] sm:$0xff] %v1946_v54  ;;  %v1949_v2 = vmul.f32 %v1437_v56, %v413_v51  ;;  %v1439_v3 = vmul.f32 1.25, %v927_v62  ;;  %v1440_v4 = vmul.f32 1.25, %v928_v0  ;;  %v417_v5 = vld [vmem:[%s3281_s19 + $0x690] sm:$0xff]  ;;  %v418_v7 = vld [vmem:[%s3281_s19 + $0x698] sm:$0xff]  ;;  %v419_v11 = vld [vmem:[%s3281_s19 + $0x6a0] sm:$0xff] }
  0xf6   : > { %v929_v6 = vld [vmem:[%s3289_s29 + $0x690] sm:$0xff]  ;;  %2459 = vst [vmem:[%s3311_s20 + $0x660] sm:$0xff] %v1947_v60  ;;  %v1950_v8 = vmul.f32 %v1438_v61, %v414_v57  ;;  %v930_v10 = vld [vmem:[%s3289_s29 + $0x698] sm:$0xff]  ;;  %v931_v12 = vld [vmem:[%s3289_s29 + $0x6a0] sm:$0xff] }
  0xf7   : > { %v1441_v9 = vmul.f32 1.25, %v929_v6  ;;  %2460 = vst [vmem:[%s3311_s20 + $0x668] sm:$0xff] %v1948_v1  ;;  %2461 = vst [vmem:[%s3311_s20 + $0x670] sm:$0xff] %v1949_v2  ;;  %v1951_v13 = vmul.f32 %v1439_v3, %v415_v59  ;;  %v1952_v14 = vmul.f32 %v1440_v4, %v416_v63  ;;  %v1442_v15 = vmul.f32 1.25, %v930_v10  ;;  %v420_v17 = vld [vmem:[%s3281_s19 + $0x6a8] sm:$0xff]  ;;  %v421_v19 = vld [vmem:[%s3281_s19 + $0x6b0] sm:$0xff] }
  0xf8   : > { %v1443_v16 = vmul.f32 1.25, %v931_v12  ;;  %v932_v18 = vld [vmem:[%s3289_s29 + $0x6a8] sm:$0xff]  ;;  %2462 = vst [vmem:[%s3311_s20 + $0x678] sm:$0xff] %v1950_v8  ;;  %v933_v22 = vld [vmem:[%s3289_s29 + $0x6b0] sm:$0xff]  ;;  %v422_v23 = vld [vmem:[%s3281_s19 + $0x6b8] sm:$0xff] }
  0xf9   : > { %v1953_v20 = vmul.f32 %v1441_v9, %v417_v5  ;;  %v1444_v21 = vmul.f32 1.25, %v932_v18  ;;  %v934_v24 = vld [vmem:[%s3289_s29 + $0x6b8] sm:$0xff]  ;;  %2463 = vst [vmem:[%s3311_s20 + $0x680] sm:$0xff] %v1951_v13  ;;  %2464 = vst [vmem:[%s3311_s20 + $0x688] sm:$0xff] %v1952_v14  ;;  %v1954_v25 = vmul.f32 %v1442_v15, %v418_v7  ;;  %v1445_v27 = vmul.f32 1.25, %v933_v22  ;;  %v423_v29 = vld [vmem:[%s3281_s19 + $0x6c0] sm:$0xff] }
  0xfa   : > { %v1955_v26 = vmul.f32 %v1443_v16, %v419_v11  ;;  %v1446_v28 = vmul.f32 1.25, %v934_v24  ;;  %v935_v30 = vld [vmem:[%s3289_s29 + $0x6c0] sm:$0xff]  ;;  %v424_v31 = vld [vmem:[%s3281_s19 + $0x6c8] sm:$0xff]  ;;  %v425_v35 = vld [vmem:[%s3281_s19 + $0x6d0] sm:$0xff] }
  0xfb   : > { %2465 = vst [vmem:[%s3311_s20 + $0x690] sm:$0xff] %v1953_v20  ;;  %v1956_v32 = vmul.f32 %v1444_v21, %v420_v17  ;;  %v1447_v33 = vmul.f32 1.25, %v935_v30  ;;  %v936_v34 = vld [vmem:[%s3289_s29 + $0x6c8] sm:$0xff]  ;;  %v937_v36 = vld [vmem:[%s3289_s29 + $0x6d0] sm:$0xff]  ;;  %2466 = vst [vmem:[%s3311_s20 + $0x698] sm:$0xff] %v1954_v25  ;;  %v1957_v37 = vmul.f32 %v1445_v27, %v421_v19 }
  0xfc   : > { %2467 = vst [vmem:[%s3311_s20 + $0x6a0] sm:$0xff] %v1955_v26  ;;  %v1958_v38 = vmul.f32 %v1446_v28, %v422_v23  ;;  %v1448_v39 = vmul.f32 1.25, %v936_v34  ;;  %v1449_v40 = vmul.f32 1.25, %v937_v36  ;;  %v426_v41 = vld [vmem:[%s3281_s19 + $0x6d8] sm:$0xff]  ;;  %v427_v43 = vld [vmem:[%s3281_s19 + $0x6e0] sm:$0xff]  ;;  %v428_v47 = vld [vmem:[%s3281_s19 + $0x6e8] sm:$0xff] }
  0xfd   : > { %v938_v42 = vld [vmem:[%s3289_s29 + $0x6d8] sm:$0xff]  ;;  %2468 = vst [vmem:[%s3311_s20 + $0x6a8] sm:$0xff] %v1956_v32  ;;  %v1959_v44 = vmul.f32 %v1447_v33, %v423_v29  ;;  %v939_v46 = vld [vmem:[%s3289_s29 + $0x6e0] sm:$0xff]  ;;  %v940_v48 = vld [vmem:[%s3289_s29 + $0x6e8] sm:$0xff] }
  0xfe   : > { %v1450_v45 = vmul.f32 1.25, %v938_v42  ;;  %2469 = vst [vmem:[%s3311_s20 + $0x6b0] sm:$0xff] %v1957_v37  ;;  %2470 = vst [vmem:[%s3311_s20 + $0x6b8] sm:$0xff] %v1958_v38  ;;  %v1960_v49 = vmul.f32 %v1448_v39, %v424_v31  ;;  %v1961_v50 = vmul.f32 %v1449_v40, %v425_v35  ;;  %v1451_v51 = vmul.f32 1.25, %v939_v46  ;;  %v429_v53 = vld [vmem:[%s3281_s19 + $0x6f0] sm:$0xff]  ;;  %v430_v55 = vld [vmem:[%s3281_s19 + $0x6f8] sm:$0xff] }
  0xff   : > { %v1452_v52 = vmul.f32 1.25, %v940_v48  ;;  %v941_v54 = vld [vmem:[%s3289_s29 + $0x6f0] sm:$0xff]  ;;  %2471 = vst [vmem:[%s3311_s20 + $0x6c0] sm:$0xff] %v1959_v44  ;;  %v942_v58 = vld [vmem:[%s3289_s29 + $0x6f8] sm:$0xff]  ;;  %v431_v59 = vld [vmem:[%s3281_s19 + $0x700] sm:$0xff] }
 0x100   : > { %v1962_v56 = vmul.f32 %v1450_v45, %v426_v41  ;;  %v1453_v57 = vmul.f32 1.25, %v941_v54  ;;  %v943_v60 = vld [vmem:[%s3289_s29 + $0x700] sm:$0xff]  ;;  %2472 = vst [vmem:[%s3311_s20 + $0x6c8] sm:$0xff] %v1960_v49  ;;  %2473 = vst [vmem:[%s3311_s20 + $0x6d0] sm:$0xff] %v1961_v50  ;;  %v1963_v61 = vmul.f32 %v1451_v51, %v427_v43  ;;  %v1454_v63 = vmul.f32 1.25, %v942_v58  ;;  %v432_v1 = vld [vmem:[%s3281_s19 + $0x708] sm:$0xff] }
 0x101   : > { %v1964_v62 = vmul.f32 %v1452_v52, %v428_v47  ;;  %v1455_v0 = vmul.f32 1.25, %v943_v60  ;;  %v944_v2 = vld [vmem:[%s3289_s29 + $0x708] sm:$0xff]  ;;  %v433_v3 = vld [vmem:[%s3281_s19 + $0x710] sm:$0xff]  ;;  %v434_v7 = vld [vmem:[%s3281_s19 + $0x718] sm:$0xff] }
 0x102   : > { %2474 = vst [vmem:[%s3311_s20 + $0x6d8] sm:$0xff] %v1962_v56  ;;  %v1965_v4 = vmul.f32 %v1453_v57, %v429_v53  ;;  %v1456_v5 = vmul.f32 1.25, %v944_v2  ;;  %v945_v6 = vld [vmem:[%s3289_s29 + $0x710] sm:$0xff]  ;;  %v946_v8 = vld [vmem:[%s3289_s29 + $0x718] sm:$0xff]  ;;  %2475 = vst [vmem:[%s3311_s20 + $0x6e0] sm:$0xff] %v1963_v61  ;;  %v1966_v9 = vmul.f32 %v1454_v63, %v430_v55 }
 0x103   : > { %2476 = vst [vmem:[%s3311_s20 + $0x6e8] sm:$0xff] %v1964_v62  ;;  %v1967_v10 = vmul.f32 %v1455_v0, %v431_v59  ;;  %v1457_v11 = vmul.f32 1.25, %v945_v6  ;;  %v1458_v12 = vmul.f32 1.25, %v946_v8  ;;  %v435_v13 = vld [vmem:[%s3281_s19 + $0x720] sm:$0xff]  ;;  %v436_v15 = vld [vmem:[%s3281_s19 + $0x728] sm:$0xff]  ;;  %v437_v19 = vld [vmem:[%s3281_s19 + $0x730] sm:$0xff] }
 0x104   : > { %v947_v14 = vld [vmem:[%s3289_s29 + $0x720] sm:$0xff]  ;;  %2477 = vst [vmem:[%s3311_s20 + $0x6f0] sm:$0xff] %v1965_v4  ;;  %v1968_v16 = vmul.f32 %v1456_v5, %v432_v1  ;;  %v948_v18 = vld [vmem:[%s3289_s29 + $0x728] sm:$0xff]  ;;  %v949_v20 = vld [vmem:[%s3289_s29 + $0x730] sm:$0xff] }
 0x105   : > { %v1459_v17 = vmul.f32 1.25, %v947_v14  ;;  %2478 = vst [vmem:[%s3311_s20 + $0x6f8] sm:$0xff] %v1966_v9  ;;  %2479 = vst [vmem:[%s3311_s20 + $0x700] sm:$0xff] %v1967_v10  ;;  %v1969_v21 = vmul.f32 %v1457_v11, %v433_v3  ;;  %v1970_v22 = vmul.f32 %v1458_v12, %v434_v7  ;;  %v1460_v23 = vmul.f32 1.25, %v948_v18  ;;  %v438_v25 = vld [vmem:[%s3281_s19 + $0x738] sm:$0xff]  ;;  %v439_v27 = vld [vmem:[%s3281_s19 + $0x740] sm:$0xff] }
 0x106   : > { %v1461_v24 = vmul.f32 1.25, %v949_v20  ;;  %v950_v26 = vld [vmem:[%s3289_s29 + $0x738] sm:$0xff]  ;;  %2480 = vst [vmem:[%s3311_s20 + $0x708] sm:$0xff] %v1968_v16  ;;  %v951_v30 = vld [vmem:[%s3289_s29 + $0x740] sm:$0xff]  ;;  %v440_v31 = vld [vmem:[%s3281_s19 + $0x748] sm:$0xff] }
 0x107   : > { %v1971_v28 = vmul.f32 %v1459_v17, %v435_v13  ;;  %v1462_v29 = vmul.f32 1.25, %v950_v26  ;;  %v952_v32 = vld [vmem:[%s3289_s29 + $0x748] sm:$0xff]  ;;  %2481 = vst [vmem:[%s3311_s20 + $0x710] sm:$0xff] %v1969_v21  ;;  %2482 = vst [vmem:[%s3311_s20 + $0x718] sm:$0xff] %v1970_v22  ;;  %v1972_v33 = vmul.f32 %v1460_v23, %v436_v15  ;;  %v1463_v35 = vmul.f32 1.25, %v951_v30  ;;  %v441_v37 = vld [vmem:[%s3281_s19 + $0x750] sm:$0xff] }
 0x108   : > { %v1973_v34 = vmul.f32 %v1461_v24, %v437_v19  ;;  %v1464_v36 = vmul.f32 1.25, %v952_v32  ;;  %v953_v38 = vld [vmem:[%s3289_s29 + $0x750] sm:$0xff]  ;;  %v442_v39 = vld [vmem:[%s3281_s19 + $0x758] sm:$0xff]  ;;  %v443_v43 = vld [vmem:[%s3281_s19 + $0x760] sm:$0xff] }
 0x109   : > { %2483 = vst [vmem:[%s3311_s20 + $0x720] sm:$0xff] %v1971_v28  ;;  %v1974_v40 = vmul.f32 %v1462_v29, %v438_v25  ;;  %v1465_v41 = vmul.f32 1.25, %v953_v38  ;;  %v954_v42 = vld [vmem:[%s3289_s29 + $0x758] sm:$0xff]  ;;  %v955_v44 = vld [vmem:[%s3289_s29 + $0x760] sm:$0xff]  ;;  %2484 = vst [vmem:[%s3311_s20 + $0x728] sm:$0xff] %v1972_v33  ;;  %v1975_v45 = vmul.f32 %v1463_v35, %v439_v27 }
 0x10a   : > { %2485 = vst [vmem:[%s3311_s20 + $0x730] sm:$0xff] %v1973_v34  ;;  %v1976_v46 = vmul.f32 %v1464_v36, %v440_v31  ;;  %v1466_v47 = vmul.f32 1.25, %v954_v42  ;;  %v1467_v48 = vmul.f32 1.25, %v955_v44  ;;  %v444_v49 = vld [vmem:[%s3281_s19 + $0x768] sm:$0xff]  ;;  %v445_v51 = vld [vmem:[%s3281_s19 + $0x770] sm:$0xff]  ;;  %v446_v55 = vld [vmem:[%s3281_s19 + $0x778] sm:$0xff] }
 0x10b   : > { %v956_v50 = vld [vmem:[%s3289_s29 + $0x768] sm:$0xff]  ;;  %2486 = vst [vmem:[%s3311_s20 + $0x738] sm:$0xff] %v1974_v40  ;;  %v1977_v52 = vmul.f32 %v1465_v41, %v441_v37  ;;  %v957_v54 = vld [vmem:[%s3289_s29 + $0x770] sm:$0xff]  ;;  %v958_v56 = vld [vmem:[%s3289_s29 + $0x778] sm:$0xff] }
 0x10c   : > { %v1468_v53 = vmul.f32 1.25, %v956_v50  ;;  %2487 = vst [vmem:[%s3311_s20 + $0x740] sm:$0xff] %v1975_v45  ;;  %2488 = vst [vmem:[%s3311_s20 + $0x748] sm:$0xff] %v1976_v46  ;;  %v1978_v57 = vmul.f32 %v1466_v47, %v442_v39  ;;  %v1979_v58 = vmul.f32 %v1467_v48, %v443_v43  ;;  %v1469_v59 = vmul.f32 1.25, %v957_v54  ;;  %v447_v61 = vld [vmem:[%s3281_s19 + $0x780] sm:$0xff]  ;;  %v448_v63 = vld [vmem:[%s3281_s19 + $0x788] sm:$0xff] }
 0x10d   : > { %v1470_v60 = vmul.f32 1.25, %v958_v56  ;;  %v959_v62 = vld [vmem:[%s3289_s29 + $0x780] sm:$0xff]  ;;  %2489 = vst [vmem:[%s3311_s20 + $0x750] sm:$0xff] %v1977_v52  ;;  %v960_v2 = vld [vmem:[%s3289_s29 + $0x788] sm:$0xff]  ;;  %v449_v3 = vld [vmem:[%s3281_s19 + $0x790] sm:$0xff] }
 0x10e   : > { %v1980_v0 = vmul.f32 %v1468_v53, %v444_v49  ;;  %v1471_v1 = vmul.f32 1.25, %v959_v62  ;;  %v961_v4 = vld [vmem:[%s3289_s29 + $0x790] sm:$0xff]  ;;  %2490 = vst [vmem:[%s3311_s20 + $0x758] sm:$0xff] %v1978_v57  ;;  %2491 = vst [vmem:[%s3311_s20 + $0x760] sm:$0xff] %v1979_v58  ;;  %v1981_v5 = vmul.f32 %v1469_v59, %v445_v51  ;;  %v1472_v7 = vmul.f32 1.25, %v960_v2  ;;  %v450_v9 = vld [vmem:[%s3281_s19 + $0x798] sm:$0xff] }
 0x10f   : > { %v1982_v6 = vmul.f32 %v1470_v60, %v446_v55  ;;  %v1473_v8 = vmul.f32 1.25, %v961_v4  ;;  %v962_v10 = vld [vmem:[%s3289_s29 + $0x798] sm:$0xff]  ;;  %v451_v11 = vld [vmem:[%s3281_s19 + $0x7a0] sm:$0xff]  ;;  %v452_v15 = vld [vmem:[%s3281_s19 + $0x7a8] sm:$0xff] }
 0x110   : > { %2492 = vst [vmem:[%s3311_s20 + $0x768] sm:$0xff] %v1980_v0  ;;  %v1983_v12 = vmul.f32 %v1471_v1, %v447_v61  ;;  %v1474_v13 = vmul.f32 1.25, %v962_v10  ;;  %v963_v14 = vld [vmem:[%s3289_s29 + $0x7a0] sm:$0xff]  ;;  %v964_v16 = vld [vmem:[%s3289_s29 + $0x7a8] sm:$0xff]  ;;  %2493 = vst [vmem:[%s3311_s20 + $0x770] sm:$0xff] %v1981_v5  ;;  %v1984_v17 = vmul.f32 %v1472_v7, %v448_v63 }
 0x111   : > { %2494 = vst [vmem:[%s3311_s20 + $0x778] sm:$0xff] %v1982_v6  ;;  %v1985_v18 = vmul.f32 %v1473_v8, %v449_v3  ;;  %v1475_v19 = vmul.f32 1.25, %v963_v14  ;;  %v1476_v20 = vmul.f32 1.25, %v964_v16  ;;  %v453_v21 = vld [vmem:[%s3281_s19 + $0x7b0] sm:$0xff]  ;;  %v454_v23 = vld [vmem:[%s3281_s19 + $0x7b8] sm:$0xff]  ;;  %v455_v27 = vld [vmem:[%s3281_s19 + $0x7c0] sm:$0xff] }
 0x112   : > { %v965_v22 = vld [vmem:[%s3289_s29 + $0x7b0] sm:$0xff]  ;;  %2495 = vst [vmem:[%s3311_s20 + $0x780] sm:$0xff] %v1983_v12  ;;  %v1986_v24 = vmul.f32 %v1474_v13, %v450_v9  ;;  %v966_v26 = vld [vmem:[%s3289_s29 + $0x7b8] sm:$0xff]  ;;  %v967_v28 = vld [vmem:[%s3289_s29 + $0x7c0] sm:$0xff] }
 0x113   : > { %v1477_v25 = vmul.f32 1.25, %v965_v22  ;;  %2496 = vst [vmem:[%s3311_s20 + $0x788] sm:$0xff] %v1984_v17  ;;  %2497 = vst [vmem:[%s3311_s20 + $0x790] sm:$0xff] %v1985_v18  ;;  %v1987_v29 = vmul.f32 %v1475_v19, %v451_v11  ;;  %v1988_v30 = vmul.f32 %v1476_v20, %v452_v15  ;;  %v1478_v31 = vmul.f32 1.25, %v966_v26  ;;  %v456_v33 = vld [vmem:[%s3281_s19 + $0x7c8] sm:$0xff]  ;;  %v457_v35 = vld [vmem:[%s3281_s19 + $0x7d0] sm:$0xff] }
 0x114   : > { %v1479_v32 = vmul.f32 1.25, %v967_v28  ;;  %v968_v34 = vld [vmem:[%s3289_s29 + $0x7c8] sm:$0xff]  ;;  %2498 = vst [vmem:[%s3311_s20 + $0x798] sm:$0xff] %v1986_v24  ;;  %v969_v38 = vld [vmem:[%s3289_s29 + $0x7d0] sm:$0xff]  ;;  %v458_v39 = vld [vmem:[%s3281_s19 + $0x7d8] sm:$0xff] }
 0x115   : > { %v1989_v36 = vmul.f32 %v1477_v25, %v453_v21  ;;  %v1480_v37 = vmul.f32 1.25, %v968_v34  ;;  %v970_v40 = vld [vmem:[%s3289_s29 + $0x7d8] sm:$0xff]  ;;  %2499 = vst [vmem:[%s3311_s20 + $0x7a0] sm:$0xff] %v1987_v29  ;;  %2500 = vst [vmem:[%s3311_s20 + $0x7a8] sm:$0xff] %v1988_v30  ;;  %v1990_v41 = vmul.f32 %v1478_v31, %v454_v23  ;;  %v1481_v43 = vmul.f32 1.25, %v969_v38  ;;  %v459_v45 = vld [vmem:[%s3281_s19 + $0x7e0] sm:$0xff] }
 0x116   : > { %v1991_v42 = vmul.f32 %v1479_v32, %v455_v27  ;;  %v1482_v44 = vmul.f32 1.25, %v970_v40  ;;  %v971_v46 = vld [vmem:[%s3289_s29 + $0x7e0] sm:$0xff]  ;;  %v460_v47 = vld [vmem:[%s3281_s19 + $0x7e8] sm:$0xff]  ;;  %v461_v51 = vld [vmem:[%s3281_s19 + $0x7f0] sm:$0xff] }
 0x117   : > { %2501 = vst [vmem:[%s3311_s20 + $0x7b0] sm:$0xff] %v1989_v36  ;;  %v1992_v48 = vmul.f32 %v1480_v37, %v456_v33  ;;  %v1483_v49 = vmul.f32 1.25, %v971_v46  ;;  %v972_v50 = vld [vmem:[%s3289_s29 + $0x7e8] sm:$0xff]  ;;  %v973_v52 = vld [vmem:[%s3289_s29 + $0x7f0] sm:$0xff]  ;;  %2502 = vst [vmem:[%s3311_s20 + $0x7b8] sm:$0xff] %v1990_v41  ;;  %v1993_v53 = vmul.f32 %v1481_v43, %v457_v35 }
 0x118   : > { %2503 = vst [vmem:[%s3311_s20 + $0x7c0] sm:$0xff] %v1991_v42  ;;  %v1994_v54 = vmul.f32 %v1482_v44, %v458_v39  ;;  %v1484_v55 = vmul.f32 1.25, %v972_v50  ;;  %v1485_v56 = vmul.f32 1.25, %v973_v52  ;;  %v462_v57 = vld [vmem:[%s3281_s19 + $0x7f8] sm:$0xff]  ;;  %v463_v59 = vld [vmem:[%s3281_s19 + $0x800] sm:$0xff]  ;;  %v464_v63 = vld [vmem:[%s3281_s19 + $0x808] sm:$0xff] }
 0x119   : > { %v974_v58 = vld [vmem:[%s3289_s29 + $0x7f8] sm:$0xff]  ;;  %2504 = vst [vmem:[%s3311_s20 + $0x7c8] sm:$0xff] %v1992_v48  ;;  %v1995_v60 = vmul.f32 %v1483_v49, %v459_v45  ;;  %v975_v62 = vld [vmem:[%s3289_s29 + $0x800] sm:$0xff]  ;;  %v976_v0 = vld [vmem:[%s3289_s29 + $0x808] sm:$0xff] }
 0x11a   : > { %v1486_v61 = vmul.f32 1.25, %v974_v58  ;;  %2505 = vst [vmem:[%s3311_s20 + $0x7d0] sm:$0xff] %v1993_v53  ;;  %2506 = vst [vmem:[%s3311_s20 + $0x7d8] sm:$0xff] %v1994_v54  ;;  %v1996_v1 = vmul.f32 %v1484_v55, %v460_v47  ;;  %v1997_v2 = vmul.f32 %v1485_v56, %v461_v51  ;;  %v1487_v3 = vmul.f32 1.25, %v975_v62  ;;  %v465_v5 = vld [vmem:[%s3281_s19 + $0x810] sm:$0xff]  ;;  %v466_v7 = vld [vmem:[%s3281_s19 + $0x818] sm:$0xff] }
 0x11b   : > { %v1488_v4 = vmul.f32 1.25, %v976_v0  ;;  %v977_v6 = vld [vmem:[%s3289_s29 + $0x810] sm:$0xff]  ;;  %2507 = vst [vmem:[%s3311_s20 + $0x7e0] sm:$0xff] %v1995_v60  ;;  %v978_v10 = vld [vmem:[%s3289_s29 + $0x818] sm:$0xff]  ;;  %v467_v11 = vld [vmem:[%s3281_s19 + $0x820] sm:$0xff] }
 0x11c   : > { %v1998_v8 = vmul.f32 %v1486_v61, %v462_v57  ;;  %v1489_v9 = vmul.f32 1.25, %v977_v6  ;;  %v979_v12 = vld [vmem:[%s3289_s29 + $0x820] sm:$0xff]  ;;  %2508 = vst [vmem:[%s3311_s20 + $0x7e8] sm:$0xff] %v1996_v1  ;;  %2509 = vst [vmem:[%s3311_s20 + $0x7f0] sm:$0xff] %v1997_v2  ;;  %v1999_v13 = vmul.f32 %v1487_v3, %v463_v59  ;;  %v1490_v15 = vmul.f32 1.25, %v978_v10  ;;  %v468_v17 = vld [vmem:[%s3281_s19 + $0x828] sm:$0xff] }
 0x11d   : > { %v2000_v14 = vmul.f32 %v1488_v4, %v464_v63  ;;  %v1491_v16 = vmul.f32 1.25, %v979_v12  ;;  %v980_v18 = vld [vmem:[%s3289_s29 + $0x828] sm:$0xff]  ;;  %v469_v19 = vld [vmem:[%s3281_s19 + $0x830] sm:$0xff]  ;;  %v470_v23 = vld [vmem:[%s3281_s19 + $0x838] sm:$0xff] }
 0x11e   : > { %2510 = vst [vmem:[%s3311_s20 + $0x7f8] sm:$0xff] %v1998_v8  ;;  %v2001_v20 = vmul.f32 %v1489_v9, %v465_v5  ;;  %v1492_v21 = vmul.f32 1.25, %v980_v18  ;;  %v981_v22 = vld [vmem:[%s3289_s29 + $0x830] sm:$0xff]  ;;  %v982_v24 = vld [vmem:[%s3289_s29 + $0x838] sm:$0xff]  ;;  %2511 = vst [vmem:[%s3311_s20 + $0x800] sm:$0xff] %v1999_v13  ;;  %v2002_v25 = vmul.f32 %v1490_v15, %v466_v7 }
 0x11f   : > { %2512 = vst [vmem:[%s3311_s20 + $0x808] sm:$0xff] %v2000_v14  ;;  %v2003_v26 = vmul.f32 %v1491_v16, %v467_v11  ;;  %v1493_v27 = vmul.f32 1.25, %v981_v22  ;;  %v1494_v28 = vmul.f32 1.25, %v982_v24  ;;  %v471_v29 = vld [vmem:[%s3281_s19 + $0x840] sm:$0xff]  ;;  %v472_v31 = vld [vmem:[%s3281_s19 + $0x848] sm:$0xff]  ;;  %v473_v35 = vld [vmem:[%s3281_s19 + $0x850] sm:$0xff] }
 0x120   : > { %v983_v30 = vld [vmem:[%s3289_s29 + $0x840] sm:$0xff]  ;;  %2513 = vst [vmem:[%s3311_s20 + $0x810] sm:$0xff] %v2001_v20  ;;  %v2004_v32 = vmul.f32 %v1492_v21, %v468_v17  ;;  %v984_v34 = vld [vmem:[%s3289_s29 + $0x848] sm:$0xff]  ;;  %v985_v36 = vld [vmem:[%s3289_s29 + $0x850] sm:$0xff] }
 0x121   : > { %v1495_v33 = vmul.f32 1.25, %v983_v30  ;;  %2514 = vst [vmem:[%s3311_s20 + $0x818] sm:$0xff] %v2002_v25  ;;  %2515 = vst [vmem:[%s3311_s20 + $0x820] sm:$0xff] %v2003_v26  ;;  %v2005_v37 = vmul.f32 %v1493_v27, %v469_v19  ;;  %v2006_v38 = vmul.f32 %v1494_v28, %v470_v23  ;;  %v1496_v39 = vmul.f32 1.25, %v984_v34  ;;  %v474_v41 = vld [vmem:[%s3281_s19 + $0x858] sm:$0xff]  ;;  %v475_v43 = vld [vmem:[%s3281_s19 + $0x860] sm:$0xff] }
 0x122   : > { %v1497_v40 = vmul.f32 1.25, %v985_v36  ;;  %v986_v42 = vld [vmem:[%s3289_s29 + $0x858] sm:$0xff]  ;;  %2516 = vst [vmem:[%s3311_s20 + $0x828] sm:$0xff] %v2004_v32  ;;  %v987_v46 = vld [vmem:[%s3289_s29 + $0x860] sm:$0xff]  ;;  %v476_v47 = vld [vmem:[%s3281_s19 + $0x868] sm:$0xff] }
 0x123   : > { %v2007_v44 = vmul.f32 %v1495_v33, %v471_v29  ;;  %v1498_v45 = vmul.f32 1.25, %v986_v42  ;;  %v988_v48 = vld [vmem:[%s3289_s29 + $0x868] sm:$0xff]  ;;  %2517 = vst [vmem:[%s3311_s20 + $0x830] sm:$0xff] %v2005_v37  ;;  %2518 = vst [vmem:[%s3311_s20 + $0x838] sm:$0xff] %v2006_v38  ;;  %v2008_v49 = vmul.f32 %v1496_v39, %v472_v31  ;;  %v1499_v51 = vmul.f32 1.25, %v987_v46  ;;  %v477_v53 = vld [vmem:[%s3281_s19 + $0x870] sm:$0xff] }
 0x124   : > { %v2009_v50 = vmul.f32 %v1497_v40, %v473_v35  ;;  %v1500_v52 = vmul.f32 1.25, %v988_v48  ;;  %v989_v54 = vld [vmem:[%s3289_s29 + $0x870] sm:$0xff]  ;;  %v478_v55 = vld [vmem:[%s3281_s19 + $0x878] sm:$0xff]  ;;  %v479_v59 = vld [vmem:[%s3281_s19 + $0x880] sm:$0xff] }
 0x125   : > { %2519 = vst [vmem:[%s3311_s20 + $0x840] sm:$0xff] %v2007_v44  ;;  %v2010_v56 = vmul.f32 %v1498_v45, %v474_v41  ;;  %v1501_v57 = vmul.f32 1.25, %v989_v54  ;;  %v990_v58 = vld [vmem:[%s3289_s29 + $0x878] sm:$0xff]  ;;  %v991_v60 = vld [vmem:[%s3289_s29 + $0x880] sm:$0xff]  ;;  %2520 = vst [vmem:[%s3311_s20 + $0x848] sm:$0xff] %v2008_v49  ;;  %v2011_v61 = vmul.f32 %v1499_v51, %v475_v43 }
 0x126   : > { %2521 = vst [vmem:[%s3311_s20 + $0x850] sm:$0xff] %v2009_v50  ;;  %v2012_v62 = vmul.f32 %v1500_v52, %v476_v47  ;;  %v1502_v63 = vmul.f32 1.25, %v990_v58  ;;  %v1503_v0 = vmul.f32 1.25, %v991_v60  ;;  %v480_v1 = vld [vmem:[%s3281_s19 + $0x888] sm:$0xff]  ;;  %v481_v3 = vld [vmem:[%s3281_s19 + $0x890] sm:$0xff]  ;;  %v482_v7 = vld [vmem:[%s3281_s19 + $0x898] sm:$0xff] }
 0x127   : > { %v992_v2 = vld [vmem:[%s3289_s29 + $0x888] sm:$0xff]  ;;  %2522 = vst [vmem:[%s3311_s20 + $0x858] sm:$0xff] %v2010_v56  ;;  %v2013_v4 = vmul.f32 %v1501_v57, %v477_v53  ;;  %v993_v6 = vld [vmem:[%s3289_s29 + $0x890] sm:$0xff]  ;;  %v994_v8 = vld [vmem:[%s3289_s29 + $0x898] sm:$0xff] }
 0x128   : > { %v1504_v5 = vmul.f32 1.25, %v992_v2  ;;  %2523 = vst [vmem:[%s3311_s20 + $0x860] sm:$0xff] %v2011_v61  ;;  %2524 = vst [vmem:[%s3311_s20 + $0x868] sm:$0xff] %v2012_v62  ;;  %v2014_v9 = vmul.f32 %v1502_v63, %v478_v55  ;;  %v2015_v10 = vmul.f32 %v1503_v0, %v479_v59  ;;  %v1505_v11 = vmul.f32 1.25, %v993_v6  ;;  %v483_v13 = vld [vmem:[%s3281_s19 + $0x8a0] sm:$0xff]  ;;  %v484_v15 = vld [vmem:[%s3281_s19 + $0x8a8] sm:$0xff] }
 0x129   : > { %v1506_v12 = vmul.f32 1.25, %v994_v8  ;;  %v995_v14 = vld [vmem:[%s3289_s29 + $0x8a0] sm:$0xff]  ;;  %2525 = vst [vmem:[%s3311_s20 + $0x870] sm:$0xff] %v2013_v4  ;;  %v996_v18 = vld [vmem:[%s3289_s29 + $0x8a8] sm:$0xff]  ;;  %v485_v19 = vld [vmem:[%s3281_s19 + $0x8b0] sm:$0xff] }
 0x12a   : > { %v2016_v16 = vmul.f32 %v1504_v5, %v480_v1  ;;  %v1507_v17 = vmul.f32 1.25, %v995_v14  ;;  %v997_v20 = vld [vmem:[%s3289_s29 + $0x8b0] sm:$0xff]  ;;  %2526 = vst [vmem:[%s3311_s20 + $0x878] sm:$0xff] %v2014_v9  ;;  %2527 = vst [vmem:[%s3311_s20 + $0x880] sm:$0xff] %v2015_v10  ;;  %v2017_v21 = vmul.f32 %v1505_v11, %v481_v3  ;;  %v1508_v23 = vmul.f32 1.25, %v996_v18  ;;  %v486_v25 = vld [vmem:[%s3281_s19 + $0x8b8] sm:$0xff] }
 0x12b   : > { %v2018_v22 = vmul.f32 %v1506_v12, %v482_v7  ;;  %v1509_v24 = vmul.f32 1.25, %v997_v20  ;;  %v998_v26 = vld [vmem:[%s3289_s29 + $0x8b8] sm:$0xff]  ;;  %v487_v27 = vld [vmem:[%s3281_s19 + $0x8c0] sm:$0xff]  ;;  %v488_v31 = vld [vmem:[%s3281_s19 + $0x8c8] sm:$0xff] }
 0x12c   : > { %2528 = vst [vmem:[%s3311_s20 + $0x888] sm:$0xff] %v2016_v16  ;;  %v2019_v28 = vmul.f32 %v1507_v17, %v483_v13  ;;  %v1510_v29 = vmul.f32 1.25, %v998_v26  ;;  %v999_v30 = vld [vmem:[%s3289_s29 + $0x8c0] sm:$0xff]  ;;  %v1000_v32 = vld [vmem:[%s3289_s29 + $0x8c8] sm:$0xff]  ;;  %2529 = vst [vmem:[%s3311_s20 + $0x890] sm:$0xff] %v2017_v21  ;;  %v2020_v33 = vmul.f32 %v1508_v23, %v484_v15 }
 0x12d   : > { %2530 = vst [vmem:[%s3311_s20 + $0x898] sm:$0xff] %v2018_v22  ;;  %v2021_v34 = vmul.f32 %v1509_v24, %v485_v19  ;;  %v1511_v35 = vmul.f32 1.25, %v999_v30  ;;  %v1512_v36 = vmul.f32 1.25, %v1000_v32  ;;  %v489_v37 = vld [vmem:[%s3281_s19 + $0x8d0] sm:$0xff]  ;;  %v490_v39 = vld [vmem:[%s3281_s19 + $0x8d8] sm:$0xff]  ;;  %v491_v43 = vld [vmem:[%s3281_s19 + $0x8e0] sm:$0xff] }
 0x12e   : > { %v1001_v38 = vld [vmem:[%s3289_s29 + $0x8d0] sm:$0xff]  ;;  %2531 = vst [vmem:[%s3311_s20 + $0x8a0] sm:$0xff] %v2019_v28  ;;  %v2022_v40 = vmul.f32 %v1510_v29, %v486_v25  ;;  %v1002_v42 = vld [vmem:[%s3289_s29 + $0x8d8] sm:$0xff]  ;;  %v1003_v44 = vld [vmem:[%s3289_s29 + $0x8e0] sm:$0xff] }
 0x12f   : > { %v1513_v41 = vmul.f32 1.25, %v1001_v38  ;;  %2532 = vst [vmem:[%s3311_s20 + $0x8a8] sm:$0xff] %v2020_v33  ;;  %2533 = vst [vmem:[%s3311_s20 + $0x8b0] sm:$0xff] %v2021_v34  ;;  %v2023_v45 = vmul.f32 %v1511_v35, %v487_v27  ;;  %v2024_v46 = vmul.f32 %v1512_v36, %v488_v31  ;;  %v1514_v47 = vmul.f32 1.25, %v1002_v42  ;;  %v492_v49 = vld [vmem:[%s3281_s19 + $0x8e8] sm:$0xff]  ;;  %v493_v51 = vld [vmem:[%s3281_s19 + $0x8f0] sm:$0xff] }
 0x130   : > { %v1515_v48 = vmul.f32 1.25, %v1003_v44  ;;  %v1004_v50 = vld [vmem:[%s3289_s29 + $0x8e8] sm:$0xff]  ;;  %2534 = vst [vmem:[%s3311_s20 + $0x8b8] sm:$0xff] %v2022_v40  ;;  %v1005_v54 = vld [vmem:[%s3289_s29 + $0x8f0] sm:$0xff]  ;;  %v494_v55 = vld [vmem:[%s3281_s19 + $0x8f8] sm:$0xff] }
 0x131   : > { %v2025_v52 = vmul.f32 %v1513_v41, %v489_v37  ;;  %v1516_v53 = vmul.f32 1.25, %v1004_v50  ;;  %v1006_v56 = vld [vmem:[%s3289_s29 + $0x8f8] sm:$0xff]  ;;  %2535 = vst [vmem:[%s3311_s20 + $0x8c0] sm:$0xff] %v2023_v45  ;;  %2536 = vst [vmem:[%s3311_s20 + $0x8c8] sm:$0xff] %v2024_v46  ;;  %v2026_v57 = vmul.f32 %v1514_v47, %v490_v39  ;;  %v1517_v59 = vmul.f32 1.25, %v1005_v54  ;;  %v495_v61 = vld [vmem:[%s3281_s19 + $0x900] sm:$0xff] }
 0x132   : > { %v2027_v58 = vmul.f32 %v1515_v48, %v491_v43  ;;  %v1518_v60 = vmul.f32 1.25, %v1006_v56  ;;  %v1007_v62 = vld [vmem:[%s3289_s29 + $0x900] sm:$0xff]  ;;  %v496_v63 = vld [vmem:[%s3281_s19 + $0x908] sm:$0xff]  ;;  %v497_v3 = vld [vmem:[%s3281_s19 + $0x910] sm:$0xff] }
 0x133   : > { %2537 = vst [vmem:[%s3311_s20 + $0x8d0] sm:$0xff] %v2025_v52  ;;  %v2028_v0 = vmul.f32 %v1516_v53, %v492_v49  ;;  %v1519_v1 = vmul.f32 1.25, %v1007_v62  ;;  %v1008_v2 = vld [vmem:[%s3289_s29 + $0x908] sm:$0xff]  ;;  %v1009_v4 = vld [vmem:[%s3289_s29 + $0x910] sm:$0xff]  ;;  %2538 = vst [vmem:[%s3311_s20 + $0x8d8] sm:$0xff] %v2026_v57  ;;  %v2029_v5 = vmul.f32 %v1517_v59, %v493_v51 }
 0x134   : > { %2539 = vst [vmem:[%s3311_s20 + $0x8e0] sm:$0xff] %v2027_v58  ;;  %v2030_v6 = vmul.f32 %v1518_v60, %v494_v55  ;;  %v1520_v7 = vmul.f32 1.25, %v1008_v2  ;;  %v1521_v8 = vmul.f32 1.25, %v1009_v4  ;;  %v498_v9 = vld [vmem:[%s3281_s19 + $0x918] sm:$0xff]  ;;  %v499_v11 = vld [vmem:[%s3281_s19 + $0x920] sm:$0xff]  ;;  %v500_v15 = vld [vmem:[%s3281_s19 + $0x928] sm:$0xff] }
 0x135   : > { %v1010_v10 = vld [vmem:[%s3289_s29 + $0x918] sm:$0xff]  ;;  %2540 = vst [vmem:[%s3311_s20 + $0x8e8] sm:$0xff] %v2028_v0  ;;  %v2031_v12 = vmul.f32 %v1519_v1, %v495_v61  ;;  %v1011_v14 = vld [vmem:[%s3289_s29 + $0x920] sm:$0xff]  ;;  %v1012_v16 = vld [vmem:[%s3289_s29 + $0x928] sm:$0xff] }
 0x136   : > { %v1522_v13 = vmul.f32 1.25, %v1010_v10  ;;  %2541 = vst [vmem:[%s3311_s20 + $0x8f0] sm:$0xff] %v2029_v5  ;;  %2542 = vst [vmem:[%s3311_s20 + $0x8f8] sm:$0xff] %v2030_v6  ;;  %v2032_v17 = vmul.f32 %v1520_v7, %v496_v63  ;;  %v2033_v18 = vmul.f32 %v1521_v8, %v497_v3  ;;  %v1523_v19 = vmul.f32 1.25, %v1011_v14  ;;  %v501_v21 = vld [vmem:[%s3281_s19 + $0x930] sm:$0xff]  ;;  %v502_v23 = vld [vmem:[%s3281_s19 + $0x938] sm:$0xff] }
 0x137   : > { %v1524_v20 = vmul.f32 1.25, %v1012_v16  ;;  %v1013_v22 = vld [vmem:[%s3289_s29 + $0x930] sm:$0xff]  ;;  %2543 = vst [vmem:[%s3311_s20 + $0x900] sm:$0xff] %v2031_v12  ;;  %v1014_v26 = vld [vmem:[%s3289_s29 + $0x938] sm:$0xff]  ;;  %v503_v27 = vld [vmem:[%s3281_s19 + $0x940] sm:$0xff] }
 0x138   : > { %v2034_v24 = vmul.f32 %v1522_v13, %v498_v9  ;;  %v1525_v25 = vmul.f32 1.25, %v1013_v22  ;;  %v1015_v28 = vld [vmem:[%s3289_s29 + $0x940] sm:$0xff]  ;;  %2544 = vst [vmem:[%s3311_s20 + $0x908] sm:$0xff] %v2032_v17  ;;  %2545 = vst [vmem:[%s3311_s20 + $0x910] sm:$0xff] %v2033_v18  ;;  %v2035_v29 = vmul.f32 %v1523_v19, %v499_v11  ;;  %v1526_v31 = vmul.f32 1.25, %v1014_v26  ;;  %v504_v33 = vld [vmem:[%s3281_s19 + $0x948] sm:$0xff] }
 0x139   : > { %v2036_v30 = vmul.f32 %v1524_v20, %v500_v15  ;;  %v1527_v32 = vmul.f32 1.25, %v1015_v28  ;;  %v1016_v34 = vld [vmem:[%s3289_s29 + $0x948] sm:$0xff]  ;;  %v505_v35 = vld [vmem:[%s3281_s19 + $0x950] sm:$0xff]  ;;  %v506_v39 = vld [vmem:[%s3281_s19 + $0x958] sm:$0xff] }
 0x13a   : > { %2546 = vst [vmem:[%s3311_s20 + $0x918] sm:$0xff] %v2034_v24  ;;  %v2037_v36 = vmul.f32 %v1525_v25, %v501_v21  ;;  %v1528_v37 = vmul.f32 1.25, %v1016_v34  ;;  %v1017_v38 = vld [vmem:[%s3289_s29 + $0x950] sm:$0xff]  ;;  %v1018_v40 = vld [vmem:[%s3289_s29 + $0x958] sm:$0xff]  ;;  %2547 = vst [vmem:[%s3311_s20 + $0x920] sm:$0xff] %v2035_v29  ;;  %v2038_v41 = vmul.f32 %v1526_v31, %v502_v23 }
 0x13b   : > { %2548 = vst [vmem:[%s3311_s20 + $0x928] sm:$0xff] %v2036_v30  ;;  %v2039_v42 = vmul.f32 %v1527_v32, %v503_v27  ;;  %v1529_v43 = vmul.f32 1.25, %v1017_v38  ;;  %v1530_v44 = vmul.f32 1.25, %v1018_v40  ;;  %v507_v45 = vld [vmem:[%s3281_s19 + $0x960] sm:$0xff]  ;;  %v508_v47 = vld [vmem:[%s3281_s19 + $0x968] sm:$0xff]  ;;  %v509_v51 = vld [vmem:[%s3281_s19 + $0x970] sm:$0xff] }
 0x13c   : > { %v1019_v46 = vld [vmem:[%s3289_s29 + $0x960] sm:$0xff]  ;;  %2549 = vst [vmem:[%s3311_s20 + $0x930] sm:$0xff] %v2037_v36  ;;  %v2040_v48 = vmul.f32 %v1528_v37, %v504_v33  ;;  %v1020_v50 = vld [vmem:[%s3289_s29 + $0x968] sm:$0xff]  ;;  %v1021_v52 = vld [vmem:[%s3289_s29 + $0x970] sm:$0xff] }
 0x13d   : > { %v1531_v49 = vmul.f32 1.25, %v1019_v46  ;;  %2550 = vst [vmem:[%s3311_s20 + $0x938] sm:$0xff] %v2038_v41  ;;  %2551 = vst [vmem:[%s3311_s20 + $0x940] sm:$0xff] %v2039_v42  ;;  %v2041_v53 = vmul.f32 %v1529_v43, %v505_v35  ;;  %v2042_v54 = vmul.f32 %v1530_v44, %v506_v39  ;;  %v1532_v55 = vmul.f32 1.25, %v1020_v50  ;;  %v510_v57 = vld [vmem:[%s3281_s19 + $0x978] sm:$0xff]  ;;  %v511_v59 = vld [vmem:[%s3281_s19 + $0x980] sm:$0xff] }
 0x13e   : > { %v1533_v56 = vmul.f32 1.25, %v1021_v52  ;;  %v1022_v58 = vld [vmem:[%s3289_s29 + $0x978] sm:$0xff]  ;;  %2552 = vst [vmem:[%s3311_s20 + $0x948] sm:$0xff] %v2040_v48  ;;  %v1023_v62 = vld [vmem:[%s3289_s29 + $0x980] sm:$0xff]  ;;  %v512_v63 = vld [vmem:[%s3281_s19 + $0x988] sm:$0xff] }
 0x13f   : > { %v2043_v60 = vmul.f32 %v1531_v49, %v507_v45  ;;  %v1534_v61 = vmul.f32 1.25, %v1022_v58  ;;  %v1024_v0 = vld [vmem:[%s3289_s29 + $0x988] sm:$0xff]  ;;  %2553 = vst [vmem:[%s3311_s20 + $0x950] sm:$0xff] %v2041_v53  ;;  %2554 = vst [vmem:[%s3311_s20 + $0x958] sm:$0xff] %v2042_v54  ;;  %v2044_v1 = vmul.f32 %v1532_v55, %v508_v47  ;;  %v1535_v3 = vmul.f32 1.25, %v1023_v62  ;;  %v513_v5 = vld [vmem:[%s3281_s19 + $0x990] sm:$0xff] }
 0x140   : > { %v2045_v2 = vmul.f32 %v1533_v56, %v509_v51  ;;  %v1536_v4 = vmul.f32 1.25, %v1024_v0  ;;  %v1025_v6 = vld [vmem:[%s3289_s29 + $0x990] sm:$0xff]  ;;  %v514_v7 = vld [vmem:[%s3281_s19 + $0x998] sm:$0xff]  ;;  %v515_v11 = vld [vmem:[%s3281_s19 + $0x9a0] sm:$0xff] }
 0x141   : > { %2555 = vst [vmem:[%s3311_s20 + $0x960] sm:$0xff] %v2043_v60  ;;  %v2046_v8 = vmul.f32 %v1534_v61, %v510_v57  ;;  %v1537_v9 = vmul.f32 1.25, %v1025_v6  ;;  %v1026_v10 = vld [vmem:[%s3289_s29 + $0x998] sm:$0xff]  ;;  %v1027_v12 = vld [vmem:[%s3289_s29 + $0x9a0] sm:$0xff]  ;;  %2556 = vst [vmem:[%s3311_s20 + $0x968] sm:$0xff] %v2044_v1  ;;  %v2047_v13 = vmul.f32 %v1535_v3, %v511_v59 }
 0x142   : > { %2557 = vst [vmem:[%s3311_s20 + $0x970] sm:$0xff] %v2045_v2  ;;  %v2048_v14 = vmul.f32 %v1536_v4, %v512_v63  ;;  %v1538_v15 = vmul.f32 1.25, %v1026_v10  ;;  %v1539_v16 = vmul.f32 1.25, %v1027_v12  ;;  %v516_v17 = vld [vmem:[%s3281_s19 + $0x9a8] sm:$0xff]  ;;  %v517_v19 = vld [vmem:[%s3281_s19 + $0x9b0] sm:$0xff]  ;;  %v518_v23 = vld [vmem:[%s3281_s19 + $0x9b8] sm:$0xff] }
 0x143   : > { %v1028_v18 = vld [vmem:[%s3289_s29 + $0x9a8] sm:$0xff]  ;;  %2558 = vst [vmem:[%s3311_s20 + $0x978] sm:$0xff] %v2046_v8  ;;  %v2049_v20 = vmul.f32 %v1537_v9, %v513_v5  ;;  %v1029_v22 = vld [vmem:[%s3289_s29 + $0x9b0] sm:$0xff]  ;;  %v1030_v24 = vld [vmem:[%s3289_s29 + $0x9b8] sm:$0xff] }
 0x144   : > { %v1540_v21 = vmul.f32 1.25, %v1028_v18  ;;  %2559 = vst [vmem:[%s3311_s20 + $0x980] sm:$0xff] %v2047_v13  ;;  %2560 = vst [vmem:[%s3311_s20 + $0x988] sm:$0xff] %v2048_v14  ;;  %v2050_v25 = vmul.f32 %v1538_v15, %v514_v7  ;;  %v2051_v26 = vmul.f32 %v1539_v16, %v515_v11  ;;  %v1541_v27 = vmul.f32 1.25, %v1029_v22  ;;  %v519_v29 = vld [vmem:[%s3281_s19 + $0x9c0] sm:$0xff]  ;;  %v520_v31 = vld [vmem:[%s3281_s19 + $0x9c8] sm:$0xff] }
 0x145   : > { %v1542_v28 = vmul.f32 1.25, %v1030_v24  ;;  %v1031_v30 = vld [vmem:[%s3289_s29 + $0x9c0] sm:$0xff]  ;;  %2561 = vst [vmem:[%s3311_s20 + $0x990] sm:$0xff] %v2049_v20  ;;  %v1032_v34 = vld [vmem:[%s3289_s29 + $0x9c8] sm:$0xff]  ;;  %v521_v35 = vld [vmem:[%s3281_s19 + $0x9d0] sm:$0xff] }
 0x146   : > { %v2052_v32 = vmul.f32 %v1540_v21, %v516_v17  ;;  %v1543_v33 = vmul.f32 1.25, %v1031_v30  ;;  %v1033_v36 = vld [vmem:[%s3289_s29 + $0x9d0] sm:$0xff]  ;;  %2562 = vst [vmem:[%s3311_s20 + $0x998] sm:$0xff] %v2050_v25  ;;  %2563 = vst [vmem:[%s3311_s20 + $0x9a0] sm:$0xff] %v2051_v26  ;;  %v2053_v37 = vmul.f32 %v1541_v27, %v517_v19  ;;  %v1544_v39 = vmul.f32 1.25, %v1032_v34  ;;  %v522_v41 = vld [vmem:[%s3281_s19 + $0x9d8] sm:$0xff] }
 0x147   : > { %v2054_v38 = vmul.f32 %v1542_v28, %v518_v23  ;;  %v1545_v40 = vmul.f32 1.25, %v1033_v36  ;;  %v1034_v42 = vld [vmem:[%s3289_s29 + $0x9d8] sm:$0xff]  ;;  %v523_v43 = vld [vmem:[%s3281_s19 + $0x9e0] sm:$0xff]  ;;  %v524_v47 = vld [vmem:[%s3281_s19 + $0x9e8] sm:$0xff] }
 0x148   : > { %2564 = vst [vmem:[%s3311_s20 + $0x9a8] sm:$0xff] %v2052_v32  ;;  %v2055_v44 = vmul.f32 %v1543_v33, %v519_v29  ;;  %v1546_v45 = vmul.f32 1.25, %v1034_v42  ;;  %v1035_v46 = vld [vmem:[%s3289_s29 + $0x9e0] sm:$0xff]  ;;  %v1036_v48 = vld [vmem:[%s3289_s29 + $0x9e8] sm:$0xff]  ;;  %2565 = vst [vmem:[%s3311_s20 + $0x9b0] sm:$0xff] %v2053_v37  ;;  %v2056_v49 = vmul.f32 %v1544_v39, %v520_v31 }
 0x149   : > { %2566 = vst [vmem:[%s3311_s20 + $0x9b8] sm:$0xff] %v2054_v38  ;;  %v2057_v50 = vmul.f32 %v1545_v40, %v521_v35  ;;  %v1547_v51 = vmul.f32 1.25, %v1035_v46  ;;  %v1548_v52 = vmul.f32 1.25, %v1036_v48  ;;  %v525_v53 = vld [vmem:[%s3281_s19 + $0x9f0] sm:$0xff]  ;;  %v526_v55 = vld [vmem:[%s3281_s19 + $0x9f8] sm:$0xff]  ;;  %v527_v59 = vld [vmem:[%s3281_s19 + $0xa00] sm:$0xff] }
 0x14a   : > { %v1037_v54 = vld [vmem:[%s3289_s29 + $0x9f0] sm:$0xff]  ;;  %2567 = vst [vmem:[%s3311_s20 + $0x9c0] sm:$0xff] %v2055_v44  ;;  %v2058_v56 = vmul.f32 %v1546_v45, %v522_v41  ;;  %v1038_v58 = vld [vmem:[%s3289_s29 + $0x9f8] sm:$0xff]  ;;  %v1039_v60 = vld [vmem:[%s3289_s29 + $0xa00] sm:$0xff] }
 0x14b   : > { %v1549_v57 = vmul.f32 1.25, %v1037_v54  ;;  %2568 = vst [vmem:[%s3311_s20 + $0x9c8] sm:$0xff] %v2056_v49  ;;  %2569 = vst [vmem:[%s3311_s20 + $0x9d0] sm:$0xff] %v2057_v50  ;;  %v2059_v61 = vmul.f32 %v1547_v51, %v523_v43  ;;  %v2060_v62 = vmul.f32 %v1548_v52, %v524_v47  ;;  %v1550_v63 = vmul.f32 1.25, %v1038_v58  ;;  %v528_v1 = vld [vmem:[%s3281_s19 + $0xa08] sm:$0xff]  ;;  %v529_v3 = vld [vmem:[%s3281_s19 + $0xa10] sm:$0xff] }
 0x14c   : > { %v1551_v0 = vmul.f32 1.25, %v1039_v60  ;;  %v1040_v2 = vld [vmem:[%s3289_s29 + $0xa08] sm:$0xff]  ;;  %2570 = vst [vmem:[%s3311_s20 + $0x9d8] sm:$0xff] %v2058_v56  ;;  %v1041_v6 = vld [vmem:[%s3289_s29 + $0xa10] sm:$0xff]  ;;  %v530_v7 = vld [vmem:[%s3281_s19 + $0xa18] sm:$0xff] }
 0x14d   : > { %v2061_v4 = vmul.f32 %v1549_v57, %v525_v53  ;;  %v1552_v5 = vmul.f32 1.25, %v1040_v2  ;;  %v1042_v8 = vld [vmem:[%s3289_s29 + $0xa18] sm:$0xff]  ;;  %2571 = vst [vmem:[%s3311_s20 + $0x9e0] sm:$0xff] %v2059_v61  ;;  %2572 = vst [vmem:[%s3311_s20 + $0x9e8] sm:$0xff] %v2060_v62  ;;  %v2062_v9 = vmul.f32 %v1550_v63, %v526_v55  ;;  %v1553_v11 = vmul.f32 1.25, %v1041_v6  ;;  %v531_v13 = vld [vmem:[%s3281_s19 + $0xa20] sm:$0xff] }
 0x14e   : > { %v2063_v10 = vmul.f32 %v1551_v0, %v527_v59  ;;  %v1554_v12 = vmul.f32 1.25, %v1042_v8  ;;  %v1043_v14 = vld [vmem:[%s3289_s29 + $0xa20] sm:$0xff]  ;;  %v532_v15 = vld [vmem:[%s3281_s19 + $0xa28] sm:$0xff]  ;;  %v533_v19 = vld [vmem:[%s3281_s19 + $0xa30] sm:$0xff] }
 0x14f   : > { %2573 = vst [vmem:[%s3311_s20 + $0x9f0] sm:$0xff] %v2061_v4  ;;  %v2064_v16 = vmul.f32 %v1552_v5, %v528_v1  ;;  %v1555_v17 = vmul.f32 1.25, %v1043_v14  ;;  %v1044_v18 = vld [vmem:[%s3289_s29 + $0xa28] sm:$0xff]  ;;  %v1045_v20 = vld [vmem:[%s3289_s29 + $0xa30] sm:$0xff]  ;;  %2574 = vst [vmem:[%s3311_s20 + $0x9f8] sm:$0xff] %v2062_v9  ;;  %v2065_v21 = vmul.f32 %v1553_v11, %v529_v3 }
 0x150   : > { %2575 = vst [vmem:[%s3311_s20 + $0xa00] sm:$0xff] %v2063_v10  ;;  %v2066_v22 = vmul.f32 %v1554_v12, %v530_v7  ;;  %v1556_v23 = vmul.f32 1.25, %v1044_v18  ;;  %v1557_v24 = vmul.f32 1.25, %v1045_v20  ;;  %v534_v25 = vld [vmem:[%s3281_s19 + $0xa38] sm:$0xff]  ;;  %v535_v27 = vld [vmem:[%s3281_s19 + $0xa40] sm:$0xff]  ;;  %v536_v31 = vld [vmem:[%s3281_s19 + $0xa48] sm:$0xff] }
 0x151   : > { %v1046_v26 = vld [vmem:[%s3289_s29 + $0xa38] sm:$0xff]  ;;  %2576 = vst [vmem:[%s3311_s20 + $0xa08] sm:$0xff] %v2064_v16  ;;  %v2067_v28 = vmul.f32 %v1555_v17, %v531_v13  ;;  %v1047_v30 = vld [vmem:[%s3289_s29 + $0xa40] sm:$0xff]  ;;  %v1048_v32 = vld [vmem:[%s3289_s29 + $0xa48] sm:$0xff] }
 0x152   : > { %v1558_v29 = vmul.f32 1.25, %v1046_v26  ;;  %2577 = vst [vmem:[%s3311_s20 + $0xa10] sm:$0xff] %v2065_v21  ;;  %2578 = vst [vmem:[%s3311_s20 + $0xa18] sm:$0xff] %v2066_v22  ;;  %v2068_v33 = vmul.f32 %v1556_v23, %v532_v15  ;;  %v2069_v34 = vmul.f32 %v1557_v24, %v533_v19  ;;  %v1559_v35 = vmul.f32 1.25, %v1047_v30  ;;  %v537_v37 = vld [vmem:[%s3281_s19 + $0xa50] sm:$0xff]  ;;  %v538_v39 = vld [vmem:[%s3281_s19 + $0xa58] sm:$0xff] }
 0x153   : > { %v1560_v36 = vmul.f32 1.25, %v1048_v32  ;;  %v1049_v38 = vld [vmem:[%s3289_s29 + $0xa50] sm:$0xff]  ;;  %2579 = vst [vmem:[%s3311_s20 + $0xa20] sm:$0xff] %v2067_v28  ;;  %v1050_v42 = vld [vmem:[%s3289_s29 + $0xa58] sm:$0xff]  ;;  %v539_v43 = vld [vmem:[%s3281_s19 + $0xa60] sm:$0xff] }
 0x154   : > { %v2070_v40 = vmul.f32 %v1558_v29, %v534_v25  ;;  %v1561_v41 = vmul.f32 1.25, %v1049_v38  ;;  %v1051_v44 = vld [vmem:[%s3289_s29 + $0xa60] sm:$0xff]  ;;  %2580 = vst [vmem:[%s3311_s20 + $0xa28] sm:$0xff] %v2068_v33  ;;  %2581 = vst [vmem:[%s3311_s20 + $0xa30] sm:$0xff] %v2069_v34  ;;  %v2071_v45 = vmul.f32 %v1559_v35, %v535_v27  ;;  %v1562_v47 = vmul.f32 1.25, %v1050_v42  ;;  %v540_v49 = vld [vmem:[%s3281_s19 + $0xa68] sm:$0xff] }
 0x155   : > { %v2072_v46 = vmul.f32 %v1560_v36, %v536_v31  ;;  %v1563_v48 = vmul.f32 1.25, %v1051_v44  ;;  %v1052_v50 = vld [vmem:[%s3289_s29 + $0xa68] sm:$0xff]  ;;  %v541_v51 = vld [vmem:[%s3281_s19 + $0xa70] sm:$0xff]  ;;  %v542_v55 = vld [vmem:[%s3281_s19 + $0xa78] sm:$0xff] }
 0x156   : > { %2582 = vst [vmem:[%s3311_s20 + $0xa38] sm:$0xff] %v2070_v40  ;;  %v2073_v52 = vmul.f32 %v1561_v41, %v537_v37  ;;  %v1564_v53 = vmul.f32 1.25, %v1052_v50  ;;  %v1053_v54 = vld [vmem:[%s3289_s29 + $0xa70] sm:$0xff]  ;;  %v1054_v56 = vld [vmem:[%s3289_s29 + $0xa78] sm:$0xff]  ;;  %2583 = vst [vmem:[%s3311_s20 + $0xa40] sm:$0xff] %v2071_v45  ;;  %v2074_v57 = vmul.f32 %v1562_v47, %v538_v39 }
 0x157   : > { %2584 = vst [vmem:[%s3311_s20 + $0xa48] sm:$0xff] %v2072_v46  ;;  %v2075_v58 = vmul.f32 %v1563_v48, %v539_v43  ;;  %v1565_v59 = vmul.f32 1.25, %v1053_v54  ;;  %v1566_v60 = vmul.f32 1.25, %v1054_v56  ;;  %v543_v61 = vld [vmem:[%s3281_s19 + $0xa80] sm:$0xff]  ;;  %v544_v63 = vld [vmem:[%s3281_s19 + $0xa88] sm:$0xff]  ;;  %v545_v3 = vld [vmem:[%s3281_s19 + $0xa90] sm:$0xff] }
 0x158   : > { %v1055_v62 = vld [vmem:[%s3289_s29 + $0xa80] sm:$0xff]  ;;  %2585 = vst [vmem:[%s3311_s20 + $0xa50] sm:$0xff] %v2073_v52  ;;  %v2076_v0 = vmul.f32 %v1564_v53, %v540_v49  ;;  %v1056_v2 = vld [vmem:[%s3289_s29 + $0xa88] sm:$0xff]  ;;  %v1057_v4 = vld [vmem:[%s3289_s29 + $0xa90] sm:$0xff] }
 0x159   : > { %v1567_v1 = vmul.f32 1.25, %v1055_v62  ;;  %2586 = vst [vmem:[%s3311_s20 + $0xa58] sm:$0xff] %v2074_v57  ;;  %2587 = vst [vmem:[%s3311_s20 + $0xa60] sm:$0xff] %v2075_v58  ;;  %v2077_v5 = vmul.f32 %v1565_v59, %v541_v51  ;;  %v2078_v6 = vmul.f32 %v1566_v60, %v542_v55  ;;  %v1568_v7 = vmul.f32 1.25, %v1056_v2  ;;  %v546_v9 = vld [vmem:[%s3281_s19 + $0xa98] sm:$0xff]  ;;  %v547_v11 = vld [vmem:[%s3281_s19 + $0xaa0] sm:$0xff] }
 0x15a   : > { %v1569_v8 = vmul.f32 1.25, %v1057_v4  ;;  %v1058_v10 = vld [vmem:[%s3289_s29 + $0xa98] sm:$0xff]  ;;  %2588 = vst [vmem:[%s3311_s20 + $0xa68] sm:$0xff] %v2076_v0  ;;  %v1059_v14 = vld [vmem:[%s3289_s29 + $0xaa0] sm:$0xff]  ;;  %v548_v15 = vld [vmem:[%s3281_s19 + $0xaa8] sm:$0xff] }
 0x15b   : > { %v2079_v12 = vmul.f32 %v1567_v1, %v543_v61  ;;  %v1570_v13 = vmul.f32 1.25, %v1058_v10  ;;  %v1060_v16 = vld [vmem:[%s3289_s29 + $0xaa8] sm:$0xff]  ;;  %2589 = vst [vmem:[%s3311_s20 + $0xa70] sm:$0xff] %v2077_v5  ;;  %2590 = vst [vmem:[%s3311_s20 + $0xa78] sm:$0xff] %v2078_v6  ;;  %v2080_v17 = vmul.f32 %v1568_v7, %v544_v63  ;;  %v1571_v19 = vmul.f32 1.25, %v1059_v14  ;;  %v549_v21 = vld [vmem:[%s3281_s19 + $0xab0] sm:$0xff] }
 0x15c   : > { %v2081_v18 = vmul.f32 %v1569_v8, %v545_v3  ;;  %v1572_v20 = vmul.f32 1.25, %v1060_v16  ;;  %v1061_v22 = vld [vmem:[%s3289_s29 + $0xab0] sm:$0xff]  ;;  %v550_v23 = vld [vmem:[%s3281_s19 + $0xab8] sm:$0xff]  ;;  %v551_v27 = vld [vmem:[%s3281_s19 + $0xac0] sm:$0xff] }
 0x15d   : > { %2591 = vst [vmem:[%s3311_s20 + $0xa80] sm:$0xff] %v2079_v12  ;;  %v2082_v24 = vmul.f32 %v1570_v13, %v546_v9  ;;  %v1573_v25 = vmul.f32 1.25, %v1061_v22  ;;  %v1062_v26 = vld [vmem:[%s3289_s29 + $0xab8] sm:$0xff]  ;;  %v1063_v28 = vld [vmem:[%s3289_s29 + $0xac0] sm:$0xff]  ;;  %2592 = vst [vmem:[%s3311_s20 + $0xa88] sm:$0xff] %v2080_v17  ;;  %v2083_v29 = vmul.f32 %v1571_v19, %v547_v11 }
 0x15e   : > { %2593 = vst [vmem:[%s3311_s20 + $0xa90] sm:$0xff] %v2081_v18  ;;  %v2084_v30 = vmul.f32 %v1572_v20, %v548_v15  ;;  %v1574_v31 = vmul.f32 1.25, %v1062_v26  ;;  %v1575_v32 = vmul.f32 1.25, %v1063_v28  ;;  %v552_v33 = vld [vmem:[%s3281_s19 + $0xac8] sm:$0xff]  ;;  %v553_v35 = vld [vmem:[%s3281_s19 + $0xad0] sm:$0xff]  ;;  %v554_v39 = vld [vmem:[%s3281_s19 + $0xad8] sm:$0xff] }
 0x15f   : > { %v1064_v34 = vld [vmem:[%s3289_s29 + $0xac8] sm:$0xff]  ;;  %2594 = vst [vmem:[%s3311_s20 + $0xa98] sm:$0xff] %v2082_v24  ;;  %v2085_v36 = vmul.f32 %v1573_v25, %v549_v21  ;;  %v1065_v38 = vld [vmem:[%s3289_s29 + $0xad0] sm:$0xff]  ;;  %v1066_v40 = vld [vmem:[%s3289_s29 + $0xad8] sm:$0xff] }
 0x160   : > { %v1576_v37 = vmul.f32 1.25, %v1064_v34  ;;  %2595 = vst [vmem:[%s3311_s20 + $0xaa0] sm:$0xff] %v2083_v29  ;;  %2596 = vst [vmem:[%s3311_s20 + $0xaa8] sm:$0xff] %v2084_v30  ;;  %v2086_v41 = vmul.f32 %v1574_v31, %v550_v23  ;;  %v2087_v42 = vmul.f32 %v1575_v32, %v551_v27  ;;  %v1577_v43 = vmul.f32 1.25, %v1065_v38  ;;  %v555_v45 = vld [vmem:[%s3281_s19 + $0xae0] sm:$0xff]  ;;  %v556_v47 = vld [vmem:[%s3281_s19 + $0xae8] sm:$0xff] }
 0x161   : > { %v1578_v44 = vmul.f32 1.25, %v1066_v40  ;;  %v1067_v46 = vld [vmem:[%s3289_s29 + $0xae0] sm:$0xff]  ;;  %2597 = vst [vmem:[%s3311_s20 + $0xab0] sm:$0xff] %v2085_v36  ;;  %v1068_v50 = vld [vmem:[%s3289_s29 + $0xae8] sm:$0xff]  ;;  %v557_v51 = vld [vmem:[%s3281_s19 + $0xaf0] sm:$0xff] }
 0x162   : > { %v2088_v48 = vmul.f32 %v1576_v37, %v552_v33  ;;  %v1579_v49 = vmul.f32 1.25, %v1067_v46  ;;  %v1069_v52 = vld [vmem:[%s3289_s29 + $0xaf0] sm:$0xff]  ;;  %2598 = vst [vmem:[%s3311_s20 + $0xab8] sm:$0xff] %v2086_v41  ;;  %2599 = vst [vmem:[%s3311_s20 + $0xac0] sm:$0xff] %v2087_v42  ;;  %v2089_v53 = vmul.f32 %v1577_v43, %v553_v35  ;;  %v1580_v55 = vmul.f32 1.25, %v1068_v50  ;;  %v558_v57 = vld [vmem:[%s3281_s19 + $0xaf8] sm:$0xff] }
 0x163   : > { %v2090_v54 = vmul.f32 %v1578_v44, %v554_v39  ;;  %v1581_v56 = vmul.f32 1.25, %v1069_v52  ;;  %v1070_v58 = vld [vmem:[%s3289_s29 + $0xaf8] sm:$0xff]  ;;  %v559_v59 = vld [vmem:[%s3281_s19 + $0xb00] sm:$0xff]  ;;  %v560_v63 = vld [vmem:[%s3281_s19 + $0xb08] sm:$0xff] }
 0x164   : > { %2600 = vst [vmem:[%s3311_s20 + $0xac8] sm:$0xff] %v2088_v48  ;;  %v2091_v60 = vmul.f32 %v1579_v49, %v555_v45  ;;  %v1582_v61 = vmul.f32 1.25, %v1070_v58  ;;  %v1071_v62 = vld [vmem:[%s3289_s29 + $0xb00] sm:$0xff]  ;;  %v1072_v0 = vld [vmem:[%s3289_s29 + $0xb08] sm:$0xff]  ;;  %2601 = vst [vmem:[%s3311_s20 + $0xad0] sm:$0xff] %v2089_v53  ;;  %v2092_v1 = vmul.f32 %v1580_v55, %v556_v47 }
 0x165   : > { %2602 = vst [vmem:[%s3311_s20 + $0xad8] sm:$0xff] %v2090_v54  ;;  %v2093_v2 = vmul.f32 %v1581_v56, %v557_v51  ;;  %v1583_v3 = vmul.f32 1.25, %v1071_v62  ;;  %v1584_v4 = vmul.f32 1.25, %v1072_v0  ;;  %v561_v5 = vld [vmem:[%s3281_s19 + $0xb10] sm:$0xff]  ;;  %v562_v7 = vld [vmem:[%s3281_s19 + $0xb18] sm:$0xff]  ;;  %v563_v11 = vld [vmem:[%s3281_s19 + $0xb20] sm:$0xff] }
 0x166   : > { %v1073_v6 = vld [vmem:[%s3289_s29 + $0xb10] sm:$0xff]  ;;  %2603 = vst [vmem:[%s3311_s20 + $0xae0] sm:$0xff] %v2091_v60  ;;  %v2094_v8 = vmul.f32 %v1582_v61, %v558_v57  ;;  %v1074_v10 = vld [vmem:[%s3289_s29 + $0xb18] sm:$0xff]  ;;  %v1075_v12 = vld [vmem:[%s3289_s29 + $0xb20] sm:$0xff] }
 0x167   : > { %v1585_v9 = vmul.f32 1.25, %v1073_v6  ;;  %2604 = vst [vmem:[%s3311_s20 + $0xae8] sm:$0xff] %v2092_v1  ;;  %2605 = vst [vmem:[%s3311_s20 + $0xaf0] sm:$0xff] %v2093_v2  ;;  %v2095_v13 = vmul.f32 %v1583_v3, %v559_v59  ;;  %v2096_v14 = vmul.f32 %v1584_v4, %v560_v63  ;;  %v1586_v15 = vmul.f32 1.25, %v1074_v10  ;;  %v564_v17 = vld [vmem:[%s3281_s19 + $0xb28] sm:$0xff]  ;;  %v565_v19 = vld [vmem:[%s3281_s19 + $0xb30] sm:$0xff] }
 0x168   : > { %v1587_v16 = vmul.f32 1.25, %v1075_v12  ;;  %v1076_v18 = vld [vmem:[%s3289_s29 + $0xb28] sm:$0xff]  ;;  %2606 = vst [vmem:[%s3311_s20 + $0xaf8] sm:$0xff] %v2094_v8  ;;  %v1077_v22 = vld [vmem:[%s3289_s29 + $0xb30] sm:$0xff]  ;;  %v566_v23 = vld [vmem:[%s3281_s19 + $0xb38] sm:$0xff] }
 0x169   : > { %v2097_v20 = vmul.f32 %v1585_v9, %v561_v5  ;;  %v1588_v21 = vmul.f32 1.25, %v1076_v18  ;;  %v1078_v24 = vld [vmem:[%s3289_s29 + $0xb38] sm:$0xff]  ;;  %2607 = vst [vmem:[%s3311_s20 + $0xb00] sm:$0xff] %v2095_v13  ;;  %2608 = vst [vmem:[%s3311_s20 + $0xb08] sm:$0xff] %v2096_v14  ;;  %v2098_v25 = vmul.f32 %v1586_v15, %v562_v7  ;;  %v1589_v27 = vmul.f32 1.25, %v1077_v22  ;;  %v567_v29 = vld [vmem:[%s3281_s19 + $0xb40] sm:$0xff] }
 0x16a   : > { %v2099_v26 = vmul.f32 %v1587_v16, %v563_v11  ;;  %v1590_v28 = vmul.f32 1.25, %v1078_v24  ;;  %v1079_v30 = vld [vmem:[%s3289_s29 + $0xb40] sm:$0xff]  ;;  %v568_v31 = vld [vmem:[%s3281_s19 + $0xb48] sm:$0xff]  ;;  %v569_v35 = vld [vmem:[%s3281_s19 + $0xb50] sm:$0xff] }
 0x16b   : > { %2609 = vst [vmem:[%s3311_s20 + $0xb10] sm:$0xff] %v2097_v20  ;;  %v2100_v32 = vmul.f32 %v1588_v21, %v564_v17  ;;  %v1591_v33 = vmul.f32 1.25, %v1079_v30  ;;  %v1080_v34 = vld [vmem:[%s3289_s29 + $0xb48] sm:$0xff]  ;;  %v1081_v36 = vld [vmem:[%s3289_s29 + $0xb50] sm:$0xff]  ;;  %2610 = vst [vmem:[%s3311_s20 + $0xb18] sm:$0xff] %v2098_v25  ;;  %v2101_v37 = vmul.f32 %v1589_v27, %v565_v19 }
 0x16c   : > { %2611 = vst [vmem:[%s3311_s20 + $0xb20] sm:$0xff] %v2099_v26  ;;  %v2102_v38 = vmul.f32 %v1590_v28, %v566_v23  ;;  %v1592_v39 = vmul.f32 1.25, %v1080_v34  ;;  %v1593_v40 = vmul.f32 1.25, %v1081_v36  ;;  %v570_v41 = vld [vmem:[%s3281_s19 + $0xb58] sm:$0xff]  ;;  %v571_v43 = vld [vmem:[%s3281_s19 + $0xb60] sm:$0xff]  ;;  %v572_v47 = vld [vmem:[%s3281_s19 + $0xb68] sm:$0xff] }
 0x16d   : > { %v1082_v42 = vld [vmem:[%s3289_s29 + $0xb58] sm:$0xff]  ;;  %2612 = vst [vmem:[%s3311_s20 + $0xb28] sm:$0xff] %v2100_v32  ;;  %v2103_v44 = vmul.f32 %v1591_v33, %v567_v29  ;;  %v1083_v46 = vld [vmem:[%s3289_s29 + $0xb60] sm:$0xff]  ;;  %v1084_v48 = vld [vmem:[%s3289_s29 + $0xb68] sm:$0xff] }
 0x16e   : > { %v1594_v45 = vmul.f32 1.25, %v1082_v42  ;;  %2613 = vst [vmem:[%s3311_s20 + $0xb30] sm:$0xff] %v2101_v37  ;;  %2614 = vst [vmem:[%s3311_s20 + $0xb38] sm:$0xff] %v2102_v38  ;;  %v2104_v49 = vmul.f32 %v1592_v39, %v568_v31  ;;  %v2105_v50 = vmul.f32 %v1593_v40, %v569_v35  ;;  %v1595_v51 = vmul.f32 1.25, %v1083_v46  ;;  %v573_v53 = vld [vmem:[%s3281_s19 + $0xb70] sm:$0xff]  ;;  %v574_v55 = vld [vmem:[%s3281_s19 + $0xb78] sm:$0xff] }
 0x16f   : > { %v1596_v52 = vmul.f32 1.25, %v1084_v48  ;;  %v1085_v54 = vld [vmem:[%s3289_s29 + $0xb70] sm:$0xff]  ;;  %2615 = vst [vmem:[%s3311_s20 + $0xb40] sm:$0xff] %v2103_v44  ;;  %v1086_v58 = vld [vmem:[%s3289_s29 + $0xb78] sm:$0xff]  ;;  %v575_v59 = vld [vmem:[%s3281_s19 + $0xb80] sm:$0xff] }
 0x170   : > { %v2106_v56 = vmul.f32 %v1594_v45, %v570_v41  ;;  %v1597_v57 = vmul.f32 1.25, %v1085_v54  ;;  %v1087_v60 = vld [vmem:[%s3289_s29 + $0xb80] sm:$0xff]  ;;  %2616 = vst [vmem:[%s3311_s20 + $0xb48] sm:$0xff] %v2104_v49  ;;  %2617 = vst [vmem:[%s3311_s20 + $0xb50] sm:$0xff] %v2105_v50  ;;  %v2107_v61 = vmul.f32 %v1595_v51, %v571_v43  ;;  %v1598_v63 = vmul.f32 1.25, %v1086_v58  ;;  %v576_v1 = vld [vmem:[%s3281_s19 + $0xb88] sm:$0xff] }
 0x171   : > { %v2108_v62 = vmul.f32 %v1596_v52, %v572_v47  ;;  %v1599_v0 = vmul.f32 1.25, %v1087_v60  ;;  %v1088_v2 = vld [vmem:[%s3289_s29 + $0xb88] sm:$0xff]  ;;  %v577_v3 = vld [vmem:[%s3281_s19 + $0xb90] sm:$0xff]  ;;  %v578_v7 = vld [vmem:[%s3281_s19 + $0xb98] sm:$0xff] }
 0x172   : > { %2618 = vst [vmem:[%s3311_s20 + $0xb58] sm:$0xff] %v2106_v56  ;;  %v2109_v4 = vmul.f32 %v1597_v57, %v573_v53  ;;  %v1600_v5 = vmul.f32 1.25, %v1088_v2  ;;  %v1089_v6 = vld [vmem:[%s3289_s29 + $0xb90] sm:$0xff]  ;;  %v1090_v8 = vld [vmem:[%s3289_s29 + $0xb98] sm:$0xff]  ;;  %2619 = vst [vmem:[%s3311_s20 + $0xb60] sm:$0xff] %v2107_v61  ;;  %v2110_v9 = vmul.f32 %v1598_v63, %v574_v55 }
 0x173   : > { %2620 = vst [vmem:[%s3311_s20 + $0xb68] sm:$0xff] %v2108_v62  ;;  %v2111_v10 = vmul.f32 %v1599_v0, %v575_v59  ;;  %v1601_v11 = vmul.f32 1.25, %v1089_v6  ;;  %v1602_v12 = vmul.f32 1.25, %v1090_v8  ;;  %v579_v13 = vld [vmem:[%s3281_s19 + $0xba0] sm:$0xff]  ;;  %v580_v15 = vld [vmem:[%s3281_s19 + $0xba8] sm:$0xff]  ;;  %v581_v19 = vld [vmem:[%s3281_s19 + $0xbb0] sm:$0xff] }
 0x174   : > { %v1091_v14 = vld [vmem:[%s3289_s29 + $0xba0] sm:$0xff]  ;;  %2621 = vst [vmem:[%s3311_s20 + $0xb70] sm:$0xff] %v2109_v4  ;;  %v2112_v16 = vmul.f32 %v1600_v5, %v576_v1  ;;  %v1092_v18 = vld [vmem:[%s3289_s29 + $0xba8] sm:$0xff]  ;;  %v1093_v20 = vld [vmem:[%s3289_s29 + $0xbb0] sm:$0xff] }
 0x175   : > { %v1603_v17 = vmul.f32 1.25, %v1091_v14  ;;  %2622 = vst [vmem:[%s3311_s20 + $0xb78] sm:$0xff] %v2110_v9  ;;  %2623 = vst [vmem:[%s3311_s20 + $0xb80] sm:$0xff] %v2111_v10  ;;  %v2113_v21 = vmul.f32 %v1601_v11, %v577_v3  ;;  %v2114_v22 = vmul.f32 %v1602_v12, %v578_v7  ;;  %v1604_v23 = vmul.f32 1.25, %v1092_v18  ;;  %v582_v25 = vld [vmem:[%s3281_s19 + $0xbb8] sm:$0xff]  ;;  %v583_v27 = vld [vmem:[%s3281_s19 + $0xbc0] sm:$0xff] }
 0x176   : > { %v1605_v24 = vmul.f32 1.25, %v1093_v20  ;;  %v1094_v26 = vld [vmem:[%s3289_s29 + $0xbb8] sm:$0xff]  ;;  %2624 = vst [vmem:[%s3311_s20 + $0xb88] sm:$0xff] %v2112_v16  ;;  %v1095_v30 = vld [vmem:[%s3289_s29 + $0xbc0] sm:$0xff]  ;;  %v584_v31 = vld [vmem:[%s3281_s19 + $0xbc8] sm:$0xff] }
 0x177   : > { %v2115_v28 = vmul.f32 %v1603_v17, %v579_v13  ;;  %v1606_v29 = vmul.f32 1.25, %v1094_v26  ;;  %v1096_v32 = vld [vmem:[%s3289_s29 + $0xbc8] sm:$0xff]  ;;  %2625 = vst [vmem:[%s3311_s20 + $0xb90] sm:$0xff] %v2113_v21  ;;  %2626 = vst [vmem:[%s3311_s20 + $0xb98] sm:$0xff] %v2114_v22  ;;  %v2116_v33 = vmul.f32 %v1604_v23, %v580_v15  ;;  %v1607_v35 = vmul.f32 1.25, %v1095_v30  ;;  %v585_v37 = vld [vmem:[%s3281_s19 + $0xbd0] sm:$0xff] }
 0x178   : > { %v2117_v34 = vmul.f32 %v1605_v24, %v581_v19  ;;  %v1608_v36 = vmul.f32 1.25, %v1096_v32  ;;  %v1097_v38 = vld [vmem:[%s3289_s29 + $0xbd0] sm:$0xff]  ;;  %v586_v39 = vld [vmem:[%s3281_s19 + $0xbd8] sm:$0xff]  ;;  %v587_v43 = vld [vmem:[%s3281_s19 + $0xbe0] sm:$0xff] }
 0x179   : > { %2627 = vst [vmem:[%s3311_s20 + $0xba0] sm:$0xff] %v2115_v28  ;;  %v2118_v40 = vmul.f32 %v1606_v29, %v582_v25  ;;  %v1609_v41 = vmul.f32 1.25, %v1097_v38  ;;  %v1098_v42 = vld [vmem:[%s3289_s29 + $0xbd8] sm:$0xff]  ;;  %v1099_v44 = vld [vmem:[%s3289_s29 + $0xbe0] sm:$0xff]  ;;  %2628 = vst [vmem:[%s3311_s20 + $0xba8] sm:$0xff] %v2116_v33  ;;  %v2119_v45 = vmul.f32 %v1607_v35, %v583_v27 }
 0x17a   : > { %2629 = vst [vmem:[%s3311_s20 + $0xbb0] sm:$0xff] %v2117_v34  ;;  %v2120_v46 = vmul.f32 %v1608_v36, %v584_v31  ;;  %v1610_v47 = vmul.f32 1.25, %v1098_v42  ;;  %v1611_v48 = vmul.f32 1.25, %v1099_v44  ;;  %v588_v49 = vld [vmem:[%s3281_s19 + $0xbe8] sm:$0xff]  ;;  %v589_v51 = vld [vmem:[%s3281_s19 + $0xbf0] sm:$0xff]  ;;  %v590_v55 = vld [vmem:[%s3281_s19 + $0xbf8] sm:$0xff] }
 0x17b   : > { %v1100_v50 = vld [vmem:[%s3289_s29 + $0xbe8] sm:$0xff]  ;;  %2630 = vst [vmem:[%s3311_s20 + $0xbb8] sm:$0xff] %v2118_v40  ;;  %v2121_v52 = vmul.f32 %v1609_v41, %v585_v37  ;;  %v1101_v54 = vld [vmem:[%s3289_s29 + $0xbf0] sm:$0xff]  ;;  %v1102_v56 = vld [vmem:[%s3289_s29 + $0xbf8] sm:$0xff] }
 0x17c   : > { %v1612_v53 = vmul.f32 1.25, %v1100_v50  ;;  %2631 = vst [vmem:[%s3311_s20 + $0xbc0] sm:$0xff] %v2119_v45  ;;  %2632 = vst [vmem:[%s3311_s20 + $0xbc8] sm:$0xff] %v2120_v46  ;;  %v2122_v57 = vmul.f32 %v1610_v47, %v586_v39  ;;  %v2123_v58 = vmul.f32 %v1611_v48, %v587_v43  ;;  %v1613_v59 = vmul.f32 1.25, %v1101_v54  ;;  %v591_v61 = vld [vmem:[%s3281_s19 + $0xc00] sm:$0xff]  ;;  %v592_v63 = vld [vmem:[%s3281_s19 + $0xc08] sm:$0xff] }
 0x17d   : > { %v1614_v60 = vmul.f32 1.25, %v1102_v56  ;;  %v1103_v62 = vld [vmem:[%s3289_s29 + $0xc00] sm:$0xff]  ;;  %2633 = vst [vmem:[%s3311_s20 + $0xbd0] sm:$0xff] %v2121_v52  ;;  %v1104_v2 = vld [vmem:[%s3289_s29 + $0xc08] sm:$0xff]  ;;  %v593_v3 = vld [vmem:[%s3281_s19 + $0xc10] sm:$0xff] }
 0x17e   : > { %v2124_v0 = vmul.f32 %v1612_v53, %v588_v49  ;;  %v1615_v1 = vmul.f32 1.25, %v1103_v62  ;;  %v1105_v4 = vld [vmem:[%s3289_s29 + $0xc10] sm:$0xff]  ;;  %2634 = vst [vmem:[%s3311_s20 + $0xbd8] sm:$0xff] %v2122_v57  ;;  %2635 = vst [vmem:[%s3311_s20 + $0xbe0] sm:$0xff] %v2123_v58  ;;  %v2125_v5 = vmul.f32 %v1613_v59, %v589_v51  ;;  %v1616_v7 = vmul.f32 1.25, %v1104_v2  ;;  %v594_v9 = vld [vmem:[%s3281_s19 + $0xc18] sm:$0xff] }
 0x17f   : > { %v2126_v6 = vmul.f32 %v1614_v60, %v590_v55  ;;  %v1617_v8 = vmul.f32 1.25, %v1105_v4  ;;  %v1106_v10 = vld [vmem:[%s3289_s29 + $0xc18] sm:$0xff]  ;;  %v595_v11 = vld [vmem:[%s3281_s19 + $0xc20] sm:$0xff]  ;;  %v596_v15 = vld [vmem:[%s3281_s19 + $0xc28] sm:$0xff] }
 0x180   : > { %2636 = vst [vmem:[%s3311_s20 + $0xbe8] sm:$0xff] %v2124_v0  ;;  %v2127_v12 = vmul.f32 %v1615_v1, %v591_v61  ;;  %v1618_v13 = vmul.f32 1.25, %v1106_v10  ;;  %v1107_v14 = vld [vmem:[%s3289_s29 + $0xc20] sm:$0xff]  ;;  %v1108_v16 = vld [vmem:[%s3289_s29 + $0xc28] sm:$0xff]  ;;  %2637 = vst [vmem:[%s3311_s20 + $0xbf0] sm:$0xff] %v2125_v5  ;;  %v2128_v17 = vmul.f32 %v1616_v7, %v592_v63 }
 0x181   : > { %2638 = vst [vmem:[%s3311_s20 + $0xbf8] sm:$0xff] %v2126_v6  ;;  %v2129_v18 = vmul.f32 %v1617_v8, %v593_v3  ;;  %v1619_v19 = vmul.f32 1.25, %v1107_v14  ;;  %v1620_v20 = vmul.f32 1.25, %v1108_v16  ;;  %v597_v21 = vld [vmem:[%s3281_s19 + $0xc30] sm:$0xff]  ;;  %v598_v23 = vld [vmem:[%s3281_s19 + $0xc38] sm:$0xff]  ;;  %v599_v27 = vld [vmem:[%s3281_s19 + $0xc40] sm:$0xff] }
 0x182   : > { %v1109_v22 = vld [vmem:[%s3289_s29 + $0xc30] sm:$0xff]  ;;  %2639 = vst [vmem:[%s3311_s20 + $0xc00] sm:$0xff] %v2127_v12  ;;  %v2130_v24 = vmul.f32 %v1618_v13, %v594_v9  ;;  %v1110_v26 = vld [vmem:[%s3289_s29 + $0xc38] sm:$0xff]  ;;  %v1111_v28 = vld [vmem:[%s3289_s29 + $0xc40] sm:$0xff] }
 0x183   : > { %v1621_v25 = vmul.f32 1.25, %v1109_v22  ;;  %2640 = vst [vmem:[%s3311_s20 + $0xc08] sm:$0xff] %v2128_v17  ;;  %2641 = vst [vmem:[%s3311_s20 + $0xc10] sm:$0xff] %v2129_v18  ;;  %v2131_v29 = vmul.f32 %v1619_v19, %v595_v11  ;;  %v2132_v30 = vmul.f32 %v1620_v20, %v596_v15  ;;  %v1622_v31 = vmul.f32 1.25, %v1110_v26  ;;  %v600_v33 = vld [vmem:[%s3281_s19 + $0xc48] sm:$0xff]  ;;  %v601_v35 = vld [vmem:[%s3281_s19 + $0xc50] sm:$0xff] }
 0x184   : > { %v1623_v32 = vmul.f32 1.25, %v1111_v28  ;;  %v1112_v34 = vld [vmem:[%s3289_s29 + $0xc48] sm:$0xff]  ;;  %2642 = vst [vmem:[%s3311_s20 + $0xc18] sm:$0xff] %v2130_v24  ;;  %v1113_v38 = vld [vmem:[%s3289_s29 + $0xc50] sm:$0xff]  ;;  %v602_v39 = vld [vmem:[%s3281_s19 + $0xc58] sm:$0xff] }
 0x185   : > { %v2133_v36 = vmul.f32 %v1621_v25, %v597_v21  ;;  %v1624_v37 = vmul.f32 1.25, %v1112_v34  ;;  %v1114_v40 = vld [vmem:[%s3289_s29 + $0xc58] sm:$0xff]  ;;  %2643 = vst [vmem:[%s3311_s20 + $0xc20] sm:$0xff] %v2131_v29  ;;  %2644 = vst [vmem:[%s3311_s20 + $0xc28] sm:$0xff] %v2132_v30  ;;  %v2134_v41 = vmul.f32 %v1622_v31, %v598_v23  ;;  %v1625_v43 = vmul.f32 1.25, %v1113_v38  ;;  %v603_v45 = vld [vmem:[%s3281_s19 + $0xc60] sm:$0xff] }
 0x186   : > { %v2135_v42 = vmul.f32 %v1623_v32, %v599_v27  ;;  %v1626_v44 = vmul.f32 1.25, %v1114_v40  ;;  %v1115_v46 = vld [vmem:[%s3289_s29 + $0xc60] sm:$0xff]  ;;  %v604_v47 = vld [vmem:[%s3281_s19 + $0xc68] sm:$0xff]  ;;  %v605_v51 = vld [vmem:[%s3281_s19 + $0xc70] sm:$0xff] }
 0x187   : > { %2645 = vst [vmem:[%s3311_s20 + $0xc30] sm:$0xff] %v2133_v36  ;;  %v2136_v48 = vmul.f32 %v1624_v37, %v600_v33  ;;  %v1627_v49 = vmul.f32 1.25, %v1115_v46  ;;  %v1116_v50 = vld [vmem:[%s3289_s29 + $0xc68] sm:$0xff]  ;;  %v1117_v52 = vld [vmem:[%s3289_s29 + $0xc70] sm:$0xff]  ;;  %2646 = vst [vmem:[%s3311_s20 + $0xc38] sm:$0xff] %v2134_v41  ;;  %v2137_v53 = vmul.f32 %v1625_v43, %v601_v35 }
 0x188   : > { %2647 = vst [vmem:[%s3311_s20 + $0xc40] sm:$0xff] %v2135_v42  ;;  %v2138_v54 = vmul.f32 %v1626_v44, %v602_v39  ;;  %v1628_v55 = vmul.f32 1.25, %v1116_v50  ;;  %v1629_v56 = vmul.f32 1.25, %v1117_v52  ;;  %v606_v57 = vld [vmem:[%s3281_s19 + $0xc78] sm:$0xff]  ;;  %v607_v59 = vld [vmem:[%s3281_s19 + $0xc80] sm:$0xff]  ;;  %v608_v63 = vld [vmem:[%s3281_s19 + $0xc88] sm:$0xff] }
 0x189   : > { %v1118_v58 = vld [vmem:[%s3289_s29 + $0xc78] sm:$0xff]  ;;  %2648 = vst [vmem:[%s3311_s20 + $0xc48] sm:$0xff] %v2136_v48  ;;  %v2139_v60 = vmul.f32 %v1627_v49, %v603_v45  ;;  %v1119_v62 = vld [vmem:[%s3289_s29 + $0xc80] sm:$0xff]  ;;  %v1120_v0 = vld [vmem:[%s3289_s29 + $0xc88] sm:$0xff] }
 0x18a   : > { %v1630_v61 = vmul.f32 1.25, %v1118_v58  ;;  %2649 = vst [vmem:[%s3311_s20 + $0xc50] sm:$0xff] %v2137_v53  ;;  %2650 = vst [vmem:[%s3311_s20 + $0xc58] sm:$0xff] %v2138_v54  ;;  %v2140_v1 = vmul.f32 %v1628_v55, %v604_v47  ;;  %v2141_v2 = vmul.f32 %v1629_v56, %v605_v51  ;;  %v1631_v3 = vmul.f32 1.25, %v1119_v62  ;;  %v609_v5 = vld [vmem:[%s3281_s19 + $0xc90] sm:$0xff]  ;;  %v610_v7 = vld [vmem:[%s3281_s19 + $0xc98] sm:$0xff] }
 0x18b   : > { %v1632_v4 = vmul.f32 1.25, %v1120_v0  ;;  %v1121_v6 = vld [vmem:[%s3289_s29 + $0xc90] sm:$0xff]  ;;  %2651 = vst [vmem:[%s3311_s20 + $0xc60] sm:$0xff] %v2139_v60  ;;  %v1122_v10 = vld [vmem:[%s3289_s29 + $0xc98] sm:$0xff]  ;;  %v611_v11 = vld [vmem:[%s3281_s19 + $0xca0] sm:$0xff] }
 0x18c   : > { %v2142_v8 = vmul.f32 %v1630_v61, %v606_v57  ;;  %v1633_v9 = vmul.f32 1.25, %v1121_v6  ;;  %v1123_v12 = vld [vmem:[%s3289_s29 + $0xca0] sm:$0xff]  ;;  %2652 = vst [vmem:[%s3311_s20 + $0xc68] sm:$0xff] %v2140_v1  ;;  %2653 = vst [vmem:[%s3311_s20 + $0xc70] sm:$0xff] %v2141_v2  ;;  %v2143_v13 = vmul.f32 %v1631_v3, %v607_v59  ;;  %v1634_v15 = vmul.f32 1.25, %v1122_v10  ;;  %v612_v17 = vld [vmem:[%s3281_s19 + $0xca8] sm:$0xff] }
 0x18d   : > { %v2144_v14 = vmul.f32 %v1632_v4, %v608_v63  ;;  %v1635_v16 = vmul.f32 1.25, %v1123_v12  ;;  %v1124_v18 = vld [vmem:[%s3289_s29 + $0xca8] sm:$0xff]  ;;  %v613_v19 = vld [vmem:[%s3281_s19 + $0xcb0] sm:$0xff]  ;;  %v614_v23 = vld [vmem:[%s3281_s19 + $0xcb8] sm:$0xff] }
 0x18e   : > { %2654 = vst [vmem:[%s3311_s20 + $0xc78] sm:$0xff] %v2142_v8  ;;  %v2145_v20 = vmul.f32 %v1633_v9, %v609_v5  ;;  %v1636_v21 = vmul.f32 1.25, %v1124_v18  ;;  %v1125_v22 = vld [vmem:[%s3289_s29 + $0xcb0] sm:$0xff]  ;;  %v1126_v24 = vld [vmem:[%s3289_s29 + $0xcb8] sm:$0xff]  ;;  %2655 = vst [vmem:[%s3311_s20 + $0xc80] sm:$0xff] %v2143_v13  ;;  %v2146_v25 = vmul.f32 %v1634_v15, %v610_v7 }
 0x18f   : > { %2656 = vst [vmem:[%s3311_s20 + $0xc88] sm:$0xff] %v2144_v14  ;;  %v2147_v26 = vmul.f32 %v1635_v16, %v611_v11  ;;  %v1637_v27 = vmul.f32 1.25, %v1125_v22  ;;  %v1638_v28 = vmul.f32 1.25, %v1126_v24  ;;  %v615_v29 = vld [vmem:[%s3281_s19 + $0xcc0] sm:$0xff]  ;;  %v616_v31 = vld [vmem:[%s3281_s19 + $0xcc8] sm:$0xff]  ;;  %v617_v35 = vld [vmem:[%s3281_s19 + $0xcd0] sm:$0xff] }
 0x190   : > { %v1127_v30 = vld [vmem:[%s3289_s29 + $0xcc0] sm:$0xff]  ;;  %2657 = vst [vmem:[%s3311_s20 + $0xc90] sm:$0xff] %v2145_v20  ;;  %v2148_v32 = vmul.f32 %v1636_v21, %v612_v17  ;;  %v1128_v34 = vld [vmem:[%s3289_s29 + $0xcc8] sm:$0xff]  ;;  %v1129_v36 = vld [vmem:[%s3289_s29 + $0xcd0] sm:$0xff] }
 0x191   : > { %v1639_v33 = vmul.f32 1.25, %v1127_v30  ;;  %2658 = vst [vmem:[%s3311_s20 + $0xc98] sm:$0xff] %v2146_v25  ;;  %2659 = vst [vmem:[%s3311_s20 + $0xca0] sm:$0xff] %v2147_v26  ;;  %v2149_v37 = vmul.f32 %v1637_v27, %v613_v19  ;;  %v2150_v38 = vmul.f32 %v1638_v28, %v614_v23  ;;  %v1640_v39 = vmul.f32 1.25, %v1128_v34  ;;  %v618_v41 = vld [vmem:[%s3281_s19 + $0xcd8] sm:$0xff]  ;;  %v619_v43 = vld [vmem:[%s3281_s19 + $0xce0] sm:$0xff] }
 0x192   : > { %v1641_v40 = vmul.f32 1.25, %v1129_v36  ;;  %v1130_v42 = vld [vmem:[%s3289_s29 + $0xcd8] sm:$0xff]  ;;  %2660 = vst [vmem:[%s3311_s20 + $0xca8] sm:$0xff] %v2148_v32  ;;  %v1131_v46 = vld [vmem:[%s3289_s29 + $0xce0] sm:$0xff]  ;;  %v620_v47 = vld [vmem:[%s3281_s19 + $0xce8] sm:$0xff] }
 0x193   : > { %v2151_v44 = vmul.f32 %v1639_v33, %v615_v29  ;;  %v1642_v45 = vmul.f32 1.25, %v1130_v42  ;;  %v1132_v48 = vld [vmem:[%s3289_s29 + $0xce8] sm:$0xff]  ;;  %2661 = vst [vmem:[%s3311_s20 + $0xcb0] sm:$0xff] %v2149_v37  ;;  %2662 = vst [vmem:[%s3311_s20 + $0xcb8] sm:$0xff] %v2150_v38  ;;  %v2152_v49 = vmul.f32 %v1640_v39, %v616_v31  ;;  %v1643_v51 = vmul.f32 1.25, %v1131_v46  ;;  %v621_v53 = vld [vmem:[%s3281_s19 + $0xcf0] sm:$0xff] }
 0x194   : > { %v2153_v50 = vmul.f32 %v1641_v40, %v617_v35  ;;  %v1644_v52 = vmul.f32 1.25, %v1132_v48  ;;  %v1133_v54 = vld [vmem:[%s3289_s29 + $0xcf0] sm:$0xff]  ;;  %v622_v55 = vld [vmem:[%s3281_s19 + $0xcf8] sm:$0xff]  ;;  %v623_v59 = vld [vmem:[%s3281_s19 + $0xd00] sm:$0xff] }
 0x195   : > { %2663 = vst [vmem:[%s3311_s20 + $0xcc0] sm:$0xff] %v2151_v44  ;;  %v2154_v56 = vmul.f32 %v1642_v45, %v618_v41  ;;  %v1645_v57 = vmul.f32 1.25, %v1133_v54  ;;  %v1134_v58 = vld [vmem:[%s3289_s29 + $0xcf8] sm:$0xff]  ;;  %v1135_v60 = vld [vmem:[%s3289_s29 + $0xd00] sm:$0xff]  ;;  %2664 = vst [vmem:[%s3311_s20 + $0xcc8] sm:$0xff] %v2152_v49  ;;  %v2155_v61 = vmul.f32 %v1643_v51, %v619_v43 }
 0x196   : > { %2665 = vst [vmem:[%s3311_s20 + $0xcd0] sm:$0xff] %v2153_v50  ;;  %v2156_v62 = vmul.f32 %v1644_v52, %v620_v47  ;;  %v1646_v63 = vmul.f32 1.25, %v1134_v58  ;;  %v1647_v0 = vmul.f32 1.25, %v1135_v60  ;;  %v624_v1 = vld [vmem:[%s3281_s19 + $0xd08] sm:$0xff]  ;;  %v625_v3 = vld [vmem:[%s3281_s19 + $0xd10] sm:$0xff]  ;;  %v626_v7 = vld [vmem:[%s3281_s19 + $0xd18] sm:$0xff] }
 0x197   : > { %v1136_v2 = vld [vmem:[%s3289_s29 + $0xd08] sm:$0xff]  ;;  %2666 = vst [vmem:[%s3311_s20 + $0xcd8] sm:$0xff] %v2154_v56  ;;  %v2157_v4 = vmul.f32 %v1645_v57, %v621_v53  ;;  %v1137_v6 = vld [vmem:[%s3289_s29 + $0xd10] sm:$0xff]  ;;  %v1138_v8 = vld [vmem:[%s3289_s29 + $0xd18] sm:$0xff] }
 0x198   : > { %v1648_v5 = vmul.f32 1.25, %v1136_v2  ;;  %2667 = vst [vmem:[%s3311_s20 + $0xce0] sm:$0xff] %v2155_v61  ;;  %2668 = vst [vmem:[%s3311_s20 + $0xce8] sm:$0xff] %v2156_v62  ;;  %v2158_v9 = vmul.f32 %v1646_v63, %v622_v55  ;;  %v2159_v10 = vmul.f32 %v1647_v0, %v623_v59  ;;  %v1649_v11 = vmul.f32 1.25, %v1137_v6  ;;  %v627_v13 = vld [vmem:[%s3281_s19 + $0xd20] sm:$0xff]  ;;  %v628_v15 = vld [vmem:[%s3281_s19 + $0xd28] sm:$0xff] }
 0x199   : > { %v1650_v12 = vmul.f32 1.25, %v1138_v8  ;;  %v1139_v14 = vld [vmem:[%s3289_s29 + $0xd20] sm:$0xff]  ;;  %2669 = vst [vmem:[%s3311_s20 + $0xcf0] sm:$0xff] %v2157_v4  ;;  %v1140_v18 = vld [vmem:[%s3289_s29 + $0xd28] sm:$0xff]  ;;  %v629_v19 = vld [vmem:[%s3281_s19 + $0xd30] sm:$0xff] }
 0x19a   : > { %v2160_v16 = vmul.f32 %v1648_v5, %v624_v1  ;;  %v1651_v17 = vmul.f32 1.25, %v1139_v14  ;;  %v1141_v20 = vld [vmem:[%s3289_s29 + $0xd30] sm:$0xff]  ;;  %2670 = vst [vmem:[%s3311_s20 + $0xcf8] sm:$0xff] %v2158_v9  ;;  %2671 = vst [vmem:[%s3311_s20 + $0xd00] sm:$0xff] %v2159_v10  ;;  %v2161_v21 = vmul.f32 %v1649_v11, %v625_v3  ;;  %v1652_v23 = vmul.f32 1.25, %v1140_v18  ;;  %v630_v25 = vld [vmem:[%s3281_s19 + $0xd38] sm:$0xff] }
 0x19b   : > { %v2162_v22 = vmul.f32 %v1650_v12, %v626_v7  ;;  %v1653_v24 = vmul.f32 1.25, %v1141_v20  ;;  %v1142_v26 = vld [vmem:[%s3289_s29 + $0xd38] sm:$0xff]  ;;  %v631_v27 = vld [vmem:[%s3281_s19 + $0xd40] sm:$0xff]  ;;  %v632_v31 = vld [vmem:[%s3281_s19 + $0xd48] sm:$0xff] }
 0x19c   : > { %2672 = vst [vmem:[%s3311_s20 + $0xd08] sm:$0xff] %v2160_v16  ;;  %v2163_v28 = vmul.f32 %v1651_v17, %v627_v13  ;;  %v1654_v29 = vmul.f32 1.25, %v1142_v26  ;;  %v1143_v30 = vld [vmem:[%s3289_s29 + $0xd40] sm:$0xff]  ;;  %v1144_v32 = vld [vmem:[%s3289_s29 + $0xd48] sm:$0xff]  ;;  %2673 = vst [vmem:[%s3311_s20 + $0xd10] sm:$0xff] %v2161_v21  ;;  %v2164_v33 = vmul.f32 %v1652_v23, %v628_v15 }
 0x19d   : > { %2674 = vst [vmem:[%s3311_s20 + $0xd18] sm:$0xff] %v2162_v22  ;;  %v2165_v34 = vmul.f32 %v1653_v24, %v629_v19  ;;  %v1655_v35 = vmul.f32 1.25, %v1143_v30  ;;  %v1656_v36 = vmul.f32 1.25, %v1144_v32  ;;  %v633_v37 = vld [vmem:[%s3281_s19 + $0xd50] sm:$0xff]  ;;  %v634_v39 = vld [vmem:[%s3281_s19 + $0xd58] sm:$0xff]  ;;  %v635_v43 = vld [vmem:[%s3281_s19 + $0xd60] sm:$0xff] }
 0x19e   : > { %v1145_v38 = vld [vmem:[%s3289_s29 + $0xd50] sm:$0xff]  ;;  %2675 = vst [vmem:[%s3311_s20 + $0xd20] sm:$0xff] %v2163_v28  ;;  %v2166_v40 = vmul.f32 %v1654_v29, %v630_v25  ;;  %v1146_v42 = vld [vmem:[%s3289_s29 + $0xd58] sm:$0xff]  ;;  %v1147_v44 = vld [vmem:[%s3289_s29 + $0xd60] sm:$0xff] }
 0x19f   : > { %v1657_v41 = vmul.f32 1.25, %v1145_v38  ;;  %2676 = vst [vmem:[%s3311_s20 + $0xd28] sm:$0xff] %v2164_v33  ;;  %2677 = vst [vmem:[%s3311_s20 + $0xd30] sm:$0xff] %v2165_v34  ;;  %v2167_v45 = vmul.f32 %v1655_v35, %v631_v27  ;;  %v2168_v46 = vmul.f32 %v1656_v36, %v632_v31  ;;  %v1658_v47 = vmul.f32 1.25, %v1146_v42  ;;  %v636_v49 = vld [vmem:[%s3281_s19 + $0xd68] sm:$0xff]  ;;  %v637_v51 = vld [vmem:[%s3281_s19 + $0xd70] sm:$0xff] }
 0x1a0   : > { %v1659_v48 = vmul.f32 1.25, %v1147_v44  ;;  %v1148_v50 = vld [vmem:[%s3289_s29 + $0xd68] sm:$0xff]  ;;  %2678 = vst [vmem:[%s3311_s20 + $0xd38] sm:$0xff] %v2166_v40  ;;  %v1149_v54 = vld [vmem:[%s3289_s29 + $0xd70] sm:$0xff]  ;;  %v638_v55 = vld [vmem:[%s3281_s19 + $0xd78] sm:$0xff] }
 0x1a1   : > { %v2169_v52 = vmul.f32 %v1657_v41, %v633_v37  ;;  %v1660_v53 = vmul.f32 1.25, %v1148_v50  ;;  %v1150_v56 = vld [vmem:[%s3289_s29 + $0xd78] sm:$0xff]  ;;  %2679 = vst [vmem:[%s3311_s20 + $0xd40] sm:$0xff] %v2167_v45  ;;  %2680 = vst [vmem:[%s3311_s20 + $0xd48] sm:$0xff] %v2168_v46  ;;  %v2170_v57 = vmul.f32 %v1658_v47, %v634_v39  ;;  %v1661_v59 = vmul.f32 1.25, %v1149_v54  ;;  %v639_v61 = vld [vmem:[%s3281_s19 + $0xd80] sm:$0xff] }
 0x1a2   : > { %v2171_v58 = vmul.f32 %v1659_v48, %v635_v43  ;;  %v1662_v60 = vmul.f32 1.25, %v1150_v56  ;;  %v1151_v62 = vld [vmem:[%s3289_s29 + $0xd80] sm:$0xff]  ;;  %v640_v63 = vld [vmem:[%s3281_s19 + $0xd88] sm:$0xff]  ;;  %v641_v3 = vld [vmem:[%s3281_s19 + $0xd90] sm:$0xff] }
 0x1a3   : > { %2681 = vst [vmem:[%s3311_s20 + $0xd50] sm:$0xff] %v2169_v52  ;;  %v2172_v0 = vmul.f32 %v1660_v53, %v636_v49  ;;  %v1663_v1 = vmul.f32 1.25, %v1151_v62  ;;  %v1152_v2 = vld [vmem:[%s3289_s29 + $0xd88] sm:$0xff]  ;;  %v1153_v4 = vld [vmem:[%s3289_s29 + $0xd90] sm:$0xff]  ;;  %2682 = vst [vmem:[%s3311_s20 + $0xd58] sm:$0xff] %v2170_v57  ;;  %v2173_v5 = vmul.f32 %v1661_v59, %v637_v51 }
 0x1a4   : > { %2683 = vst [vmem:[%s3311_s20 + $0xd60] sm:$0xff] %v2171_v58  ;;  %v2174_v6 = vmul.f32 %v1662_v60, %v638_v55  ;;  %v1664_v7 = vmul.f32 1.25, %v1152_v2  ;;  %v1665_v8 = vmul.f32 1.25, %v1153_v4  ;;  %v642_v9 = vld [vmem:[%s3281_s19 + $0xd98] sm:$0xff]  ;;  %v643_v11 = vld [vmem:[%s3281_s19 + $0xda0] sm:$0xff]  ;;  %v644_v15 = vld [vmem:[%s3281_s19 + $0xda8] sm:$0xff] }
 0x1a5   : > { %v1154_v10 = vld [vmem:[%s3289_s29 + $0xd98] sm:$0xff]  ;;  %2684 = vst [vmem:[%s3311_s20 + $0xd68] sm:$0xff] %v2172_v0  ;;  %v2175_v12 = vmul.f32 %v1663_v1, %v639_v61  ;;  %v1155_v14 = vld [vmem:[%s3289_s29 + $0xda0] sm:$0xff]  ;;  %v1156_v16 = vld [vmem:[%s3289_s29 + $0xda8] sm:$0xff] }
 0x1a6   : > { %v1666_v13 = vmul.f32 1.25, %v1154_v10  ;;  %2685 = vst [vmem:[%s3311_s20 + $0xd70] sm:$0xff] %v2173_v5  ;;  %2686 = vst [vmem:[%s3311_s20 + $0xd78] sm:$0xff] %v2174_v6  ;;  %v2176_v17 = vmul.f32 %v1664_v7, %v640_v63  ;;  %v2177_v18 = vmul.f32 %v1665_v8, %v641_v3  ;;  %v1667_v19 = vmul.f32 1.25, %v1155_v14  ;;  %v645_v21 = vld [vmem:[%s3281_s19 + $0xdb0] sm:$0xff]  ;;  %v646_v23 = vld [vmem:[%s3281_s19 + $0xdb8] sm:$0xff] }
 0x1a7   : > { %v1668_v20 = vmul.f32 1.25, %v1156_v16  ;;  %v1157_v22 = vld [vmem:[%s3289_s29 + $0xdb0] sm:$0xff]  ;;  %2687 = vst [vmem:[%s3311_s20 + $0xd80] sm:$0xff] %v2175_v12  ;;  %v1158_v26 = vld [vmem:[%s3289_s29 + $0xdb8] sm:$0xff]  ;;  %v647_v27 = vld [vmem:[%s3281_s19 + $0xdc0] sm:$0xff] }
 0x1a8   : > { %v2178_v24 = vmul.f32 %v1666_v13, %v642_v9  ;;  %v1669_v25 = vmul.f32 1.25, %v1157_v22  ;;  %v1159_v28 = vld [vmem:[%s3289_s29 + $0xdc0] sm:$0xff]  ;;  %2688 = vst [vmem:[%s3311_s20 + $0xd88] sm:$0xff] %v2176_v17  ;;  %2689 = vst [vmem:[%s3311_s20 + $0xd90] sm:$0xff] %v2177_v18  ;;  %v2179_v29 = vmul.f32 %v1667_v19, %v643_v11  ;;  %v1670_v31 = vmul.f32 1.25, %v1158_v26  ;;  %v648_v33 = vld [vmem:[%s3281_s19 + $0xdc8] sm:$0xff] }
 0x1a9   : > { %v2180_v30 = vmul.f32 %v1668_v20, %v644_v15  ;;  %v1671_v32 = vmul.f32 1.25, %v1159_v28  ;;  %v1160_v34 = vld [vmem:[%s3289_s29 + $0xdc8] sm:$0xff]  ;;  %v649_v35 = vld [vmem:[%s3281_s19 + $0xdd0] sm:$0xff]  ;;  %v650_v39 = vld [vmem:[%s3281_s19 + $0xdd8] sm:$0xff] }
 0x1aa   : > { %2690 = vst [vmem:[%s3311_s20 + $0xd98] sm:$0xff] %v2178_v24  ;;  %v2181_v36 = vmul.f32 %v1669_v25, %v645_v21  ;;  %v1672_v37 = vmul.f32 1.25, %v1160_v34  ;;  %v1161_v38 = vld [vmem:[%s3289_s29 + $0xdd0] sm:$0xff]  ;;  %v1162_v40 = vld [vmem:[%s3289_s29 + $0xdd8] sm:$0xff]  ;;  %2691 = vst [vmem:[%s3311_s20 + $0xda0] sm:$0xff] %v2179_v29  ;;  %v2182_v41 = vmul.f32 %v1670_v31, %v646_v23 }
 0x1ab   : > { %2692 = vst [vmem:[%s3311_s20 + $0xda8] sm:$0xff] %v2180_v30  ;;  %v2183_v42 = vmul.f32 %v1671_v32, %v647_v27  ;;  %v1673_v43 = vmul.f32 1.25, %v1161_v38  ;;  %v1674_v44 = vmul.f32 1.25, %v1162_v40  ;;  %v651_v45 = vld [vmem:[%s3281_s19 + $0xde0] sm:$0xff]  ;;  %v652_v47 = vld [vmem:[%s3281_s19 + $0xde8] sm:$0xff]  ;;  %v653_v51 = vld [vmem:[%s3281_s19 + $0xdf0] sm:$0xff] }
 0x1ac   : > { %v1163_v46 = vld [vmem:[%s3289_s29 + $0xde0] sm:$0xff]  ;;  %2693 = vst [vmem:[%s3311_s20 + $0xdb0] sm:$0xff] %v2181_v36  ;;  %v2184_v48 = vmul.f32 %v1672_v37, %v648_v33  ;;  %v1164_v50 = vld [vmem:[%s3289_s29 + $0xde8] sm:$0xff]  ;;  %v1165_v52 = vld [vmem:[%s3289_s29 + $0xdf0] sm:$0xff] }
 0x1ad   : > { %v1675_v49 = vmul.f32 1.25, %v1163_v46  ;;  %2694 = vst [vmem:[%s3311_s20 + $0xdb8] sm:$0xff] %v2182_v41  ;;  %2695 = vst [vmem:[%s3311_s20 + $0xdc0] sm:$0xff] %v2183_v42  ;;  %v2185_v53 = vmul.f32 %v1673_v43, %v649_v35  ;;  %v2186_v54 = vmul.f32 %v1674_v44, %v650_v39  ;;  %v1676_v55 = vmul.f32 1.25, %v1164_v50  ;;  %v654_v57 = vld [vmem:[%s3281_s19 + $0xdf8] sm:$0xff]  ;;  %v655_v59 = vld [vmem:[%s3281_s19 + $0xe00] sm:$0xff] }
 0x1ae   : > { %v1677_v56 = vmul.f32 1.25, %v1165_v52  ;;  %v1166_v58 = vld [vmem:[%s3289_s29 + $0xdf8] sm:$0xff]  ;;  %2696 = vst [vmem:[%s3311_s20 + $0xdc8] sm:$0xff] %v2184_v48  ;;  %v1167_v62 = vld [vmem:[%s3289_s29 + $0xe00] sm:$0xff]  ;;  %v656_v63 = vld [vmem:[%s3281_s19 + $0xe08] sm:$0xff] }
 0x1af   : > { %v2187_v60 = vmul.f32 %v1675_v49, %v651_v45  ;;  %v1678_v61 = vmul.f32 1.25, %v1166_v58  ;;  %v1168_v0 = vld [vmem:[%s3289_s29 + $0xe08] sm:$0xff]  ;;  %2697 = vst [vmem:[%s3311_s20 + $0xdd0] sm:$0xff] %v2185_v53  ;;  %2698 = vst [vmem:[%s3311_s20 + $0xdd8] sm:$0xff] %v2186_v54  ;;  %v2188_v1 = vmul.f32 %v1676_v55, %v652_v47  ;;  %v1679_v3 = vmul.f32 1.25, %v1167_v62  ;;  %v657_v5 = vld [vmem:[%s3281_s19 + $0xe10] sm:$0xff] }
 0x1b0   : > { %v2189_v2 = vmul.f32 %v1677_v56, %v653_v51  ;;  %v1680_v4 = vmul.f32 1.25, %v1168_v0  ;;  %v1169_v6 = vld [vmem:[%s3289_s29 + $0xe10] sm:$0xff]  ;;  %v658_v7 = vld [vmem:[%s3281_s19 + $0xe18] sm:$0xff]  ;;  %v659_v11 = vld [vmem:[%s3281_s19 + $0xe20] sm:$0xff] }
 0x1b1   : > { %2699 = vst [vmem:[%s3311_s20 + $0xde0] sm:$0xff] %v2187_v60  ;;  %v2190_v8 = vmul.f32 %v1678_v61, %v654_v57  ;;  %v1681_v9 = vmul.f32 1.25, %v1169_v6  ;;  %v1170_v10 = vld [vmem:[%s3289_s29 + $0xe18] sm:$0xff]  ;;  %v1171_v12 = vld [vmem:[%s3289_s29 + $0xe20] sm:$0xff]  ;;  %2700 = vst [vmem:[%s3311_s20 + $0xde8] sm:$0xff] %v2188_v1  ;;  %v2191_v13 = vmul.f32 %v1679_v3, %v655_v59 }
 0x1b2   : > { %2701 = vst [vmem:[%s3311_s20 + $0xdf0] sm:$0xff] %v2189_v2  ;;  %v2192_v14 = vmul.f32 %v1680_v4, %v656_v63  ;;  %v1682_v15 = vmul.f32 1.25, %v1170_v10  ;;  %v1683_v16 = vmul.f32 1.25, %v1171_v12  ;;  %v660_v17 = vld [vmem:[%s3281_s19 + $0xe28] sm:$0xff]  ;;  %v661_v19 = vld [vmem:[%s3281_s19 + $0xe30] sm:$0xff]  ;;  %v662_v23 = vld [vmem:[%s3281_s19 + $0xe38] sm:$0xff] }
 0x1b3   : > { %v1172_v18 = vld [vmem:[%s3289_s29 + $0xe28] sm:$0xff]  ;;  %2702 = vst [vmem:[%s3311_s20 + $0xdf8] sm:$0xff] %v2190_v8  ;;  %v2193_v20 = vmul.f32 %v1681_v9, %v657_v5  ;;  %v1173_v22 = vld [vmem:[%s3289_s29 + $0xe30] sm:$0xff]  ;;  %v1174_v24 = vld [vmem:[%s3289_s29 + $0xe38] sm:$0xff] }
 0x1b4   : > { %v1684_v21 = vmul.f32 1.25, %v1172_v18  ;;  %2703 = vst [vmem:[%s3311_s20 + $0xe00] sm:$0xff] %v2191_v13  ;;  %2704 = vst [vmem:[%s3311_s20 + $0xe08] sm:$0xff] %v2192_v14  ;;  %v2194_v25 = vmul.f32 %v1682_v15, %v658_v7  ;;  %v2195_v26 = vmul.f32 %v1683_v16, %v659_v11  ;;  %v1685_v27 = vmul.f32 1.25, %v1173_v22  ;;  %v663_v29 = vld [vmem:[%s3281_s19 + $0xe40] sm:$0xff]  ;;  %v664_v31 = vld [vmem:[%s3281_s19 + $0xe48] sm:$0xff] }
 0x1b5   : > { %v1686_v28 = vmul.f32 1.25, %v1174_v24  ;;  %v1175_v30 = vld [vmem:[%s3289_s29 + $0xe40] sm:$0xff]  ;;  %2705 = vst [vmem:[%s3311_s20 + $0xe10] sm:$0xff] %v2193_v20  ;;  %v1176_v34 = vld [vmem:[%s3289_s29 + $0xe48] sm:$0xff]  ;;  %v665_v35 = vld [vmem:[%s3281_s19 + $0xe50] sm:$0xff] }
 0x1b6   : > { %v2196_v32 = vmul.f32 %v1684_v21, %v660_v17  ;;  %v1687_v33 = vmul.f32 1.25, %v1175_v30  ;;  %v1177_v36 = vld [vmem:[%s3289_s29 + $0xe50] sm:$0xff]  ;;  %2706 = vst [vmem:[%s3311_s20 + $0xe18] sm:$0xff] %v2194_v25  ;;  %2707 = vst [vmem:[%s3311_s20 + $0xe20] sm:$0xff] %v2195_v26  ;;  %v2197_v37 = vmul.f32 %v1685_v27, %v661_v19  ;;  %v1688_v39 = vmul.f32 1.25, %v1176_v34  ;;  %v666_v41 = vld [vmem:[%s3281_s19 + $0xe58] sm:$0xff] }
 0x1b7   : > { %v2198_v38 = vmul.f32 %v1686_v28, %v662_v23  ;;  %v1689_v40 = vmul.f32 1.25, %v1177_v36  ;;  %v1178_v42 = vld [vmem:[%s3289_s29 + $0xe58] sm:$0xff]  ;;  %v667_v43 = vld [vmem:[%s3281_s19 + $0xe60] sm:$0xff]  ;;  %v668_v47 = vld [vmem:[%s3281_s19 + $0xe68] sm:$0xff] }
 0x1b8   : > { %2708 = vst [vmem:[%s3311_s20 + $0xe28] sm:$0xff] %v2196_v32  ;;  %v2199_v44 = vmul.f32 %v1687_v33, %v663_v29  ;;  %v1690_v45 = vmul.f32 1.25, %v1178_v42  ;;  %v1179_v46 = vld [vmem:[%s3289_s29 + $0xe60] sm:$0xff]  ;;  %v1180_v48 = vld [vmem:[%s3289_s29 + $0xe68] sm:$0xff]  ;;  %2709 = vst [vmem:[%s3311_s20 + $0xe30] sm:$0xff] %v2197_v37  ;;  %v2200_v49 = vmul.f32 %v1688_v39, %v664_v31 }
 0x1b9   : > { %2710 = vst [vmem:[%s3311_s20 + $0xe38] sm:$0xff] %v2198_v38  ;;  %v2201_v50 = vmul.f32 %v1689_v40, %v665_v35  ;;  %v1691_v51 = vmul.f32 1.25, %v1179_v46  ;;  %v1692_v52 = vmul.f32 1.25, %v1180_v48  ;;  %v669_v53 = vld [vmem:[%s3281_s19 + $0xe70] sm:$0xff]  ;;  %v670_v55 = vld [vmem:[%s3281_s19 + $0xe78] sm:$0xff]  ;;  %v671_v59 = vld [vmem:[%s3281_s19 + $0xe80] sm:$0xff] }
 0x1ba   : > { %v1181_v54 = vld [vmem:[%s3289_s29 + $0xe70] sm:$0xff]  ;;  %2711 = vst [vmem:[%s3311_s20 + $0xe40] sm:$0xff] %v2199_v44  ;;  %v2202_v56 = vmul.f32 %v1690_v45, %v666_v41  ;;  %v1182_v58 = vld [vmem:[%s3289_s29 + $0xe78] sm:$0xff]  ;;  %v1183_v60 = vld [vmem:[%s3289_s29 + $0xe80] sm:$0xff] }
 0x1bb   : > { %v1693_v57 = vmul.f32 1.25, %v1181_v54  ;;  %2712 = vst [vmem:[%s3311_s20 + $0xe48] sm:$0xff] %v2200_v49  ;;  %2713 = vst [vmem:[%s3311_s20 + $0xe50] sm:$0xff] %v2201_v50  ;;  %v2203_v61 = vmul.f32 %v1691_v51, %v667_v43  ;;  %v2204_v62 = vmul.f32 %v1692_v52, %v668_v47  ;;  %v1694_v63 = vmul.f32 1.25, %v1182_v58  ;;  %v672_v1 = vld [vmem:[%s3281_s19 + $0xe88] sm:$0xff]  ;;  %v673_v3 = vld [vmem:[%s3281_s19 + $0xe90] sm:$0xff] }
 0x1bc   : > { %v1695_v0 = vmul.f32 1.25, %v1183_v60  ;;  %v1184_v2 = vld [vmem:[%s3289_s29 + $0xe88] sm:$0xff]  ;;  %2714 = vst [vmem:[%s3311_s20 + $0xe58] sm:$0xff] %v2202_v56  ;;  %v1185_v6 = vld [vmem:[%s3289_s29 + $0xe90] sm:$0xff]  ;;  %v674_v7 = vld [vmem:[%s3281_s19 + $0xe98] sm:$0xff] }
 0x1bd   : > { %v2205_v4 = vmul.f32 %v1693_v57, %v669_v53  ;;  %v1696_v5 = vmul.f32 1.25, %v1184_v2  ;;  %v1186_v8 = vld [vmem:[%s3289_s29 + $0xe98] sm:$0xff]  ;;  %2715 = vst [vmem:[%s3311_s20 + $0xe60] sm:$0xff] %v2203_v61  ;;  %2716 = vst [vmem:[%s3311_s20 + $0xe68] sm:$0xff] %v2204_v62  ;;  %v2206_v9 = vmul.f32 %v1694_v63, %v670_v55  ;;  %v1697_v11 = vmul.f32 1.25, %v1185_v6  ;;  %v675_v13 = vld [vmem:[%s3281_s19 + $0xea0] sm:$0xff] }
 0x1be   : > { %v2207_v10 = vmul.f32 %v1695_v0, %v671_v59  ;;  %v1698_v12 = vmul.f32 1.25, %v1186_v8  ;;  %v1187_v14 = vld [vmem:[%s3289_s29 + $0xea0] sm:$0xff]  ;;  %v676_v15 = vld [vmem:[%s3281_s19 + $0xea8] sm:$0xff]  ;;  %v677_v19 = vld [vmem:[%s3281_s19 + $0xeb0] sm:$0xff] }
 0x1bf   : > { %2717 = vst [vmem:[%s3311_s20 + $0xe70] sm:$0xff] %v2205_v4  ;;  %v2208_v16 = vmul.f32 %v1696_v5, %v672_v1  ;;  %v1699_v17 = vmul.f32 1.25, %v1187_v14  ;;  %v1188_v18 = vld [vmem:[%s3289_s29 + $0xea8] sm:$0xff]  ;;  %v1189_v20 = vld [vmem:[%s3289_s29 + $0xeb0] sm:$0xff]  ;;  %2718 = vst [vmem:[%s3311_s20 + $0xe78] sm:$0xff] %v2206_v9  ;;  %v2209_v21 = vmul.f32 %v1697_v11, %v673_v3 }
 0x1c0   : > { %2719 = vst [vmem:[%s3311_s20 + $0xe80] sm:$0xff] %v2207_v10  ;;  %v2210_v22 = vmul.f32 %v1698_v12, %v674_v7  ;;  %v1700_v23 = vmul.f32 1.25, %v1188_v18  ;;  %v1701_v24 = vmul.f32 1.25, %v1189_v20  ;;  %v678_v25 = vld [vmem:[%s3281_s19 + $0xeb8] sm:$0xff]  ;;  %v679_v27 = vld [vmem:[%s3281_s19 + $0xec0] sm:$0xff]  ;;  %v680_v31 = vld [vmem:[%s3281_s19 + $0xec8] sm:$0xff] }
 0x1c1   : > { %v1190_v26 = vld [vmem:[%s3289_s29 + $0xeb8] sm:$0xff]  ;;  %2720 = vst [vmem:[%s3311_s20 + $0xe88] sm:$0xff] %v2208_v16  ;;  %v2211_v28 = vmul.f32 %v1699_v17, %v675_v13  ;;  %v1191_v30 = vld [vmem:[%s3289_s29 + $0xec0] sm:$0xff]  ;;  %v1192_v32 = vld [vmem:[%s3289_s29 + $0xec8] sm:$0xff] }
 0x1c2   : > { %v1702_v29 = vmul.f32 1.25, %v1190_v26  ;;  %2721 = vst [vmem:[%s3311_s20 + $0xe90] sm:$0xff] %v2209_v21  ;;  %2722 = vst [vmem:[%s3311_s20 + $0xe98] sm:$0xff] %v2210_v22  ;;  %v2212_v33 = vmul.f32 %v1700_v23, %v676_v15  ;;  %v2213_v34 = vmul.f32 %v1701_v24, %v677_v19  ;;  %v1703_v35 = vmul.f32 1.25, %v1191_v30  ;;  %v681_v37 = vld [vmem:[%s3281_s19 + $0xed0] sm:$0xff]  ;;  %v682_v39 = vld [vmem:[%s3281_s19 + $0xed8] sm:$0xff] }
 0x1c3   : > { %v1704_v36 = vmul.f32 1.25, %v1192_v32  ;;  %v1193_v38 = vld [vmem:[%s3289_s29 + $0xed0] sm:$0xff]  ;;  %2723 = vst [vmem:[%s3311_s20 + $0xea0] sm:$0xff] %v2211_v28  ;;  %v1194_v42 = vld [vmem:[%s3289_s29 + $0xed8] sm:$0xff]  ;;  %v683_v43 = vld [vmem:[%s3281_s19 + $0xee0] sm:$0xff] }
 0x1c4   : > { %v2214_v40 = vmul.f32 %v1702_v29, %v678_v25  ;;  %v1705_v41 = vmul.f32 1.25, %v1193_v38  ;;  %v1195_v44 = vld [vmem:[%s3289_s29 + $0xee0] sm:$0xff]  ;;  %2724 = vst [vmem:[%s3311_s20 + $0xea8] sm:$0xff] %v2212_v33  ;;  %2725 = vst [vmem:[%s3311_s20 + $0xeb0] sm:$0xff] %v2213_v34  ;;  %v2215_v45 = vmul.f32 %v1703_v35, %v679_v27  ;;  %v1706_v47 = vmul.f32 1.25, %v1194_v42  ;;  %v684_v49 = vld [vmem:[%s3281_s19 + $0xee8] sm:$0xff] }
 0x1c5   : > { %v2216_v46 = vmul.f32 %v1704_v36, %v680_v31  ;;  %v1707_v48 = vmul.f32 1.25, %v1195_v44  ;;  %v1196_v50 = vld [vmem:[%s3289_s29 + $0xee8] sm:$0xff]  ;;  %v685_v51 = vld [vmem:[%s3281_s19 + $0xef0] sm:$0xff]  ;;  %v686_v55 = vld [vmem:[%s3281_s19 + $0xef8] sm:$0xff] }
 0x1c6   : > { %2726 = vst [vmem:[%s3311_s20 + $0xeb8] sm:$0xff] %v2214_v40  ;;  %v2217_v52 = vmul.f32 %v1705_v41, %v681_v37  ;;  %v1708_v53 = vmul.f32 1.25, %v1196_v50  ;;  %v1197_v54 = vld [vmem:[%s3289_s29 + $0xef0] sm:$0xff]  ;;  %v1198_v56 = vld [vmem:[%s3289_s29 + $0xef8] sm:$0xff]  ;;  %2727 = vst [vmem:[%s3311_s20 + $0xec0] sm:$0xff] %v2215_v45  ;;  %v2218_v57 = vmul.f32 %v1706_v47, %v682_v39 }
 0x1c7   : > { %2728 = vst [vmem:[%s3311_s20 + $0xec8] sm:$0xff] %v2216_v46  ;;  %v2219_v58 = vmul.f32 %v1707_v48, %v683_v43  ;;  %v1709_v59 = vmul.f32 1.25, %v1197_v54  ;;  %v1710_v60 = vmul.f32 1.25, %v1198_v56  ;;  %v687_v61 = vld [vmem:[%s3281_s19 + $0xf00] sm:$0xff]  ;;  %v688_v63 = vld [vmem:[%s3281_s19 + $0xf08] sm:$0xff]  ;;  %v689_v3 = vld [vmem:[%s3281_s19 + $0xf10] sm:$0xff] }
 0x1c8   : > { %v1199_v62 = vld [vmem:[%s3289_s29 + $0xf00] sm:$0xff]  ;;  %2729 = vst [vmem:[%s3311_s20 + $0xed0] sm:$0xff] %v2217_v52  ;;  %v2220_v0 = vmul.f32 %v1708_v53, %v684_v49  ;;  %v1200_v2 = vld [vmem:[%s3289_s29 + $0xf08] sm:$0xff]  ;;  %v1201_v4 = vld [vmem:[%s3289_s29 + $0xf10] sm:$0xff] }
 0x1c9   : > { %v1711_v1 = vmul.f32 1.25, %v1199_v62  ;;  %2730 = vst [vmem:[%s3311_s20 + $0xed8] sm:$0xff] %v2218_v57  ;;  %2731 = vst [vmem:[%s3311_s20 + $0xee0] sm:$0xff] %v2219_v58  ;;  %v2221_v5 = vmul.f32 %v1709_v59, %v685_v51  ;;  %v2222_v6 = vmul.f32 %v1710_v60, %v686_v55  ;;  %v1712_v7 = vmul.f32 1.25, %v1200_v2  ;;  %v690_v9 = vld [vmem:[%s3281_s19 + $0xf18] sm:$0xff]  ;;  %v691_v11 = vld [vmem:[%s3281_s19 + $0xf20] sm:$0xff] }
 0x1ca   : > { %v1713_v8 = vmul.f32 1.25, %v1201_v4  ;;  %v1202_v10 = vld [vmem:[%s3289_s29 + $0xf18] sm:$0xff]  ;;  %2732 = vst [vmem:[%s3311_s20 + $0xee8] sm:$0xff] %v2220_v0  ;;  %v1203_v14 = vld [vmem:[%s3289_s29 + $0xf20] sm:$0xff]  ;;  %v692_v15 = vld [vmem:[%s3281_s19 + $0xf28] sm:$0xff] }
 0x1cb   : > { %v2223_v12 = vmul.f32 %v1711_v1, %v687_v61  ;;  %v1714_v13 = vmul.f32 1.25, %v1202_v10  ;;  %v1204_v16 = vld [vmem:[%s3289_s29 + $0xf28] sm:$0xff]  ;;  %2733 = vst [vmem:[%s3311_s20 + $0xef0] sm:$0xff] %v2221_v5  ;;  %2734 = vst [vmem:[%s3311_s20 + $0xef8] sm:$0xff] %v2222_v6  ;;  %v2224_v17 = vmul.f32 %v1712_v7, %v688_v63  ;;  %v1715_v19 = vmul.f32 1.25, %v1203_v14  ;;  %v693_v21 = vld [vmem:[%s3281_s19 + $0xf30] sm:$0xff] }
 0x1cc   : > { %v2225_v18 = vmul.f32 %v1713_v8, %v689_v3  ;;  %v1716_v20 = vmul.f32 1.25, %v1204_v16  ;;  %v1205_v22 = vld [vmem:[%s3289_s29 + $0xf30] sm:$0xff]  ;;  %v694_v23 = vld [vmem:[%s3281_s19 + $0xf38] sm:$0xff]  ;;  %v695_v27 = vld [vmem:[%s3281_s19 + $0xf40] sm:$0xff] }
 0x1cd   : > { %2735 = vst [vmem:[%s3311_s20 + $0xf00] sm:$0xff] %v2223_v12  ;;  %v2226_v24 = vmul.f32 %v1714_v13, %v690_v9  ;;  %v1717_v25 = vmul.f32 1.25, %v1205_v22  ;;  %v1206_v26 = vld [vmem:[%s3289_s29 + $0xf38] sm:$0xff]  ;;  %v1207_v28 = vld [vmem:[%s3289_s29 + $0xf40] sm:$0xff]  ;;  %2736 = vst [vmem:[%s3311_s20 + $0xf08] sm:$0xff] %v2224_v17  ;;  %v2227_v29 = vmul.f32 %v1715_v19, %v691_v11 }
 0x1ce   : > { %2737 = vst [vmem:[%s3311_s20 + $0xf10] sm:$0xff] %v2225_v18  ;;  %v2228_v30 = vmul.f32 %v1716_v20, %v692_v15  ;;  %v1718_v31 = vmul.f32 1.25, %v1206_v26  ;;  %v1719_v32 = vmul.f32 1.25, %v1207_v28  ;;  %v696_v33 = vld [vmem:[%s3281_s19 + $0xf48] sm:$0xff]  ;;  %v697_v35 = vld [vmem:[%s3281_s19 + $0xf50] sm:$0xff]  ;;  %v698_v39 = vld [vmem:[%s3281_s19 + $0xf58] sm:$0xff] }
 0x1cf   : > { %v1208_v34 = vld [vmem:[%s3289_s29 + $0xf48] sm:$0xff]  ;;  %2738 = vst [vmem:[%s3311_s20 + $0xf18] sm:$0xff] %v2226_v24  ;;  %v2229_v36 = vmul.f32 %v1717_v25, %v693_v21  ;;  %v1209_v38 = vld [vmem:[%s3289_s29 + $0xf50] sm:$0xff]  ;;  %v1210_v40 = vld [vmem:[%s3289_s29 + $0xf58] sm:$0xff] }
 0x1d0   : > { %v1720_v37 = vmul.f32 1.25, %v1208_v34  ;;  %2739 = vst [vmem:[%s3311_s20 + $0xf20] sm:$0xff] %v2227_v29  ;;  %2740 = vst [vmem:[%s3311_s20 + $0xf28] sm:$0xff] %v2228_v30  ;;  %v2230_v41 = vmul.f32 %v1718_v31, %v694_v23  ;;  %v2231_v42 = vmul.f32 %v1719_v32, %v695_v27  ;;  %v1721_v43 = vmul.f32 1.25, %v1209_v38  ;;  %v699_v45 = vld [vmem:[%s3281_s19 + $0xf60] sm:$0xff]  ;;  %v700_v47 = vld [vmem:[%s3281_s19 + $0xf68] sm:$0xff] }
 0x1d1   : > { %v1722_v44 = vmul.f32 1.25, %v1210_v40  ;;  %v1211_v46 = vld [vmem:[%s3289_s29 + $0xf60] sm:$0xff]  ;;  %2741 = vst [vmem:[%s3311_s20 + $0xf30] sm:$0xff] %v2229_v36  ;;  %v1212_v50 = vld [vmem:[%s3289_s29 + $0xf68] sm:$0xff]  ;;  %v701_v51 = vld [vmem:[%s3281_s19 + $0xf70] sm:$0xff] }
 0x1d2   : > { %v2232_v48 = vmul.f32 %v1720_v37, %v696_v33  ;;  %v1723_v49 = vmul.f32 1.25, %v1211_v46  ;;  %v1213_v52 = vld [vmem:[%s3289_s29 + $0xf70] sm:$0xff]  ;;  %2742 = vst [vmem:[%s3311_s20 + $0xf38] sm:$0xff] %v2230_v41  ;;  %2743 = vst [vmem:[%s3311_s20 + $0xf40] sm:$0xff] %v2231_v42  ;;  %v2233_v53 = vmul.f32 %v1721_v43, %v697_v35  ;;  %v1724_v55 = vmul.f32 1.25, %v1212_v50  ;;  %v702_v57 = vld [vmem:[%s3281_s19 + $0xf78] sm:$0xff] }
 0x1d3   : > { %v2234_v54 = vmul.f32 %v1722_v44, %v698_v39  ;;  %v1725_v56 = vmul.f32 1.25, %v1213_v52  ;;  %v1214_v58 = vld [vmem:[%s3289_s29 + $0xf78] sm:$0xff]  ;;  %v703_v59 = vld [vmem:[%s3281_s19 + $0xf80] sm:$0xff]  ;;  %v704_v63 = vld [vmem:[%s3281_s19 + $0xf88] sm:$0xff] }
 0x1d4   : > { %2744 = vst [vmem:[%s3311_s20 + $0xf48] sm:$0xff] %v2232_v48  ;;  %v2235_v60 = vmul.f32 %v1723_v49, %v699_v45  ;;  %v1726_v61 = vmul.f32 1.25, %v1214_v58  ;;  %v1215_v62 = vld [vmem:[%s3289_s29 + $0xf80] sm:$0xff]  ;;  %v1216_v0 = vld [vmem:[%s3289_s29 + $0xf88] sm:$0xff]  ;;  %2745 = vst [vmem:[%s3311_s20 + $0xf50] sm:$0xff] %v2233_v53  ;;  %v2236_v1 = vmul.f32 %v1724_v55, %v700_v47 }
 0x1d5   : > { %2746 = vst [vmem:[%s3311_s20 + $0xf58] sm:$0xff] %v2234_v54  ;;  %v2237_v2 = vmul.f32 %v1725_v56, %v701_v51  ;;  %v1727_v3 = vmul.f32 1.25, %v1215_v62  ;;  %v1728_v4 = vmul.f32 1.25, %v1216_v0  ;;  %v705_v5 = vld [vmem:[%s3281_s19 + $0xf90] sm:$0xff]  ;;  %v706_v7 = vld [vmem:[%s3281_s19 + $0xf98] sm:$0xff]  ;;  %v707_v11 = vld [vmem:[%s3281_s19 + $0xfa0] sm:$0xff] }
 0x1d6   : > { %v1217_v6 = vld [vmem:[%s3289_s29 + $0xf90] sm:$0xff]  ;;  %2747 = vst [vmem:[%s3311_s20 + $0xf60] sm:$0xff] %v2235_v60  ;;  %v2238_v8 = vmul.f32 %v1726_v61, %v702_v57  ;;  %v1218_v10 = vld [vmem:[%s3289_s29 + $0xf98] sm:$0xff]  ;;  %v1219_v12 = vld [vmem:[%s3289_s29 + $0xfa0] sm:$0xff] }
 0x1d7   : > { %v1729_v9 = vmul.f32 1.25, %v1217_v6  ;;  %2748 = vst [vmem:[%s3311_s20 + $0xf68] sm:$0xff] %v2236_v1  ;;  %2749 = vst [vmem:[%s3311_s20 + $0xf70] sm:$0xff] %v2237_v2  ;;  %v2239_v13 = vmul.f32 %v1727_v3, %v703_v59  ;;  %v2240_v14 = vmul.f32 %v1728_v4, %v704_v63  ;;  %v1730_v15 = vmul.f32 1.25, %v1218_v10  ;;  %v708_v17 = vld [vmem:[%s3281_s19 + $0xfa8] sm:$0xff]  ;;  %v709_v19 = vld [vmem:[%s3281_s19 + $0xfb0] sm:$0xff] }
 0x1d8   : > { %v1731_v16 = vmul.f32 1.25, %v1219_v12  ;;  %v1220_v18 = vld [vmem:[%s3289_s29 + $0xfa8] sm:$0xff]  ;;  %2750 = vst [vmem:[%s3311_s20 + $0xf78] sm:$0xff] %v2238_v8  ;;  %v1221_v22 = vld [vmem:[%s3289_s29 + $0xfb0] sm:$0xff]  ;;  %v710_v23 = vld [vmem:[%s3281_s19 + $0xfb8] sm:$0xff] }
 0x1d9   : > { %v2241_v20 = vmul.f32 %v1729_v9, %v705_v5  ;;  %v1732_v21 = vmul.f32 1.25, %v1220_v18  ;;  %v1222_v24 = vld [vmem:[%s3289_s29 + $0xfb8] sm:$0xff]  ;;  %2751 = vst [vmem:[%s3311_s20 + $0xf80] sm:$0xff] %v2239_v13  ;;  %2752 = vst [vmem:[%s3311_s20 + $0xf88] sm:$0xff] %v2240_v14  ;;  %v2242_v25 = vmul.f32 %v1730_v15, %v706_v7  ;;  %v1733_v27 = vmul.f32 1.25, %v1221_v22  ;;  %v711_v29 = vld [vmem:[%s3281_s19 + $0xfc0] sm:$0xff] }
 0x1da   : > { %v2243_v26 = vmul.f32 %v1731_v16, %v707_v11  ;;  %v1734_v28 = vmul.f32 1.25, %v1222_v24  ;;  %v1223_v30 = vld [vmem:[%s3289_s29 + $0xfc0] sm:$0xff]  ;;  %v712_v31 = vld [vmem:[%s3281_s19 + $0xfc8] sm:$0xff]  ;;  %v713_v35 = vld [vmem:[%s3281_s19 + $0xfd0] sm:$0xff] }
 0x1db   : > { %2753 = vst [vmem:[%s3311_s20 + $0xf90] sm:$0xff] %v2241_v20  ;;  %v2244_v32 = vmul.f32 %v1732_v21, %v708_v17  ;;  %v1735_v33 = vmul.f32 1.25, %v1223_v30  ;;  %v1224_v34 = vld [vmem:[%s3289_s29 + $0xfc8] sm:$0xff]  ;;  %v1225_v36 = vld [vmem:[%s3289_s29 + $0xfd0] sm:$0xff]  ;;  %2754 = vst [vmem:[%s3311_s20 + $0xf98] sm:$0xff] %v2242_v25  ;;  %v2245_v37 = vmul.f32 %v1733_v27, %v709_v19 }
 0x1dc   : > { %2755 = vst [vmem:[%s3311_s20 + $0xfa0] sm:$0xff] %v2243_v26  ;;  %v2246_v38 = vmul.f32 %v1734_v28, %v710_v23  ;;  %v1736_v39 = vmul.f32 1.25, %v1224_v34  ;;  %v1737_v40 = vmul.f32 1.25, %v1225_v36  ;;  %v714_v41 = vld [vmem:[%s3281_s19 + $0xfd8] sm:$0xff]  ;;  %v715_v43 = vld [vmem:[%s3281_s19 + $0xfe0] sm:$0xff]  ;;  %v716_v47 = vld [vmem:[%s3281_s19 + $0xfe8] sm:$0xff] }
 0x1dd   : > { %v1226_v42 = vld [vmem:[%s3289_s29 + $0xfd8] sm:$0xff]  ;;  %2756 = vst [vmem:[%s3311_s20 + $0xfa8] sm:$0xff] %v2244_v32  ;;  %v2247_v44 = vmul.f32 %v1735_v33, %v711_v29  ;;  %v1227_v46 = vld [vmem:[%s3289_s29 + $0xfe0] sm:$0xff]  ;;  %v1228_v48 = vld [vmem:[%s3289_s29 + $0xfe8] sm:$0xff] }
 0x1de   : > { %v1738_v45 = vmul.f32 1.25, %v1226_v42  ;;  %2757 = vst [vmem:[%s3311_s20 + $0xfb0] sm:$0xff] %v2245_v37  ;;  %2758 = vst [vmem:[%s3311_s20 + $0xfb8] sm:$0xff] %v2246_v38  ;;  %v2248_v49 = vmul.f32 %v1736_v39, %v712_v31  ;;  %v2249_v50 = vmul.f32 %v1737_v40, %v713_v35  ;;  %v1739_v51 = vmul.f32 1.25, %v1227_v46  ;;  %v717_v53 = vld [vmem:[%s3281_s19 + $0xff0] sm:$0xff]  ;;  %v718_v57 = vld [vmem:[%s3281_s19 + $0xff8] sm:$0xff] }
 0x1df   : > { %v1740_v52 = vmul.f32 1.25, %v1228_v48  ;;  %v1229_v54 = vld [vmem:[%s3289_s29 + $0xff0] sm:$0xff]  ;;  %2759 = vst [vmem:[%s3311_s20 + $0xfc0] sm:$0xff] %v2247_v44  ;;  %v1230_v58 = vld [vmem:[%s3289_s29 + $0xff8] sm:$0xff] }
 0x1e0   : > { %v2250_v55 = vmul.f32 %v1738_v45, %v714_v41  ;;  %v1741_v56 = vmul.f32 1.25, %v1229_v54  ;;  %2760 = vst [vmem:[%s3311_s20 + $0xfc8] sm:$0xff] %v2248_v49  ;;  %2761 = vst [vmem:[%s3311_s20 + $0xfd0] sm:$0xff] %v2249_v50  ;;  %v2251_v59 = vmul.f32 %v1739_v51, %v715_v43  ;;  %v1742_v61 = vmul.f32 1.25, %v1230_v58 }
 0x1e1   : > { %v2252_v60 = vmul.f32 %v1740_v52, %v716_v47 }
 0x1e2   : > { %2762 = vst [vmem:[%s3311_s20 + $0xfd8] sm:$0xff] %v2250_v55  ;;  %v2253_v62 = vmul.f32 %v1741_v56, %v717_v53  ;;  %2763 = vst [vmem:[%s3311_s20 + $0xfe0] sm:$0xff] %v2251_v59  ;;  %v2254_v63 = vmul.f32 %v1742_v61, %v718_v57 }
 0x1e3   : > { %2764 = vst [vmem:[%s3311_s20 + $0xfe8] sm:$0xff] %v2252_v60 }
 0x1e4   : > { %2765 = vst [vmem:[%s3311_s20 + $0xff0] sm:$0xff] %v2253_v62  ;;  %2766 = vst [vmem:[%s3311_s20 + $0xff8] sm:$0xff] %v2254_v63 }
 0x1e5   : > { %3033 = shalt.err (!%p3030_p11)
}
 0x1e6   : > { %s3034_s7 = scalar_lea.hbm %s4835_s17, 65536  ;;  %s3038_s4 = scalar_lea.hbm %s4887_s2, 131072 }
 0x1e7   : > { %p3035_p3 = scmp.ne.s32.totalorder %s4835_s17, %s3034_s7  ;;  %p3039_p2 = scmp.lt.u32.totalorder %s4835_s17, %s4887_s2 }
 0x1e8   : > { %p3040_p4 = scmp.lt.u32.totalorder %s3038_s4, %s3034_s7  ;;  %p3042_p13 = scmp.lt.u32.totalorder %s3034_s7, %s4835_s17 }
 0x1e9   : > { %p3036_p8 = pnand %p3035_p3, %p4897_p1 }
 0x1ea   : > { %p3041_p6 = por %p3040_p4, %p3039_p2 }
 0x1eb   : > { %p3037_p0 = pneg %p3036_p8 }
 0x1ec   : > { %p3043_p12 = por %p3042_p13, %p3041_p6 }
 0x1ee   : > { %p3044_p10 = pnand %p3043_p12, %p3037_p0 }
 0x1f0   : > { %3047 = shalt.err (!%p3044_p10)
}
 0x1f1   : > { %s3097_s23 = smov 1024   ;;  %s3098_s29 = smov 64  }
 0x1f2   : > { %2909 = dma.vmem_to_hbm [thread:$0]  (%p4897_p1), %s4837_s6, 65536, %s4835_s17, %s2768_s28, %s3097_s23, %s3097_s23, %s3098_s29  }
 0x1f3 PF: > { %s2797_s20 = sand.u32 1, %s3078_s9   ;;  %p4898_p5 = scmp.ne.s32.totalorder %s4893_s22, 0 }
 0x1f4   : > { %p4899_p7 = scmp.ge.s32.totalorder %s3090_s12, 2  ;;  %s2798_s5 = scalar_lea.sflag [#allocation4], %s2797_s20 }
 0x1f6   : > { %p2919_p9 = pnand %p4899_p7, %p4898_p5 }
 0x1f8   : > { %3073 = dma.done.wait (!%p2919_p9), %s2798_s5, 65536  }
 0x1f9   : > { %3075 = vsyncadd (!%p2919_p9), %s2798_s5, 4294901760  ;;  %p18_p11 = scmp.ge.s32.totalorder %s3139_s15, 4   ;;  %s4900_s9 = smov %s3082_s10 }
 0x1fa   : > { %s4901_s10 = smov %s3086_s11  ;;  %s4902_s11 = smov %s3151_s18 }
 0x1fb   : > { %s4903_s12 = smov %s3139_s15  ;;  %20 = sbr.rel (!%p18_p11) target bundleno = 7 (0x7), region = 86 }
 0x202   :  { %2803 = vsyncpa [#allocation3], 1 }
 0x203   :  { %2805 = vsyncpa [#allocation3 + $0x1], 1 }
 0x204   :  { %2806 = vsyncpa [#allocation6], 1 }
 0x205   :  { %2808 = vsyncpa [#allocation6 + $0x1], 1 }
 0x206   :  { %2809 = vsyncpa [#allocation4], 1 }
 0x207   :  { %2811 = vsyncpa [#allocation4 + $0x1], 1 }

</bundles_post_ra>
